<compile_context>
chip_gen: v6e
topology: v6e:2x2x1
jax: 0.10.0
libtpu: 0.0.40
codegen_flags: <defaults>
</compile_context>

<pallas_src>
import jax
import jax.numpy as jnp
from jax.experimental import pallas as pl
from jax.experimental.pallas import tpu as pltpu


# ---------------------------------------------------------------------------
# Fused kernel: one (batch, row-strip) tile per grid step.
# ---------------------------------------------------------------------------
def _bottleneck_dwp_kernel(xa_ref, xc_ref, xb_ref,
                           w1_ref, b1_ref,
                           w2_ref, b2_ref,
                           w3_ref, b3_ref,
                           o_ref, ypad_ref):
    TH = xc_ref.shape[1]
    W = xc_ref.shape[2]
    Cin = xc_ref.shape[3]
    P = w1_ref.shape[1]            # planes
    Cout = o_ref.shape[3]          # planes * expansion == Cin

    # ---- conv1 (1x1, BN folded) + relu on the strip AND its two halo rows in
    #      a single MXU matmul (bf16 x bf16 -> f32 accumulate).  conv1/bn1/relu
    #      are pointwise, so they commute with the reflect padding: the halo
    #      rows were already reflect-resolved by the index_maps.
    x_full = jnp.concatenate([xa_ref[0], xc_ref[0], xb_ref[0]], axis=0)  # (TH+2, W, Cin)
    y_full = jnp.dot(x_full.reshape((TH + 2) * W, Cin).astype(jnp.bfloat16),
                     w1_ref[...],
                     preferred_element_type=jnp.float32)
    y_full = jnp.maximum(y_full + b1_ref[...], 0.0).reshape(TH + 2, W, P)

    # ---- assemble the reflect-padded y1 tile (TH+2, W+2, P) in VMEM scratch.
    # Reflect along W: padded col 0   <- original col 1   (padded col 2)
    #                  padded col W+1 <- original col W-2 (padded col W-1)
    ypad_ref[:, 1:W + 1, :] = y_full
    ypad_ref[:, 0:1, :] = ypad_ref[:, 2:3, :]
    ypad_ref[:, W + 1:W + 2, :] = ypad_ref[:, W - 1:W, :]

    # ---- depthwise 3x3 (BN folded) + relu.
    # Hoist the 3 column shifts out of the 9-tap loop (3 sublane-shifted views
    # instead of 9 shifted slices); row shifts are on the un-tiled dim (cheap).
    ypad = ypad_ref[...]                               # (TH+2, W+2, P)
    w2 = w2_ref[...]                                   # (3, 3, P), scale folded
    c0 = ypad[:, 0:W, :]
    c1 = ypad[:, 1:W + 1, :]
    c2 = ypad[:, 2:W + 2, :]
    acc = jnp.zeros((TH, W, P), jnp.float32)
    for dy in range(3):
        acc = (acc
               + c0[dy:dy + TH] * w2[dy, 0]
               + c1[dy:dy + TH] * w2[dy, 1]
               + c2[dy:dy + TH] * w2[dy, 2])
    y2 = jnp.maximum(acc + b2_ref[...], 0.0)           # (TH, W, P)

    # ---- conv3 (1x1, BN folded) + residual add + relu.
    y3 = jnp.dot(y2.reshape(TH * W, P).astype(jnp.bfloat16),
                 w3_ref[...],
                 preferred_element_type=jnp.float32)
    y3 = (y3 + b3_ref[...]).reshape(1, TH, W, Cout)
    o_ref[...] = jnp.maximum(y3 + xc_ref[...], 0.0)


# ---------------------------------------------------------------------------
# Tiling / VMEM helpers
# ---------------------------------------------------------------------------
def _ceil_to(v, m):
    return -(-v // m) * m


def _padded_bytes(shape, elem=4):
    s = list(shape)
    if len(s) >= 2:
        s[-1] = _ceil_to(s[-1], 128)
        s[-2] = _ceil_to(s[-2], 8)
    n = elem
    for d in s:
        n *= d
    return n


def _vmem_bytes(TH, W, Cin, planes, Cout):
    blocks = [(1, 1, W, Cin), (1, TH, W, Cin), (1, 1, W, Cin),
              (Cin, planes), (1, planes),
              (3, 3, planes), (1, planes),
              (planes, Cout), (1, Cout),
              (1, TH, W, Cout)]
    pipeline = 2 * sum(_padded_bytes(b) for b in blocks)       # double buffers
    scratch = _padded_bytes((TH + 2, W + 2, planes))
    interm = (2 * _padded_bytes((TH + 2, W, Cin))              # concat + bf16 copy
              + 5 * _padded_bytes((TH + 2, W + 2, planes))     # y_full / ypad / shifts
              + 3 * _padded_bytes((TH * W, Cout)))             # conv3 output etc.
    return pipeline + scratch + interm


def _pick_row_tile(H, W, Cin, planes, Cout, budget=24 << 20):
    """Largest divisor of H (<= 512 rows) whose tile fits the VMEM budget."""
    best = 1
    for d in range(1, min(H, 512) + 1):
        if H % d == 0 and _vmem_bytes(d, W, Cin, planes, Cout) <= budget:
            best = d
    return best


def _fold_params(p):
    """Fold BatchNorm scales into conv weights; keep biases separate."""
    w1f = (p["w1"] * p["s1"]).astype(jnp.bfloat16)       # (Cin, P)  * (1, P)
    w2f = (p["w2"] * p["s2"][0]).astype(jnp.float32)     # (3, 3, P) * (P,)
    w3f = (p["w3"] * p["s3"]).astype(jnp.bfloat16)       # (P, Cout) * (1, Cout)
    return w1f, p["b1"], w2f, p["b2"], w3f, p["b3"]


# ---------------------------------------------------------------------------
# Wrapper (NCHW in / NCHW out, like the PyTorch module)
# ---------------------------------------------------------------------------
def bottleneck_dwp_forward(x_nchw, params, *, row_tile=None):
    N, Cin, H, W = x_nchw.shape
    planes = params["w1"].shape[1]
    Cout = params["w3"].shape[1]
    assert Cin == Cout, "downsample is None -> inplanes must equal planes*4"
    assert H >= 2 and W >= 2, "reflect padding needs H, W >= 2"

    w1f, b1, w2f, b2, w3f, b3 = _fold_params(params)

    x = jnp.transpose(x_nchw, (0, 2, 3, 1)).astype(jnp.float32)   # NHWC

    TH = (_pick_row_tile(H, W, Cin, planes, Cout)
          if row_tile is None else row_tile)
    assert H % TH == 0
    nt = H // TH

    # Halo-row block indices (block size 1 along H -> block index == row index);
    # reflect rows at the top/bottom image border are resolved right here.
    def xa_map(n, t):                      # row above the strip
        return (n, jnp.where(t == 0, 1, t * TH - 1), 0, 0)

    def xc_map(n, t):                      # the strip itself (also residual)
        return (n, t, 0, 0)

    def xb_map(n, t):                      # row below the strip
        return (n, jnp.where(t == nt - 1, H - 2, (t + 1) * TH), 0, 0)

    const2 = lambda n, t: (0, 0)
    const3 = lambda n, t: (0, 0, 0)

    vmem_limit = int(min(max(_vmem_bytes(TH, W, Cin, planes, Cout) + (8 << 20),
                             16 << 20), 48 << 20))

    out_nhwc = pl.pallas_call(
        _bottleneck_dwp_kernel,
        out_shape=jax.ShapeDtypeStruct((N, H, W, Cout), jnp.float32),
        grid=(N, nt),
        in_specs=[
            pl.BlockSpec((1, 1, W, Cin), xa_map),
            pl.BlockSpec((1, TH, W, Cin), xc_map),
            pl.BlockSpec((1, 1, W, Cin), xb_map),
            pl.BlockSpec((Cin, planes), const2),
            pl.BlockSpec((1, planes), const2),
            pl.BlockSpec((3, 3, planes), const3),
            pl.BlockSpec((1, planes), const2),
            pl.BlockSpec((planes, Cout), const2),
            pl.BlockSpec((1, Cout), const2),
        ],
        out_specs=pl.BlockSpec((1, TH, W, Cout), lambda n, t: (n, t, 0, 0)),
        scratch_shapes=[pltpu.VMEM((TH + 2, W + 2, planes), jnp.float32)],
        compiler_params=pltpu.CompilerParams(
            dimension_semantics=("parallel", "parallel"),
            vmem_limit_bytes=vmem_limit),
    )(x, x, x, w1f, b1, w2f, b2, w3f, b3)

    return jnp.transpose(out_nhwc, (0, 3, 1, 2))                  # back to NCHW


# ---------------------------------------------------------------------------
# Deterministic parameter construction (BatchNorm in eval mode -> scale/bias)
# ---------------------------------------------------------------------------
def make_params(key, inplanes, planes, expansion=4):
    keys = jax.random.split(key, 16)
    eps = 1e-5

    def folded_bn(k, c):
        kg, kb, km, kv = jax.random.split(k, 4)
        gamma = jax.random.uniform(kg, (c,), minval=0.5, maxval=1.5)
        beta = jax.random.normal(kb, (c,)) * 0.1
        mean = jax.random.normal(km, (c,)) * 0.1
        var = jax.random.uniform(kv, (c,), minval=0.5, maxval=1.5)
        scale = gamma / jnp.sqrt(var + eps)
        bias = beta - mean * scale
        return (scale.reshape(1, c).astype(jnp.float32),
                bias.reshape(1, c).astype(jnp.float32))

    cout = planes * expansion
    w1 = (jax.random.normal(keys[0], (inplanes, planes)) * 0.1).astype(jnp.float32)
    s1, b1 = folded_bn(keys[1], planes)
    w2 = (jax.random.normal(keys[2], (3, 3, planes)) * 0.1).astype(jnp.float32)
    s2, b2 = folded_bn(keys[3], planes)
    w3 = (jax.random.normal(keys[4], (planes, cout)) * 0.1).astype(jnp.float32)
    s3, b3 = folded_bn(keys[5], cout)
    return dict(w1=w1, s1=s1, b1=b1, w2=w2, s2=s2, b2=b2, w3=w3, s3=s3, b3=b3)


# ---------------------------------------------------------------------------
# Pure-JAX reference (same folded math; matmul operands cast to bf16 exactly
# like the kernel so the comparison stays tight — accumulation is f32 in both).
# ---------------------------------------------------------------------------
def reference_forward(x_nchw, params):
    w1f, b1, w2f, b2, w3f, b3 = _fold_params(params)
    x = jnp.transpose(x_nchw, (0, 2, 3, 1)).astype(jnp.float32)
    N, H, W, _ = x.shape
    y = jnp.einsum("nhwc,cd->nhwd", x.astype(jnp.bfloat16), w1f,
                   preferred_element_type=jnp.float32)
    y = jnp.maximum(y + b1[0], 0.0)
    yp = jnp.pad(y, ((0, 0), (1, 1), (1, 1), (0, 0)), mode="reflect")
    acc = jnp.zeros_like(y)
    for dy in range(3):
        for dx in range(3):
            acc = acc + yp[:, dy:dy + H, dx:dx + W, :] * w2f[dy, dx, :]
    y = jnp.maximum(acc + b2[0], 0.0)
    y = jnp.einsum("nhwc,cd->nhwd", y.astype(jnp.bfloat16), w3f,
                   preferred_element_type=jnp.float32)
    y = y + b3[0]
    y = jnp.maximum(y + x, 0.0)
    return jnp.transpose(y, (0, 3, 1, 2))


if __name__ == "__main__":
    # Small shapes consistent with BottleneckDWP: inplanes = planes * expansion
    N, inplanes, H, W = 2, 16, 16, 16
    planes = 4                          # conv3 outputs planes * 4 == inplanes

    key = jax.random.PRNGKey(0)
    kx, kp = jax.random.split(key)
    x = jax.random.normal(kx, (N, inplanes, H, W), dtype=jnp.float32)
    params = make_params(kp, inplanes, planes)

    out = jax.block_until_ready(bottleneck_dwp_forward(x, params))
    ref = jax.block_until_ready(reference_forward(x, params))

    assert out.shape == (N, inplanes, H, W)
    assert jnp.allclose(out, ref, atol=1e-2, rtol=1e-2), "mismatch vs reference"

    print("KERNEL_OK")
</pallas_src>

<mosaic_0001>
module attributes {stable_mosaic.version = 11 : i64} {
  func.func @_bottleneck_dwp_kernel(%arg0: i32, %arg1: i32, %arg2: memref<1x1x16x16xf32, #tpu.memory_space<vmem>>, %arg3: memref<1x16x16x16xf32, #tpu.memory_space<vmem>>, %arg4: memref<1x1x16x16xf32, #tpu.memory_space<vmem>>, %arg5: memref<16x4xbf16, #tpu.memory_space<vmem>>, %arg6: memref<1x4xf32, #tpu.memory_space<vmem>>, %arg7: memref<3x3x4xf32, #tpu.memory_space<vmem>>, %arg8: memref<1x4xf32, #tpu.memory_space<vmem>>, %arg9: memref<4x16xbf16, #tpu.memory_space<vmem>>, %arg10: memref<1x16xf32, #tpu.memory_space<vmem>>, %arg11: memref<1x16x16x16xf32, #tpu.memory_space<vmem>>, %arg12: memref<18x18x4xf32, #tpu.memory_space<vmem>>) attributes {dimension_semantics = [#tpu.dimension_semantics<parallel>, #tpu.dimension_semantics<parallel>], iteration_bounds = array<i64: 2, 1>, scalar_prefetch = 0 : i64, scratch_operands = 1 : i64, tpu.core_type = #tpu.core_type<tc>, window_params = [{transform_indices = @transform_0, window_bounds = array<i64: 1, 1, 16, 16>}, {transform_indices = @transform_1, window_bounds = array<i64: 1, 16, 16, 16>}, {transform_indices = @transform_2, window_bounds = array<i64: 1, 1, 16, 16>}, {pipeline_mode = #tpu.pipeline_mode<synchronous>, transform_indices = @transform_3, window_bounds = array<i64: 16, 4>}, {pipeline_mode = #tpu.pipeline_mode<synchronous>, transform_indices = @transform_4, window_bounds = array<i64: 1, 4>}, {pipeline_mode = #tpu.pipeline_mode<synchronous>, transform_indices = @transform_5, window_bounds = array<i64: 3, 3, 4>}, {pipeline_mode = #tpu.pipeline_mode<synchronous>, transform_indices = @transform_6, window_bounds = array<i64: 1, 4>}, {pipeline_mode = #tpu.pipeline_mode<synchronous>, transform_indices = @transform_7, window_bounds = array<i64: 4, 16>}, {pipeline_mode = #tpu.pipeline_mode<synchronous>, transform_indices = @transform_8, window_bounds = array<i64: 1, 16>}, {transform_indices = @transform_9, window_bounds = array<i64: 1, 16, 16, 16>}]} {
    %c0 = arith.constant 0 : index
    %c0_0 = arith.constant 0 : index
    %c0_1 = arith.constant 0 : index
    %c0_2 = arith.constant 0 : index
    %0 = vector.load %arg2[%c0, %c0_0, %c0_1, %c0_2] : memref<1x1x16x16xf32, #tpu.memory_space<vmem>>, vector<1x1x16x16xf32>
    %1 = vector.shape_cast %0 : vector<1x1x16x16xf32> to vector<1x16x16xf32>
    %c0_3 = arith.constant 0 : index
    %c0_4 = arith.constant 0 : index
    %c0_5 = arith.constant 0 : index
    %c0_6 = arith.constant 0 : index
    %2 = vector.load %arg3[%c0_3, %c0_4, %c0_5, %c0_6] : memref<1x16x16x16xf32, #tpu.memory_space<vmem>>, vector<1x16x16x16xf32>
    %3 = vector.shape_cast %2 : vector<1x16x16x16xf32> to vector<16x16x16xf32>
    %c0_7 = arith.constant 0 : index
    %c0_8 = arith.constant 0 : index
    %c0_9 = arith.constant 0 : index
    %c0_10 = arith.constant 0 : index
    %4 = vector.load %arg4[%c0_7, %c0_8, %c0_9, %c0_10] : memref<1x1x16x16xf32, #tpu.memory_space<vmem>>, vector<1x1x16x16xf32>
    %5 = vector.shape_cast %4 : vector<1x1x16x16xf32> to vector<1x16x16xf32>
    %6 = tpu.concatenate %1, %3, %5 in 0 : vector<1x16x16xf32>, vector<16x16x16xf32>, vector<1x16x16xf32> -> vector<18x16x16xf32>
    %7 = vector.shape_cast %6 : vector<18x16x16xf32> to vector<288x16xf32>
    %8 = arith.truncf %7 : vector<288x16xf32> to vector<288x16xbf16>
    %c0_11 = arith.constant 0 : index
    %c0_12 = arith.constant 0 : index
    %9 = vector.load %arg5[%c0_11, %c0_12] : memref<16x4xbf16, #tpu.memory_space<vmem>>, vector<16x4xbf16>
    %cst = arith.constant dense<0.000000e+00> : vector<288x4xf32>
    %10 = tpu.matmul %8, %9, %cst {dimension_numbers = #tpu.dot_dimension_numbers<[1], [0], [0], [1], [0, 0, 1, 1], [], []>} : vector<288x16xbf16>, vector<16x4xbf16>, vector<288x4xf32> -> vector<288x4xf32>
    %c0_13 = arith.constant 0 : index
    %c0_14 = arith.constant 0 : index
    %11 = vector.load %arg6[%c0_13, %c0_14] : memref<1x4xf32, #tpu.memory_space<vmem>>, vector<1x4xf32>
    %12 = vector.broadcast %11 : vector<1x4xf32> to vector<288x4xf32>
    %13 = arith.addf %10, %12 : vector<288x4xf32>
    %cst_15 = arith.constant 0.000000e+00 : f32
    %14 = vector.broadcast %cst_15 : f32 to vector<288x4xf32>
    %15 = arith.maximumf %13, %14 : vector<288x4xf32>
    %16 = vector.shape_cast %15 : vector<288x4xf32> to vector<18x16x4xf32>
    %c0_16 = arith.constant 0 : index
    %c1 = arith.constant 1 : index
    %c0_17 = arith.constant 0 : index
    %17 = vector.load %arg12[%c0_16, %c1, %c0_17] : memref<18x18x4xf32, #tpu.memory_space<vmem>>, vector<18x16x4xf32>
    tpu.vector_store %arg12[%c0_16, %c1, %c0_17], %16 {strides = array<i32>} : memref<18x18x4xf32, #tpu.memory_space<vmem>>, vector<18x16x4xf32>,
    %c0_18 = arith.constant 0 : index
    %c2 = arith.constant 2 : index
    %c0_19 = arith.constant 0 : index
    %18 = vector.load %arg12[%c0_18, %c2, %c0_19] : memref<18x18x4xf32, #tpu.memory_space<vmem>>, vector<18x1x4xf32>
    %c0_20 = arith.constant 0 : index
    %c0_21 = arith.constant 0 : index
    %c0_22 = arith.constant 0 : index
    %19 = vector.load %arg12[%c0_20, %c0_21, %c0_22] : memref<18x18x4xf32, #tpu.memory_space<vmem>>, vector<18x1x4xf32>
    tpu.vector_store %arg12[%c0_20, %c0_21, %c0_22], %18 {strides = array<i32>} : memref<18x18x4xf32, #tpu.memory_space<vmem>>, vector<18x1x4xf32>,
    %c0_23 = arith.constant 0 : index
    %c15 = arith.constant 15 : index
    %c0_24 = arith.constant 0 : index
    %20 = vector.load %arg12[%c0_23, %c15, %c0_24] : memref<18x18x4xf32, #tpu.memory_space<vmem>>, vector<18x1x4xf32>
    %c0_25 = arith.constant 0 : index
    %c17 = arith.constant 17 : index
    %c0_26 = arith.constant 0 : index
    %21 = vector.load %arg12[%c0_25, %c17, %c0_26] : memref<18x18x4xf32, #tpu.memory_space<vmem>>, vector<18x1x4xf32>
    tpu.vector_store %arg12[%c0_25, %c17, %c0_26], %20 {strides = array<i32>} : memref<18x18x4xf32, #tpu.memory_space<vmem>>, vector<18x1x4xf32>,
    %c0_27 = arith.constant 0 : index
    %c0_28 = arith.constant 0 : index
    %c0_29 = arith.constant 0 : index
    %22 = vector.load %arg12[%c0_27, %c0_28, %c0_29] : memref<18x18x4xf32, #tpu.memory_space<vmem>>, vector<18x18x4xf32>
    %c0_30 = arith.constant 0 : index
    %c0_31 = arith.constant 0 : index
    %c0_32 = arith.constant 0 : index
    %23 = vector.load %arg7[%c0_30, %c0_31, %c0_32] : memref<3x3x4xf32, #tpu.memory_space<vmem>>, vector<3x3x4xf32>
    %24 = vector.extract_strided_slice %22 {offsets = [0, 0, 0], sizes = [18, 16, 4], strides = [1, 1, 1]} : vector<18x18x4xf32> to vector<18x16x4xf32>
    %25 = vector.extract_strided_slice %22 {offsets = [0, 1, 0], sizes = [18, 16, 4], strides = [1, 1, 1]} : vector<18x18x4xf32> to vector<18x16x4xf32>
    %26 = vector.extract_strided_slice %22 {offsets = [0, 2, 0], sizes = [18, 16, 4], strides = [1, 1, 1]} : vector<18x18x4xf32> to vector<18x16x4xf32>
    %cst_33 = arith.constant 0.000000e+00 : f32
    %27 = vector.broadcast %cst_33 : f32 to vector<16x16x4xf32>
    %28 = vector.extract_strided_slice %24 {offsets = [0, 0, 0], sizes = [16, 16, 4], strides = [1, 1, 1]} : vector<18x16x4xf32> to vector<16x16x4xf32>
    %29 = vector.extract_strided_slice %23 {offsets = [0, 0, 0], sizes = [1, 1, 4], strides = [1, 1, 1]} : vector<3x3x4xf32> to vector<1x1x4xf32>
    %30 = vector.shape_cast %29 : vector<1x1x4xf32> to vector<4xf32>
    %31 = vector.shape_cast %30 : vector<4xf32> to vector<1x1x4xf32>
    %32 = vector.broadcast %31 : vector<1x1x4xf32> to vector<16x16x4xf32>
    %33 = arith.mulf %28, %32 : vector<16x16x4xf32>
    %34 = arith.addf %27, %33 : vector<16x16x4xf32>
    %35 = vector.extract_strided_slice %25 {offsets = [0, 0, 0], sizes = [16, 16, 4], strides = [1, 1, 1]} : vector<18x16x4xf32> to vector<16x16x4xf32>
    %36 = vector.extract_strided_slice %23 {offsets = [0, 1, 0], sizes = [1, 1, 4], strides = [1, 1, 1]} : vector<3x3x4xf32> to vector<1x1x4xf32>
    %37 = vector.shape_cast %36 : vector<1x1x4xf32> to vector<4xf32>
    %38 = vector.shape_cast %37 : vector<4xf32> to vector<1x1x4xf32>
    %39 = vector.broadcast %38 : vector<1x1x4xf32> to vector<16x16x4xf32>
    %40 = arith.mulf %35, %39 : vector<16x16x4xf32>
    %41 = arith.addf %34, %40 : vector<16x16x4xf32>
    %42 = vector.extract_strided_slice %26 {offsets = [0, 0, 0], sizes = [16, 16, 4], strides = [1, 1, 1]} : vector<18x16x4xf32> to vector<16x16x4xf32>
    %43 = vector.extract_strided_slice %23 {offsets = [0, 2, 0], sizes = [1, 1, 4], strides = [1, 1, 1]} : vector<3x3x4xf32> to vector<1x1x4xf32>
    %44 = vector.shape_cast %43 : vector<1x1x4xf32> to vector<4xf32>
    %45 = vector.shape_cast %44 : vector<4xf32> to vector<1x1x4xf32>
    %46 = vector.broadcast %45 : vector<1x1x4xf32> to vector<16x16x4xf32>
    %47 = arith.mulf %42, %46 : vector<16x16x4xf32>
    %48 = arith.addf %41, %47 : vector<16x16x4xf32>
    %49 = vector.extract_strided_slice %24 {offsets = [1, 0, 0], sizes = [16, 16, 4], strides = [1, 1, 1]} : vector<18x16x4xf32> to vector<16x16x4xf32>
    %50 = vector.extract_strided_slice %23 {offsets = [1, 0, 0], sizes = [1, 1, 4], strides = [1, 1, 1]} : vector<3x3x4xf32> to vector<1x1x4xf32>
    %51 = vector.shape_cast %50 : vector<1x1x4xf32> to vector<4xf32>
    %52 = vector.shape_cast %51 : vector<4xf32> to vector<1x1x4xf32>
    %53 = vector.broadcast %52 : vector<1x1x4xf32> to vector<16x16x4xf32>
    %54 = arith.mulf %49, %53 : vector<16x16x4xf32>
    %55 = arith.addf %48, %54 : vector<16x16x4xf32>
    %56 = vector.extract_strided_slice %25 {offsets = [1, 0, 0], sizes = [16, 16, 4], strides = [1, 1, 1]} : vector<18x16x4xf32> to vector<16x16x4xf32>
    %57 = vector.extract_strided_slice %23 {offsets = [1, 1, 0], sizes = [1, 1, 4], strides = [1, 1, 1]} : vector<3x3x4xf32> to vector<1x1x4xf32>
    %58 = vector.shape_cast %57 : vector<1x1x4xf32> to vector<4xf32>
    %59 = vector.shape_cast %58 : vector<4xf32> to vector<1x1x4xf32>
    %60 = vector.broadcast %59 : vector<1x1x4xf32> to vector<16x16x4xf32>
    %61 = arith.mulf %56, %60 : vector<16x16x4xf32>
    %62 = arith.addf %55, %61 : vector<16x16x4xf32>
    %63 = vector.extract_strided_slice %26 {offsets = [1, 0, 0], sizes = [16, 16, 4], strides = [1, 1, 1]} : vector<18x16x4xf32> to vector<16x16x4xf32>
    %64 = vector.extract_strided_slice %23 {offsets = [1, 2, 0], sizes = [1, 1, 4], strides = [1, 1, 1]} : vector<3x3x4xf32> to vector<1x1x4xf32>
    %65 = vector.shape_cast %64 : vector<1x1x4xf32> to vector<4xf32>
    %66 = vector.shape_cast %65 : vector<4xf32> to vector<1x1x4xf32>
    %67 = vector.broadcast %66 : vector<1x1x4xf32> to vector<16x16x4xf32>
    %68 = arith.mulf %63, %67 : vector<16x16x4xf32>
    %69 = arith.addf %62, %68 : vector<16x16x4xf32>
    %70 = vector.extract_strided_slice %24 {offsets = [2, 0, 0], sizes = [16, 16, 4], strides = [1, 1, 1]} : vector<18x16x4xf32> to vector<16x16x4xf32>
    %71 = vector.extract_strided_slice %23 {offsets = [2, 0, 0], sizes = [1, 1, 4], strides = [1, 1, 1]} : vector<3x3x4xf32> to vector<1x1x4xf32>
    %72 = vector.shape_cast %71 : vector<1x1x4xf32> to vector<4xf32>
    %73 = vector.shape_cast %72 : vector<4xf32> to vector<1x1x4xf32>
    %74 = vector.broadcast %73 : vector<1x1x4xf32> to vector<16x16x4xf32>
    %75 = arith.mulf %70, %74 : vector<16x16x4xf32>
    %76 = arith.addf %69, %75 : vector<16x16x4xf32>
    %77 = vector.extract_strided_slice %25 {offsets = [2, 0, 0], sizes = [16, 16, 4], strides = [1, 1, 1]} : vector<18x16x4xf32> to vector<16x16x4xf32>
    %78 = vector.extract_strided_slice %23 {offsets = [2, 1, 0], sizes = [1, 1, 4], strides = [1, 1, 1]} : vector<3x3x4xf32> to vector<1x1x4xf32>
    %79 = vector.shape_cast %78 : vector<1x1x4xf32> to vector<4xf32>
    %80 = vector.shape_cast %79 : vector<4xf32> to vector<1x1x4xf32>
    %81 = vector.broadcast %80 : vector<1x1x4xf32> to vector<16x16x4xf32>
    %82 = arith.mulf %77, %81 : vector<16x16x4xf32>
    %83 = arith.addf %76, %82 : vector<16x16x4xf32>
    %84 = vector.extract_strided_slice %26 {offsets = [2, 0, 0], sizes = [16, 16, 4], strides = [1, 1, 1]} : vector<18x16x4xf32> to vector<16x16x4xf32>
    %85 = vector.extract_strided_slice %23 {offsets = [2, 2, 0], sizes = [1, 1, 4], strides = [1, 1, 1]} : vector<3x3x4xf32> to vector<1x1x4xf32>
    %86 = vector.shape_cast %85 : vector<1x1x4xf32> to vector<4xf32>
    %87 = vector.shape_cast %86 : vector<4xf32> to vector<1x1x4xf32>
    %88 = vector.broadcast %87 : vector<1x1x4xf32> to vector<16x16x4xf32>
    %89 = arith.mulf %84, %88 : vector<16x16x4xf32>
    %90 = arith.addf %83, %89 : vector<16x16x4xf32>
    %c0_34 = arith.constant 0 : index
    %c0_35 = arith.constant 0 : index
    %91 = vector.load %arg8[%c0_34, %c0_35] : memref<1x4xf32, #tpu.memory_space<vmem>>, vector<1x4xf32>
    %92 = vector.shape_cast %91 : vector<1x4xf32> to vector<1x1x4xf32>
    %93 = vector.broadcast %92 : vector<1x1x4xf32> to vector<16x16x4xf32>
    %94 = arith.addf %90, %93 : vector<16x16x4xf32>
    %cst_36 = arith.constant 0.000000e+00 : f32
    %95 = vector.broadcast %cst_36 : f32 to vector<16x16x4xf32>
    %96 = arith.maximumf %94, %95 : vector<16x16x4xf32>
    %97 = vector.shape_cast %96 : vector<16x16x4xf32> to vector<256x4xf32>
    %98 = arith.truncf %97 : vector<256x4xf32> to vector<256x4xbf16>
    %c0_37 = arith.constant 0 : index
    %c0_38 = arith.constant 0 : index
    %99 = vector.load %arg9[%c0_37, %c0_38] : memref<4x16xbf16, #tpu.memory_space<vmem>>, vector<4x16xbf16>
    %cst_39 = arith.constant dense<0.000000e+00> : vector<256x16xf32>
    %100 = tpu.matmul %98, %99, %cst_39 {dimension_numbers = #tpu.dot_dimension_numbers<[1], [0], [0], [1], [0, 0, 1, 1], [], []>} : vector<256x4xbf16>, vector<4x16xbf16>, vector<256x16xf32> -> vector<256x16xf32>
    %c0_40 = arith.constant 0 : index
    %c0_41 = arith.constant 0 : index
    %101 = vector.load %arg10[%c0_40, %c0_41] : memref<1x16xf32, #tpu.memory_space<vmem>>, vector<1x16xf32>
    %102 = vector.broadcast %101 : vector<1x16xf32> to vector<256x16xf32>
    %103 = arith.addf %100, %102 : vector<256x16xf32>
    %104 = vector.shape_cast %103 : vector<256x16xf32> to vector<1x16x16x16xf32>
    %c0_42 = arith.constant 0 : index
    %c0_43 = arith.constant 0 : index
    %c0_44 = arith.constant 0 : index
    %c0_45 = arith.constant 0 : index
    %105 = vector.load %arg3[%c0_42, %c0_43, %c0_44, %c0_45] : memref<1x16x16x16xf32, #tpu.memory_space<vmem>>, vector<1x16x16x16xf32>
    %106 = arith.addf %104, %105 : vector<1x16x16x16xf32>
    %cst_46 = arith.constant 0.000000e+00 : f32
    %107 = vector.broadcast %cst_46 : f32 to vector<1x16x16x16xf32>
    %108 = arith.maximumf %106, %107 : vector<1x16x16x16xf32>
    %c0_47 = arith.constant 0 : index
    %c0_48 = arith.constant 0 : index
    %c0_49 = arith.constant 0 : index
    %c0_50 = arith.constant 0 : index
    %109 = vector.load %arg11[%c0_47, %c0_48, %c0_49, %c0_50] : memref<1x16x16x16xf32, #tpu.memory_space<vmem>>, vector<1x16x16x16xf32>
    tpu.vector_store %arg11[%c0_47, %c0_48, %c0_49, %c0_50], %108 {strides = array<i32>} : memref<1x16x16x16xf32, #tpu.memory_space<vmem>>, vector<1x16x16x16xf32>,
    return
  }
  func.func @transform_0(%arg0: i32, %arg1: i32) -> (i32, i32, i32, i32) {
    %c0_i32 = arith.constant 0 : i32
    %0 = arith.cmpi eq, %arg1, %c0_i32 : i32
    %c16_i32 = arith.constant 16 : i32
    %1 = arith.muli %arg1, %c16_i32 : i32
    %c1_i32 = arith.constant 1 : i32
    %2 = arith.subi %1, %c1_i32 : i32
    %c1_i32_0 = arith.constant 1 : i32
    %3 = arith.select %0, %c1_i32_0, %2 : i32
    %c0_i32_1 = arith.constant 0 : i32
    %c0_i32_2 = arith.constant 0 : i32
    %c0_i32_3 = arith.constant 0 : i32
    return %arg0, %3, %c0_i32_1, %c0_i32_2 : i32, i32, i32, i32
  }
  func.func @transform_1(%arg0: i32, %arg1: i32) -> (i32, i32, i32, i32) {
    %c0_i32 = arith.constant 0 : i32
    %c0_i32_0 = arith.constant 0 : i32
    %c0_i32_1 = arith.constant 0 : i32
    return %arg0, %arg1, %c0_i32, %c0_i32_0 : i32, i32, i32, i32
  }
  func.func @transform_2(%arg0: i32, %arg1: i32) -> (i32, i32, i32, i32) {
    %c0_i32 = arith.constant 0 : i32
    %0 = arith.cmpi eq, %arg1, %c0_i32 : i32
    %c1_i32 = arith.constant 1 : i32
    %1 = arith.addi %arg1, %c1_i32 : i32
    %c16_i32 = arith.constant 16 : i32
    %2 = arith.muli %1, %c16_i32 : i32
    %c14_i32 = arith.constant 14 : i32
    %3 = arith.select %0, %c14_i32, %2 : i32
    %c0_i32_0 = arith.constant 0 : i32
    %c0_i32_1 = arith.constant 0 : i32
    %c0_i32_2 = arith.constant 0 : i32
    return %arg0, %3, %c0_i32_0, %c0_i32_1 : i32, i32, i32, i32
  }
  func.func @transform_3(%arg0: i32, %arg1: i32) -> (i32, i32) {
    %c0_i32 = arith.constant 0 : i32
    %c0_i32_0 = arith.constant 0 : i32
    %c0_i32_1 = arith.constant 0 : i32
    return %c0_i32, %c0_i32_0 : i32, i32
  }
  func.func @transform_4(%arg0: i32, %arg1: i32) -> (i32, i32) {
    %c0_i32 = arith.constant 0 : i32
    %c0_i32_0 = arith.constant 0 : i32
    %c0_i32_1 = arith.constant 0 : i32
    return %c0_i32, %c0_i32_0 : i32, i32
  }
  func.func @transform_5(%arg0: i32, %arg1: i32) -> (i32, i32, i32) {
    %c0_i32 = arith.constant 0 : i32
    %c0_i32_0 = arith.constant 0 : i32
    %c0_i32_1 = arith.constant 0 : i32
    %c0_i32_2 = arith.constant 0 : i32
    return %c0_i32, %c0_i32_0, %c0_i32_1 : i32, i32, i32
  }
  func.func @transform_6(%arg0: i32, %arg1: i32) -> (i32, i32) {
    %c0_i32 = arith.constant 0 : i32
    %c0_i32_0 = arith.constant 0 : i32
    %c0_i32_1 = arith.constant 0 : i32
    return %c0_i32, %c0_i32_0 : i32, i32
  }
  func.func @transform_7(%arg0: i32, %arg1: i32) -> (i32, i32) {
    %c0_i32 = arith.constant 0 : i32
    %c0_i32_0 = arith.constant 0 : i32
    %c0_i32_1 = arith.constant 0 : i32
    return %c0_i32, %c0_i32_0 : i32, i32
  }
  func.func @transform_8(%arg0: i32, %arg1: i32) -> (i32, i32) {
    %c0_i32 = arith.constant 0 : i32
    %c0_i32_0 = arith.constant 0 : i32
    %c0_i32_1 = arith.constant 0 : i32
    return %c0_i32, %c0_i32_0 : i32, i32
  }
  func.func @transform_9(%arg0: i32, %arg1: i32) -> (i32, i32, i32, i32) {
    %c0_i32 = arith.constant 0 : i32
    %c0_i32_0 = arith.constant 0 : i32
    %c0_i32_1 = arith.constant 0 : i32
    return %arg0, %arg1, %c0_i32, %c0_i32_0 : i32, i32, i32, i32
  }
}

</mosaic_0001>

<bundles_post_ra>
// kernel: tpu_custom_call.1
= control target key start
LH: loop header
LB: loop body
LE: loop exit
PB: predicated region body
PF: predicated region fallthrough
CT: control target
= control target key end

     0   :  { %s5458_s0 = inlined_call_operand.hbm [shape: f32[2,16,16,16], index: 0, kind: input, shape index: {}]   ;;  %s5459_s1 = inlined_call_operand.hbm [shape: f32[2,16,16,16], index: 1, kind: input, shape index: {}]   ;;  %s5460_s2 = inlined_call_operand.hbm [shape: f32[2,16,16,16], index: 2, kind: input, shape index: {}]   ;;  %s5461_s3 = inlined_call_operand.vmem [shape: bf16[16,4], index: 3, kind: input, shape index: {}]   ;;  %s5462_s4 = inlined_call_operand.vmem [shape: f32[1,4], index: 4, kind: input, shape index: {}]   ;;  %s5463_s5 = inlined_call_operand.vmem [shape: f32[3,3,4], index: 5, kind: input, shape index: {}]   ;;  %s5464_s6 = inlined_call_operand.vmem [shape: f32[1,4], index: 6, kind: input, shape index: {}]   ;;  %s5465_s7 = inlined_call_operand.vmem [shape: bf16[4,16], index: 7, kind: input, shape index: {}]   ;;  %s5466_s8 = inlined_call_operand.vmem [shape: f32[1,16], index: 8, kind: input, shape index: {}]   ;;  %s5467_s9 = inlined_call_operand.hbm [shape: f32[2,16,16,16], index: 9, kind: output, shape index: {}]  }
   0x1   :  { %5478 = sst [smem:[#allocation21_spill]] %s5459_s1 }
   0x2   :  { %5479 = sst [smem:[#allocation22_spill]] %s5466_s8 }
   0x3   :  { %5480 = sst [smem:[#allocation23_spill]] %s5467_s9 }
   0x4   :  { %14 = vsyncpa [#allocation4], 0 }
   0x5   :  { %16 = vsyncpa [#allocation4 + $0x1], 0 }
   0x6   :  { %17 = vsyncpa [#allocation7], 0 }
   0x7   :  { %19 = vsyncpa [#allocation7 + $0x1], 0 }
   0x8   :  { %20 = vsyncpa [#allocation5], 0 }
   0x9   :  { %22 = vsyncpa [#allocation5 + $0x1], 0  ;;  %s3739_s30 = smov 0   ;;  %s3741_s10 = smov 0  }
   0xa   :  { %s3743_s11 = smov 0   ;;  %s3745_s12 = smov 0  }
   0xb   :  { %s3747_s13 = smov 0   ;;  %s3749_s14 = smov 0  }
   0xc LB: > { %5481 = sst [smem:[#allocation13_spill]] %s3659_s30  ;;  %s3770_s15 = sadd.s32 4294967295, %s3679_s14   ;;  %s3679_s14 = sphi %s3749_s14, %s28_s14   ;;  %s3675_s13 = sphi %s3747_s13, %s5507_s13   ;;  %s3671_s12 = sphi %s3745_s12, %s5506_s12   ;;  %s3667_s11 = sphi %s3743_s11, %s5505_s11   ;;  %s3663_s10 = sphi %s3741_s10, %s5509_s10   ;;  %s3659_s30 = sphi %s3739_s30, %s5508_s30  }
   0xd   : > { %5482 = sst [smem:[#allocation14_spill]] %s3667_s11  ;;  %s3254_s16 = sadd.s32 4294967294, %s3679_s14  }
   0xe   : > { %5483 = sst [smem:[#allocation15_spill]] %s3671_s12  ;;  %s40_s17 = sadd.s32 1, %s3675_s13 }
   0xf   : > { %5484 = sst [smem:[#allocation16_spill]] %s3675_s13  ;;  %s57_s18 = sadd.s32 1, %s3667_s11 }
  0x10   : > { %p42_p0 = scmp.ge.s32.totalorder %s40_s17, 2  ;;  %p64_p1 = scmp.ne.s32.totalorder %s3667_s11, %s3663_s10 }
  0x11   : > { %p65_p2 = scmp.eq.s32.totalorder %s3679_s14, 0  ;;  %p70_p3 = scmp.ne.s32.totalorder %s3663_s10, %s3659_s30 }
  0x12   : > { %s5511_s17 = smov (%p42_p0, %s40_s17), 0  ;;  %p71_p5 = scmp.eq.s32.totalorder %s3770_s15, 0 }
  0x13   : > { %5485 = sst [smem:[#allocation17_spill]] %s5511_s17  ;;  %p3782_p4 = por %p65_p2, %p64_p1 }
  0x14   : > { %s52_s20 = ssub.s32 %s3675_s13, %s5511_s17  ;;  %p286_p6 = scmp.eq.s32.totalorder %s3770_s15, 1 }
  0x15   : > { %p55_p7 = scmp.eq.s32.totalorder %s52_s20, 0  ;;  %p3790_p8 = por %p71_p5, %p70_p3 }
  0x16   : > { %p3794_p9 = por %p286_p6, %p64_p1  ;;  %p292_p10 = scmp.eq.s32.totalorder %s3254_s16, 1 }
  0x17   : > { %s3799_s23 = scalar_select %p55_p7, %s3667_s11, %s57_s18  }
  0x18   : > { %s5488_s22 = scalar_select %p3794_p9, 1, 0 }
  0x19   : > { %5490 = sst [smem:[#allocation19_spill]] %s3799_s23  ;;  %p3801_p11 = por %p292_p10, %p70_p3 }
  0x1a   : > { %5489 = sst [smem:[#allocation18_spill]] %s5488_s22  ;;  %p3453_p13 = scmp.lt.s32.totalorder %s3679_s14, 2 }
  0x1b   : > { %s5491_s24 = scalar_select %p3801_p11, 1, 0 }
  0x1c   : > { %s3808_s25 = sand.u32 1, %s3667_s11   ;;  %s3811_s26 = sshll.u32 %s3675_s13, 12 }
  0x1d   : > { %5492 = sst [smem:[#allocation20_spill]] %s5491_s24  ;;  %p3815_p0 = pnand %p3453_p13, %p3782_p4 }
  0x1e   : > { %s357_s28 = sand.u32 1, %s3679_s14   ;;  %s3260_s29 = sshll.u32 %s3808_s25, 8 }
  0x1f   : > { %s5494_s1 = sld [smem:[#allocation21_spill]]  ;;  %s361_s17 = scalar_lea.vmem [#allocation6], %s3260_s29 }
  0x20   : > { %s371_s23 = sshll.u32 %s361_s17, 4  ;;  %p3266_p1 = scmp.ge.s32.totalorder %s3679_s14, 1  ;;  %s372_s23 = int_to_ptr.vmem [resolvable:$true] %s371_s23 }
  0x21   : > { %p406_p2 = scmp.lt.s32.totalorder %s3679_s14, 3  ;;  %s3827_s13 = scalar_lea.sflag [#allocation7], %s357_s28 }
  0x22   : > { %p3513_p3 = pneg %p3815_p0  ;;  %s3524_s19 = scalar_lea.vmem %s372_s23, 4096 }
  0x23   : > { %p3525_p4 = scmp.ne.s32.totalorder %s372_s23, %s3524_s19  ;;  %s3681_s11 = smov [#allocation6]  }
  0x24   : > { %s3529_s24 = sshll.u32 %s3681_s11, 4  ;;  %s3530_s24 = int_to_ptr.vmem [resolvable:$false] %s3529_s24 }
  0x25   : > { %s370_s20 = scalar_lea.hbm %s5494_s1, %s3811_s26  ;;  %p3527_p5 = pnand %p3525_p4, %p3513_p3 }
  0x26   : > { %s3531_s16 = scalar_lea.vmem %s3530_s24, 8192  ;;  %p3532_p7 = scmp.lt.s32.totalorder %s372_s23, %s3530_s24 }
  0x27   : > { %p3528_p6 = pneg %p3527_p5  ;;  %p3533_p10 = scmp.lt.s32.totalorder %s3531_s16, %s3524_s19 }
  0x29   : > { %p3534_p13 = por %p3533_p10, %p3532_p7 }
  0x2b   : > { %p3535_p12 = pnand %p3534_p13, %p3528_p6 }
  0x2d   : > { %3538 = shalt.err (!%p3535_p12)
}
  0x2e   : > { %s5476_s17 = smov 128   ;;  %s3683_s28 = smov 8  }
  0x2f   : > { %3445 = dma.hbm_to_vmem [thread:$0]  (!%p3815_p0), %s370_s20, 4096, %s372_s23, %s3827_s13, %s5476_s17, %s5476_s17, %s3683_s28  }
  0x30   : > { %p3844_p4 = pnand %p3266_p1, %p406_p2  ;;  %s3257_s24 = sshll.u32 %s3808_s25, 4 }
  0x31   : > { %s3315_s29 = sadd.s32 256, %s3811_s26  ;;  %s334_s1 = scalar_lea.vmem [#allocation3], %s3257_s24 }
  0x32   : > { %s346_s16 = scalar_lea.hbm %s5458_s0, %s3315_s29  ;;  %s347_s30 = sshll.u32 %s334_s1, 4  ;;  %s348_s30 = int_to_ptr.vmem [resolvable:$true] %s347_s30 }
  0x33   : > { %s385_s9 = scalar_lea.vmem [#allocation8], %s3257_s24  ;;  %s331_s12 = scalar_lea.sflag [#allocation4], %s3808_s25 }
  0x34   : > { %s398_s22 = sshll.u32 %s385_s9, 4  ;;  %s3552_s8 = scalar_lea.vmem %s348_s30, 256  ;;  %s399_s22 = int_to_ptr.vmem [resolvable:$true] %s398_s22 }
  0x35   : > { %p3553_p12 = scmp.ne.s32.totalorder %s348_s30, %s3552_s8  ;;  %s3684_s23 = smov [#allocation3]  }
  0x36   : > { %s3557_s20 = sshll.u32 %s3684_s23, 4  ;;  %s3558_s20 = int_to_ptr.vmem [resolvable:$false] %s3557_s20 }
  0x37   : > { %p3555_p1 = pnand %p3553_p12, %p3513_p3  ;;  %s3559_s17 = scalar_lea.vmem %s3558_s20, 512 }
  0x38   : > { %p3560_p5 = scmp.lt.s32.totalorder %s348_s30, %s3558_s20  ;;  %p3561_p6 = scmp.lt.s32.totalorder %s3559_s17, %s3552_s8 }
  0x39   : > { %p3556_p2 = pneg %p3555_p1 }
  0x3a   : > { %p3562_p7 = por %p3561_p6, %p3560_p5 }
  0x3c   : > { %p3563_p10 = pnand %p3562_p7, %p3556_p2 }
  0x3e   : > { %3566 = shalt.err (!%p3563_p10)
}
  0x3f   : > { %s5496_s1 = smov 128   ;;  %s3318_s9 = sadd.s32 3584, %s3811_s26 }
  0x40   : > { %3442 = dma.hbm_to_vmem [thread:$0]  (!%p3815_p0), %s346_s16, 256, %s348_s30, %s331_s12, %s5496_s1, %s5496_s1, %s3683_s28  }
  0x41   : > { %s397_s29 = scalar_lea.hbm %s5460_s2, %s3318_s9  ;;  %s3580_s18 = scalar_lea.vmem %s399_s22, 256 }
  0x42   : > { %p3581_p13 = scmp.ne.s32.totalorder %s399_s22, %s3580_s18  ;;  %s3685_s8 = smov [#allocation8]  }
  0x43   : > { %s3585_s17 = sshll.u32 %s3685_s8, 4  ;;  %s3586_s17 = int_to_ptr.vmem [resolvable:$false] %s3585_s17 }
  0x44   : > { %p3583_p12 = pnand %p3581_p13, %p3513_p3  ;;  %s3587_s19 = scalar_lea.vmem %s3586_s17, 512 }
  0x45   : > { %p3588_p2 = scmp.lt.s32.totalorder %s399_s22, %s3586_s17  ;;  %p3589_p5 = scmp.lt.s32.totalorder %s3587_s19, %s3580_s18 }
  0x46   : > { %p3584_p1 = pneg %p3583_p12 }
  0x47   : > { %p3590_p6 = por %p3589_p5, %p3588_p2 }
  0x49   : > { %p3591_p7 = pnand %p3590_p6, %p3584_p1 }
  0x4b   : > { %3594 = shalt.err (!%p3591_p7)
}
  0x4c   : > { %3448 = dma.hbm_to_vmem [thread:$0]  (!%p3815_p0), %s397_s29, 256, %s399_s22, %s3827_s13, %s5496_s1, %s5496_s1, %s3683_s28  }
  0x4d   : > { %410 = sbr.rel (%p3844_p4) target bundleno = 843 (0x34b), region = 56  ;;  %s3878_s30 = sand.u32 (!%p3844_p4), 1, %s3663_s10  }
  0x4e   : > { %s3267_s12 = sshll.u32 (!%p3844_p4), %s3878_s30, 4  ;;  %s413_s26 = scalar_lea.sflag (!%p3844_p4), [#allocation4], %s3878_s30 }
  0x4f   : > { %s416_s16 = scalar_lea.vmem (!%p3844_p4), [#allocation3], %s3267_s12 }
  0x52   : > { %3646 = dma.done.wait (%p3790_p8), %s413_s26, 256  }
  0x53   : > { %3648 = vsyncadd (%p3790_p8), %s413_s26, 4294967040  ;;  %s421_s13 = sand.u32 1, %s3770_s15   ;;  %s3268_s22 = sshll.u32 %s3878_s30, 8 }
  0x54   : > { %s422_s27 = scalar_lea.sflag [#allocation7], %s421_s13  ;;  %s3892_s28 = scalar_lea.vmem [#allocation6], %s3268_s22 }
  0x55   : > { %3650 = dma.done.wait (%p3790_p8), %s422_s27, 4352  }
  0x56   : > { %3652 = vsyncadd (%p3790_p8), %s422_s27, 4294962944  ;;  %v3507_v0 = vld [vmem:[%s5461_s3] sm:$0xff]   ;;  %v491_v2 = vld [vmem:[%s416_s16 + $0x8] sm:$0xff]  ;;  %vm559_vm0 = vcmask 130048   ;;  %s434_s15 = scalar_lea.vmem [#allocation8], %s3267_s12  ;;  %vm2807_vm1 = vcmask 1041408   ;;  %v994_v60 = vlaneseq }
  0x57   : > { %v490_v1 = vld [vmem:[%s416_s16] sm:$0xff]  ;;  %3358 = vmatprep.subr.bf16.mxu0 %v3507_v0  ;;  %v493_v5 = vld [vmem:[%s3892_s28 + $0x8] sm:$0xff]  ;;  %v495_v7 = vld [vmem:[%s3892_s28 + $0x18] sm:$0xff]  ;;  %vm827_vm2 = vcmask 31744   ;;  %vm882_vm3 = vcmask 24576   ;;  %vm1162_vm4 = vcmask 1046528  }
  0x58   : > { %v492_v3 = vld [vmem:[%s3892_s28] sm:$0xff]  ;;  %v526_v4 = vpack.c.bf16 %v491_v2, %v490_v1  ;;  %v494_v6 = vld [vmem:[%s3892_s28 + $0x10] sm:$0xff]  ;;  %3359 = vmatpush3.bf16.msra.mxu0 %v3507_v0  ;;  %v497_v11 = vld [vmem:[%s3892_s28 + $0x28] sm:$0xff]  ;;  %vm1407_vm5 = vcmask 1045504   ;;  %s5497_s20 = sld [smem:[#allocation22_spill]]  ;;  %s5284_s1 = scalar_lea.vmem [#allocation9], %s3268_s22 }
  0x59   : > { %v527_v8 = vpack.c.bf16 %v493_v5, %v492_v3  ;;  %v528_v9 = vpack.c.bf16 %v495_v7, %v494_v6  ;;  %v496_v10 = vld [vmem:[%s3892_s28 + $0x20] sm:$0xff]  ;;  %v498_v12 = vld [vmem:[%s3892_s28 + $0x30] sm:$0xff]  ;;  %v499_v13 = vld [vmem:[%s3892_s28 + $0x38] sm:$0xff]  ;;  %v995_v3 = vshrl.u32 %v994_v60, 7  ;;  %s5498_s22 = sld [smem:[#allocation15_spill]]  ;;  %s3117_s24 = sshll.u32 %s5284_s1, 4  ;;  %s5406_s24 = int_to_ptr.vmem [resolvable:$true] %s3117_s24 }
  0x5a   : > { %3360 = vmatprep.mubr.msk.bf16.mxu0 %vm559_vm0, %v526_v4  ;;  %v529_v14 = vpack.c.bf16 %v497_v11, %v496_v10  ;;  %v530_v15 = vpack.c.bf16 %v499_v13, %v498_v12  ;;  %v500_v16 = vld [vmem:[%s3892_s28 + $0x40] sm:$0xff]  ;;  %v501_v17 = vld [vmem:[%s3892_s28 + $0x48] sm:$0xff]  ;;  %v502_v18 = vld [vmem:[%s3892_s28 + $0x50] sm:$0xff]  ;;  %s5500_s8 = sld [smem:[#allocation23_spill]]  ;;  %s3595_s19 = scalar_lea.vmem %s5406_s24, 4096 }
  0x5b   : > { %3361 = vmatmul.mubr.msk.bf16.vlgmr.msra.gmra.mxu0 %vm559_vm0, %v527_v8  ;;  %v503_v19 = vld [vmem:[%s3892_s28 + $0x58] sm:$0xff]  ;;  %v531_v20 = vpack.c.bf16 %v501_v17, %v500_v16  ;;  %v504_v22 = vld [vmem:[%s3892_s28 + $0x60] sm:$0xff]  ;;  %v505_v23 = vld [vmem:[%s3892_s28 + $0x68] sm:$0xff]  ;;  %v996_v10 = vsub.s32 0, %v995_v3  ;;  %v1064_v11 = vsub.s32 1, %v995_v3  ;;  %p3596_p8 = scmp.ne.s32.totalorder %s5406_s24, %s3595_s19  ;;  %s3686_s12 = smov [#allocation9]  }
  0x5c   : > { %3364 = vmatprep.mubr.msk.bf16.mxu0 %vm559_vm0, %v528_v9  ;;  %v532_v21 = vpack.c.bf16 %v503_v19, %v502_v18  ;;  %v506_v24 = vld [vmem:[%s3892_s28 + $0x70] sm:$0xff]  ;;  %v507_v25 = vld [vmem:[%s3892_s28 + $0x78] sm:$0xff]  ;;  %v533_v26 = vpack.c.bf16 %v505_v23, %v504_v22  ;;  %v508_v28 = vld [vmem:[%s3892_s28 + $0x80] sm:$0xff]  ;;  %s3599_s26 = sshll.u32 %s3686_s12, 4  ;;  %s3600_s26 = int_to_ptr.vmem [resolvable:$false] %s3599_s26 }
  0x5d   : > { %v534_v27 = vpack.c.bf16 %v507_v25, %v506_v24  ;;  %v509_v29 = vld [vmem:[%s3892_s28 + $0x88] sm:$0xff]  ;;  %v510_v30 = vld [vmem:[%s3892_s28 + $0x90] sm:$0xff]  ;;  %v511_v31 = vld [vmem:[%s3892_s28 + $0x98] sm:$0xff]  ;;  %p3597_p0 = pnand %p3596_p8, %p3794_p9  ;;  %s3601_s16 = scalar_lea.vmem %s3600_s26, 8192 }
  0x5e   : > { %v535_v32 = vpack.c.bf16 %v509_v29, %v508_v28  ;;  %v536_v33 = vpack.c.bf16 %v511_v31, %v510_v30  ;;  %v512_v34 = vld [vmem:[%s3892_s28 + $0xa0] sm:$0xff]  ;;  %v513_v35 = vld [vmem:[%s3892_s28 + $0xa8] sm:$0xff]  ;;  %v514_v36 = vld [vmem:[%s3892_s28 + $0xb0] sm:$0xff]  ;;  %p3602_p4 = scmp.lt.s32.totalorder %s5406_s24, %s3600_s26  ;;  %p3603_p10 = scmp.lt.s32.totalorder %s3601_s16, %s3595_s19 }
  0x5f   : > { %v515_v37 = vld [vmem:[%s3892_s28 + $0xb8] sm:$0xff]  ;;  %v537_v38 = vpack.c.bf16 %v513_v35, %v512_v34  ;;  %v516_v40 = vld [vmem:[%s3892_s28 + $0xc0] sm:$0xff]  ;;  %v517_v41 = vld [vmem:[%s3892_s28 + $0xc8] sm:$0xff]  ;;  %s3319_s25 = sshll.u32 %s5498_s22, 12  ;;  %p3598_p3 = pneg %p3597_p0 }
  0x60   : > { %v538_v39 = vpack.c.bf16 %v515_v37, %v514_v36  ;;  %v518_v42 = vld [vmem:[%s3892_s28 + $0xd0] sm:$0xff]  ;;  %v519_v43 = vld [vmem:[%s3892_s28 + $0xd8] sm:$0xff]  ;;  %v539_v44 = vpack.c.bf16 %v517_v41, %v516_v40  ;;  %v520_v46 = vld [vmem:[%s3892_s28 + $0xe0] sm:$0xff]  ;;  %s5404_s17 = scalar_lea.hbm %s5500_s8, %s3319_s25  ;;  %p3604_p13 = por %p3603_p10, %p3602_p4 }
  0x61   : > { %v540_v45 = vpack.c.bf16 %v519_v43, %v518_v42  ;;  %v521_v47 = vld [vmem:[%s3892_s28 + $0xe8] sm:$0xff]  ;;  %v522_v48 = vld [vmem:[%s3892_s28 + $0xf0] sm:$0xff]  ;;  %v523_v49 = vld [vmem:[%s3892_s28 + $0xf8] sm:$0xff] }
  0x62   : > { %v541_v50 = vpack.c.bf16 %v521_v47, %v520_v46  ;;  %v542_v51 = vpack.c.bf16 %v523_v49, %v522_v48  ;;  %v524_v52 = vld [vmem:[%s434_s15] sm:$0xff]  ;;  %v525_v53 = vld [vmem:[%s434_s15 + $0x8] sm:$0xff]  ;;  %p3605_p12 = pnand %p3604_p13, %p3598_p3 }
  0x63   : > { %3365 = vmatmul.mubr.msk.bf16.gmra.mxu0 %vm559_vm0, %v529_v14  ;;  %v543_v54 = vpack.c.bf16 %v525_v53, %v524_v52  ;;  %v2751_v55 = vld [vmem:[%s5465_s7] sm:$0x3]  ;;  %v992_v13 = vld [vmem:[%s5463_s5 + $0x4] sm:$0x7]  ;;  %v1309_v14 = vsub.s32 2, %v995_v3 }
  0x64   : > { %3368 = vmatprep.mubr.msk.bf16.mxu0 %vm559_vm0, %v530_v15  ;;  %3430 = vmatprep.subr.msk.bf16.mxu1 %vm2807_vm1, %v2751_v55  ;;  %v2809_v56 = vsel %vm2807_vm1, %v2751_v55, 0  ;;  %v3959_v57 = vld [vmem:[%s5462_s4] ss:$0 sm:$0xff]  ;;  %v993_v22 = vld [vmem:[%s5463_s5 + $0x8] sm:$0x7]  ;;  %v3983_v23 = vrot.slane %v992_v13, %v996_v10  ;;  %v3985_v24 = vrot.slane %v992_v13, %v1064_v11 }
  0x65   : > { %3397 = vmatpush3.bf16.msra.mxu1 %v2809_v56  ;;  %v991_v17 = vld [vmem:[%s5463_s5] sm:$0x7]  ;;  %v3993_v30 = vrot.slane %v992_v13, %v1309_v14  ;;  %v3998_v36 = vrot.slane %v993_v22, %v996_v10  ;;  %v4000_v37 = vrot.slane %v993_v22, %v1064_v11 }
  0x66   : > { %v3989_v28 = vrot.slane %v991_v17, %v1064_v11  ;;  %v3991_v29 = vrot.slane %v991_v17, %v1309_v14 }
  0x6b   : > { %3369 = vmatmul.mubr.msk.bf16.gmra.mxu0 %vm559_vm0, %v531_v20 }
  0x6c   : > { %3372 = vmatprep.mubr.msk.bf16.mxu0 %vm559_vm0, %v532_v21 }
  0x73   : > { %3373 = vmatmul.mubr.msk.bf16.gmra.mxu0 %vm559_vm0, %v533_v26 }
  0x74   : > { %3376 = vmatprep.mubr.msk.bf16.mxu0 %vm559_vm0, %v534_v27  ;;  %v3987_v27 = vrot.slane %v991_v17, %v996_v10 }
  0x7b   : > { %3377 = vmatmul.mubr.msk.bf16.gmra.mxu0 %vm559_vm0, %v535_v32 }
  0x7c   : > { %3380 = vmatprep.mubr.msk.bf16.mxu0 %vm559_vm0, %v536_v33 }
  0x83   : > { %3381 = vmatmul.mubr.msk.bf16.gmra.mxu0 %vm559_vm0, %v537_v38  ;;  %v4002_v38 = vrot.slane %v993_v22, %v1309_v14 }
  0x84   : > { %3384 = vmatprep.mubr.msk.bf16.mxu0 %vm559_vm0, %v538_v39 }
  0x8b   : > { %3385 = vmatmul.mubr.msk.bf16.gmra.mxu0 %vm559_vm0, %v539_v44 }
  0x8c   : > { %3388 = vmatprep.mubr.msk.bf16.mxu0 %vm559_vm0, %v540_v45 }
  0x93   : > { %3389 = vmatmul.mubr.msk.bf16.gmra.mxu0 %vm559_vm0, %v541_v50 }
  0x94   : > { %3392 = vmatprep.mubr.msk.bf16.mxu0 %vm559_vm0, %v542_v51 }
  0x9b   : > { %3393 = vmatmul.mubr.msk.bf16.gmra.mxu0 %vm559_vm0, %v543_v54 }
 0x11b   : > { %v3362_v58 = vpop.f32.mrf.mxu0 }
 0x11c   : > { %v657_v59 = vadd.f32 %v3362_v58, %v3959_v57 }
 0x11d   : > { %v648_v61 = vpop.f32.mrf.mxu0 }
 0x11e   : > { %v793_v62 = vmax.f32 %v657_v59, 0.0  ;;  %v649_v63 = vadd.f32 %v3959_v57, %v648_v61 }
 0x11f   : > { %v3363_v0 = vpop.f32.mrf.mxu0 }
 0x120   : > { %830 = vst.msk [vmem:[#allocation2 + $0x19] sm:$0xff] %vm827_vm2, %v793_v62  ;;  %v791_v1 = vmax.f32 %v649_v63, 0.0  ;;  %v660_v2 = vadd.f32 %v3363_v0, %v3959_v57 }
 0x121   : > { %v651_v4 = vpop.f32.mrf.mxu0 }
 0x122   : > { %828 = vst.msk [vmem:[#allocation2 + $0x1] sm:$0xff] %vm827_vm2, %v791_v1  ;;  %v794_v5 = vmax.f32 %v660_v2, 0.0  ;;  %v652_v6 = vadd.f32 %v3959_v57, %v651_v4 }
 0x123   : > { %v3366_v7 = vpop.f32.mrf.mxu0 }
 0x124   : > { %831 = vst.msk [vmem:[#allocation2 + $0x21] sm:$0xff] %vm827_vm2, %v794_v5  ;;  %v792_v8 = vmax.f32 %v652_v6, 0.0  ;;  %v673_v9 = vadd.f32 %v3366_v7, %v3959_v57 }
 0x125   : > { %v664_v12 = vpop.f32.mrf.mxu0 }
 0x126   : > { %829 = vst.msk [vmem:[#allocation2 + $0x9] sm:$0xff] %vm827_vm2, %v792_v8  ;;  %v797_v15 = vmax.f32 %v673_v9, 0.0  ;;  %v665_v16 = vadd.f32 %v3959_v57, %v664_v12 }
 0x127   : > { %v865_v18 = vld [vmem:[#allocation2 + $0x1a] sm:$0x1]  ;;  %v3367_v19 = vpop.f32.mrf.mxu0 }
 0x128   : > { %884 = vst.msk [vmem:[#allocation2 + $0x18] sm:$0x1] %vm882_vm3, %v865_v18  ;;  %v795_v20 = vmax.f32 %v665_v16, 0.0  ;;  %v676_v21 = vadd.f32 %v3367_v19, %v3959_v57 }
 0x129   : > { %834 = vst.msk [vmem:[#allocation2 + $0x49] sm:$0xff] %vm827_vm2, %v797_v15  ;;  %v864_v25 = vld [vmem:[#allocation2 + $0x2] sm:$0x1]  ;;  %v667_v26 = vpop.f32.mrf.mxu0 }
 0x12a   : > { %883 = vst.msk [vmem:[#allocation2] sm:$0x1] %vm882_vm3, %v864_v25  ;;  %v798_v31 = vmax.f32 %v676_v21, 0.0  ;;  %v668_v32 = vadd.f32 %v3959_v57, %v667_v26 }
 0x12b   : > { %832 = vst.msk [vmem:[#allocation2 + $0x31] sm:$0xff] %vm827_vm2, %v795_v20  ;;  %v902_v33 = vld [vmem:[#allocation2 + $0x27] sm:$0x1]  ;;  %v3370_v34 = vpop.f32.mrf.mxu0 }
 0x12c   : > { %v941_v35 = vld [vmem:[#allocation2 + $0x20] sm:$0xff]  ;;  %920 = vst.msk [vmem:[#allocation2 + $0x29] sm:$0x1] %vm882_vm3, %v902_v33  ;;  %v796_v39 = vmax.f32 %v668_v32, 0.0  ;;  %v689_v40 = vadd.f32 %v3370_v34, %v3959_v57 }
 0x12d   : > { %835 = vst.msk [vmem:[#allocation2 + $0x51] sm:$0xff] %vm827_vm2, %v798_v31  ;;  %v4008_v41 = vmul.f32 %v3983_v23, %v941_v35  ;;  %v4011_v42 = vmul.f32 %v3985_v24, %v941_v35  ;;  %v901_v43 = vld [vmem:[#allocation2 + $0xf] sm:$0x1]  ;;  %v680_v44 = vpop.f32.mrf.mxu0  ;;  %v4014_v46 = vmul.f32 %v3993_v30, %v941_v35  ;;  %v4017_v47 = vmul.f32 %v3987_v27, %v941_v35 }
 0x12e   : > { %v938_v45 = vld [vmem:[#allocation2 + $0x8] sm:$0xff]  ;;  %v4020_v48 = vmul.f32 %v3989_v28, %v941_v35  ;;  %v4023_v49 = vmul.f32 %v3991_v29, %v941_v35  ;;  %919 = vst.msk [vmem:[#allocation2 + $0x11] sm:$0x1] %vm882_vm3, %v901_v43  ;;  %v801_v50 = vmax.f32 %v689_v40, 0.0  ;;  %v681_v51 = vadd.f32 %v3959_v57, %v680_v44 }
 0x12f   : > { %833 = vst.msk [vmem:[#allocation2 + $0x39] sm:$0xff] %vm827_vm2, %v796_v39  ;;  %v4029_v52 = vmul.f32 %v3987_v27, %v938_v45  ;;  %v4032_v53 = vmul.f32 %v3989_v28, %v938_v45  ;;  %v3371_v55 = vpop.f32.mrf.mxu0  ;;  %v940_v56 = vld [vmem:[#allocation2 + $0x18] sm:$0xff]  ;;  %v4035_v58 = vmul.f32 %v3991_v29, %v938_v45  ;;  %v1721_v59 = vrot.slane %v4011_v42, 1 }
 0x130   : > { %v867_v54 = vld [vmem:[#allocation2 + $0x4a] sm:$0x1]  ;;  %v1965_v60 = vrot.slane %v4014_v46, 2  ;;  %v1169_v61 = vrot.slane %v4020_v48, 1  ;;  %838 = vst.msk [vmem:[#allocation2 + $0x79] sm:$0xff] %vm827_vm2, %v801_v50  ;;  %v799_v62 = vmax.f32 %v681_v51, 0.0  ;;  %v692_v63 = vadd.f32 %v3371_v55, %v3959_v57 }
 0x131   : > { %886 = vst.msk [vmem:[#allocation2 + $0x48] sm:$0x1] %vm882_vm3, %v867_v54  ;;  %v1164_v0 = vrot.slane %v4032_v53, 1  ;;  %v4045_v1 = vmul.f32 %v3983_v23, %v940_v56  ;;  %v683_v3 = vpop.f32.mrf.mxu0  ;;  %v937_v4 = vld [vmem:[#allocation2] sm:$0xff]  ;;  %v1409_v5 = vrot.slane %v4035_v58, 2  ;;  %v1624_v6 = vmul.f32 %v3985_v24, %v940_v56 }
 0x132   : > { %v866_v2 = vld [vmem:[#allocation2 + $0x32] sm:$0x1]  ;;  %v4050_v7 = vmul.f32 %v3993_v30, %v940_v56  ;;  %v4053_v8 = vmul.f32 %v3987_v27, %v940_v56  ;;  %836 = vst.msk [vmem:[#allocation2 + $0x61] sm:$0xff] %vm827_vm2, %v799_v62  ;;  %v802_v9 = vmax.f32 %v692_v63, 0.0  ;;  %v684_v10 = vadd.f32 %v3959_v57, %v683_v3 }
 0x133   : > { %885 = vst.msk [vmem:[#allocation2 + $0x30] sm:$0x1] %vm882_vm3, %v866_v2  ;;  %v998_v11 = vmul.f32 %v3987_v27, %v937_v4  ;;  %v1066_v12 = vmul.f32 %v3989_v28, %v937_v4  ;;  %v3374_v14 = vpop.f32.mrf.mxu0  ;;  %v942_v15 = vld [vmem:[#allocation2 + $0x28] sm:$0x3]  ;;  %v1311_v16 = vmul.f32 %v3991_v29, %v937_v4  ;;  %v1720_v17 = vrot.slane %v1624_v6, 1 }
 0x134   : > { %v904_v13 = vld [vmem:[#allocation2 + $0x57] sm:$0x1]  ;;  %v4062_v18 = vmul.f32 %v3989_v28, %v940_v56  ;;  %v4065_v19 = vmul.f32 %v3991_v29, %v940_v56  ;;  %839 = vst.msk [vmem:[#allocation2 + $0x81] sm:$0xff] %vm827_vm2, %v802_v9  ;;  %v800_v20 = vmax.f32 %v684_v10, 0.0  ;;  %v705_v21 = vadd.f32 %v3374_v14, %v3959_v57 }
 0x135   : > { %922 = vst.msk [vmem:[#allocation2 + $0x59] sm:$0x1] %vm882_vm3, %v904_v13  ;;  %v4071_v22 = vmul.f32 %v3989_v28, %v942_v15  ;;  %v1163_v25 = vrot.slane %v1066_v12, 1  ;;  %v696_v31 = vpop.f32.mrf.mxu0  ;;  %v939_v32 = vld [vmem:[#allocation2 + $0x10] sm:$0x3]  ;;  %v4074_v33 = vmul.f32 %v3991_v29, %v942_v15  ;;  %v1408_v34 = vrot.slane %v1311_v16, 2 }
 0x136   : > { %v903_v26 = vld [vmem:[#allocation2 + $0x3f] sm:$0x1]  ;;  %v1626_v35 = vmul.f32 %v3985_v24, %v942_v15  ;;  %v1722_v39 = vsel %vm1162_vm4, %v1720_v17, %v1721_v59  ;;  %837 = vst.msk [vmem:[#allocation2 + $0x69] sm:$0xff] %vm827_vm2, %v800_v20  ;;  %v805_v40 = vmax.f32 %v705_v21, 0.0  ;;  %v697_v43 = vadd.f32 %v3959_v57, %v696_v31 }
 0x137   : > { %921 = vst.msk [vmem:[#allocation2 + $0x41] sm:$0x1] %vm882_vm3, %v903_v26  ;;  %v1068_v44 = vmul.f32 %v3989_v28, %v939_v32  ;;  %v1165_v45 = vsel %vm1162_vm4, %v1163_v25, %v1164_v0  ;;  %v869_v50 = vld [vmem:[#allocation2 + $0x7a] sm:$0x1]  ;;  %v3375_v51 = vpop.f32.mrf.mxu0  ;;  %v1171_v54 = vrot.slane %v4071_v22, 1  ;;  %v1313_v56 = vmul.f32 %v3991_v29, %v939_v32 }
 0x138   : > { %v1275_v55 = vadd.f32 %v1165_v45, %v998_v11  ;;  %v1410_v62 = vsel %vm1407_vm5, %v1408_v34, %v1409_v5  ;;  %888 = vst.msk [vmem:[#allocation2 + $0x78] sm:$0x1] %vm882_vm3, %v869_v50  ;;  %v803_v63 = vmax.f32 %v697_v43, 0.0  ;;  %v708_v2 = vadd.f32 %v3375_v51, %v3959_v57  ;;  %v4102_v20 = vld [vmem:[#allocation2 + $0x38] sm:$0xff] }
 0x139   : > { %842 = vst.msk [vmem:[#allocation2 + $0xa9] sm:$0xff] %vm827_vm2, %v805_v40  ;;  %v1166_v3 = vrot.slane %v1068_v44, 1  ;;  %v1416_v4 = vrot.slane %v4074_v33, 2  ;;  %v868_v6 = vld [vmem:[#allocation2 + $0x62] sm:$0x1]  ;;  %v699_v9 = vpop.f32.mrf.mxu0  ;;  %v1411_v10 = vrot.slane %v1313_v56, 2  ;;  %v1870_v13 = vmul.f32 %v3993_v30, %v942_v15 }
 0x13a   : > { %v1520_v11 = vadd.f32 %v1410_v62, %v1275_v55  ;;  %v1723_v12 = vrot.slane %v1626_v35, 1  ;;  %887 = vst.msk [vmem:[#allocation2 + $0x60] sm:$0x1] %vm882_vm3, %v868_v6  ;;  %v806_v14 = vmax.f32 %v708_v2, 0.0  ;;  %v700_v16 = vadd.f32 %v3959_v57, %v699_v9  ;;  %v4100_v17 = vld [vmem:[#allocation2 + $0x30] sm:$0xff] }
 0x13b   : > { %840 = vst.msk [vmem:[#allocation2 + $0x91] sm:$0xff] %vm827_vm2, %v803_v63  ;;  %v1167_v21 = vsel %vm1162_vm4, %v1164_v0, %v1166_v3  ;;  %v1964_v25 = vrot.slane %v4050_v7, 2  ;;  %v906_v26 = vld [vmem:[#allocation2 + $0x87] sm:$0x1]  ;;  %v3378_v31 = vpop.f32.mrf.mxu0  ;;  %v1412_v32 = vsel %vm1407_vm5, %v1409_v5, %v1411_v10  ;;  %v1967_v58 = vrot.slane %v1870_v13, 2 }
 0x13c   : > { %v1276_v15 = vadd.f32 %v1167_v21, %v4029_v52  ;;  %v1588_v34 = vadd.f32 %v4045_v1, %v1520_v11  ;;  %v1724_v35 = vsel %vm1162_vm4, %v1721_v59, %v1723_v12  ;;  %924 = vst.msk [vmem:[#allocation2 + $0x89] sm:$0x1] %vm882_vm3, %v906_v26  ;;  %v804_v53 = vmax.f32 %v700_v16, 0.0 }
 0x13d   : > { %843 = vst.msk [vmem:[#allocation2 + $0xb1] sm:$0xff] %vm827_vm2, %v806_v14  ;;  %v721_v0 = vadd.f32 %v3378_v31, %v3959_v57  ;;  %v1966_v52 = vsel %vm1407_vm5, %v1964_v25, %v1965_v60  ;;  %v905_v7 = vld [vmem:[#allocation2 + $0x6f] sm:$0x1]  ;;  %v712_v5 = vpop.f32.mrf.mxu0  ;;  %v2112_v59 = vmul.f32 %v3998_v36, %v4100_v17  ;;  %v2113_v43 = vmul.f32 %v3998_v36, %v4102_v20 }
 0x13e   : > { %v4122_v40 = vld [vmem:[#allocation2 + $0x40] sm:$0x3]  ;;  %v1521_v1 = vadd.f32 %v1412_v32, %v1276_v15  ;;  %v1832_v42 = vadd.f32 %v1722_v39, %v1588_v34  ;;  %923 = vst.msk [vmem:[#allocation2 + $0x71] sm:$0x1] %vm882_vm3, %v905_v7  ;;  %v713_v45 = vadd.f32 %v3959_v57, %v712_v5  ;;  %v1968_v39 = vsel %vm1407_vm5, %v1965_v60, %v1967_v58 }
 0x13f   : > { %841 = vst.msk [vmem:[#allocation2 + $0x99] sm:$0xff] %vm827_vm2, %v804_v53  ;;  %v809_v44 = vmax.f32 %v721_v0, 0.0  ;;  %v4133_v50 = vmul.f32 %v3989_v28, %v4122_v40  ;;  %v3379_v55 = vpop.f32.mrf.mxu0  ;;  %v2180_v63 = vmul.f32 %v4000_v37, %v4100_v17  ;;  %v2181_v2 = vmul.f32 %v4000_v37, %v4102_v20 }
 0x140   : > { %v871_v51 = vld [vmem:[#allocation2 + $0xaa] sm:$0x1]  ;;  %v1589_v56 = vadd.f32 %v4008_v41, %v1521_v1  ;;  %v2076_v62 = vadd.f32 %v1966_v52, %v1832_v42  ;;  %v807_v3 = vmax.f32 %v713_v45, 0.0  ;;  %v724_v46 = vadd.f32 %v3379_v55, %v3959_v57 }
 0x141   : > { %890 = vst.msk [vmem:[#allocation2 + $0xa8] sm:$0x1] %vm882_vm3, %v871_v51  ;;  %v1176_v60 = vrot.slane %v4133_v50, 1  ;;  %v2182_v6 = vmul.f32 %v4000_v37, %v4122_v40  ;;  %v715_v9 = vpop.f32.mrf.mxu0  ;;  %v2276_v12 = vrot.slane %v2180_v63, 1  ;;  %v2277_v13 = vrot.slane %v2181_v2, 1 }
 0x142   : > { %846 = vst.msk [vmem:[#allocation2 + $0xd9] sm:$0xff] %vm827_vm2, %v809_v44  ;;  %v870_v41 = vld [vmem:[#allocation2 + $0x92] sm:$0x1]  ;;  %v1833_v10 = vadd.f32 %v1724_v35, %v1589_v56  ;;  %v2144_v11 = vadd.f32 %v2112_v59, %v2076_v62  ;;  %844 = vst.msk [vmem:[#allocation2 + $0xc1] sm:$0xff] %vm827_vm2, %v807_v3  ;;  %v810_v14 = vmax.f32 %v724_v46, 0.0  ;;  %v716_v16 = vadd.f32 %v3959_v57, %v715_v9 }
 0x143   : > { %889 = vst.msk [vmem:[#allocation2 + $0x90] sm:$0x1] %vm882_vm3, %v870_v41  ;;  %v2279_v21 = vrot.slane %v2182_v6, 1  ;;  %v2424_v25 = vmul.f32 %v4002_v38, %v4100_v17  ;;  %v3382_v31 = vpop.f32.mrf.mxu0  ;;  %v2278_v32 = vsel %vm1162_vm4, %v2276_v12, %v2277_v13  ;;  %v2425_v34 = vmul.f32 %v4002_v38, %v4102_v20  ;;  %v4177_v3 = vld [vmem:[%s5464_s6] ss:$0 sm:$0xff] }
 0x144   : > { %v908_v26 = vld [vmem:[#allocation2 + $0xb7] sm:$0x1]  ;;  %v2077_v15 = vadd.f32 %v1968_v39, %v1833_v10  ;;  %v2426_v35 = vmul.f32 %v4002_v38, %v4122_v40  ;;  %847 = vst.msk [vmem:[#allocation2 + $0xe1] sm:$0xff] %vm827_vm2, %v810_v14  ;;  %v808_v53 = vmax.f32 %v716_v16, 0.0  ;;  %v737_v0 = vadd.f32 %v3382_v31, %v3959_v57 }
 0x145   : > { %926 = vst.msk [vmem:[#allocation2 + $0xb9] sm:$0x1] %vm882_vm3, %v908_v26  ;;  %v2280_v52 = vsel %vm1162_vm4, %v2277_v13, %v2279_v21  ;;  %v2388_v58 = vadd.f32 %v2278_v32, %v2144_v11  ;;  %v728_v5 = vpop.f32.mrf.mxu0  ;;  %v2520_v42 = vrot.slane %v2424_v25, 2  ;;  %v2521_v59 = vrot.slane %v2425_v34, 2 }
 0x146   : > { %v907_v7 = vld [vmem:[#allocation2 + $0x9f] sm:$0x1]  ;;  %v2145_v1 = vadd.f32 %v2113_v43, %v2077_v15  ;;  %v2523_v44 = vrot.slane %v2426_v35, 2  ;;  %845 = vst.msk [vmem:[#allocation2 + $0xc9] sm:$0xff] %vm827_vm2, %v808_v53  ;;  %v813_v45 = vmax.f32 %v737_v0, 0.0  ;;  %v729_v39 = vadd.f32 %v3959_v57, %v728_v5 }
 0x147   : > { %925 = vst.msk [vmem:[#allocation2 + $0xa1] sm:$0x1] %vm882_vm3, %v907_v7  ;;  %v1168_v51 = vrot.slane %v4062_v18, 1  ;;  %v1172_v55 = vsel %vm1162_vm4, %v1169_v61, %v1171_v54  ;;  %v3383_v43 = vpop.f32.mrf.mxu0  ;;  %v2522_v63 = vsel %vm1407_vm5, %v2520_v42, %v2521_v59  ;;  %v1413_v12 = vrot.slane %v4065_v19, 2 }
 0x148   : > { %v2389_v62 = vadd.f32 %v2280_v52, %v2145_v1  ;;  %v2524_v2 = vsel %vm1407_vm5, %v2521_v59, %v2523_v44  ;;  %v1278_v18 = vadd.f32 %v1172_v55, %v4017_v47  ;;  %850 = vst.msk [vmem:[#allocation2 + $0x109] sm:$0xff] %vm827_vm2, %v813_v45  ;;  %v811_v22 = vmax.f32 %v729_v39, 0.0  ;;  %v4209_v52 = vld [vmem:[#allocation2 + $0x48] sm:$0xff] }
 0x149   : > { %v873_v56 = vld [vmem:[#allocation2 + $0xda] sm:$0x1]  ;;  %v740_v54 = vadd.f32 %v3383_v43, %v3959_v57  ;;  %v2632_v46 = vadd.f32 %v2522_v63, %v2388_v58  ;;  %v1170_v6 = vsel %vm1162_vm4, %v1168_v51, %v1169_v61  ;;  %v872_v41 = vld [vmem:[#allocation2 + $0xc2] sm:$0x1]  ;;  %v731_v9 = vpop.f32.mrf.mxu0  ;;  %v1414_v47 = vrot.slane %v4023_v49, 2  ;;  %v4221_v63 = vld [vmem:[#allocation2 + $0x50] sm:$0xff] }
 0x14a   : > { %892 = vst.msk [vmem:[#allocation2 + $0xd8] sm:$0x1] %vm882_vm3, %v873_v56  ;;  %v2633_v10 = vadd.f32 %v2524_v2, %v2389_v62  ;;  %v1277_v11 = vadd.f32 %v1170_v6, %v4053_v8  ;;  %891 = vst.msk [vmem:[#allocation2 + $0xc0] sm:$0x1] %vm882_vm3, %v872_v41  ;;  %v732_v14 = vadd.f32 %v3959_v57, %v731_v9 }
 0x14b   : > { %848 = vst.msk [vmem:[#allocation2 + $0xf1] sm:$0xff] %vm827_vm2, %v811_v22  ;;  %v814_v13 = vmax.f32 %v740_v54, 0.0  ;;  %v2671_v48 = vadd.f32 %v4177_v3, %v2632_v46  ;;  %v1558_v61 = vmul.f32 %v3983_v23, %v4100_v17  ;;  %v910_v16 = vld [vmem:[#allocation2 + $0xe7] sm:$0x1]  ;;  %v3386_v21 = vpop.f32.mrf.mxu0  ;;  %v1415_v19 = vsel %vm1407_vm5, %v1413_v12, %v1414_v47 }
 0x14c   : > { %v2672_v8 = vadd.f32 %v4177_v3, %v2633_v10  ;;  %v1417_v49 = vsel %vm1407_vm5, %v1414_v47, %v1416_v4  ;;  %v1559_v25 = vmul.f32 %v3983_v23, %v4102_v20  ;;  %928 = vst.msk [vmem:[#allocation2 + $0xe9] sm:$0x1] %vm882_vm3, %v910_v16  ;;  %v812_v26 = vmax.f32 %v732_v14, 0.0  ;;  %v4234_v10 = vld [vmem:[#allocation2 + $0x58] sm:$0x3] }
 0x14d   : > { %851 = vst.msk [vmem:[#allocation2 + $0x111] sm:$0xff] %vm827_vm2, %v814_v13  ;;  %v753_v31 = vadd.f32 %v3386_v21, %v3959_v57  ;;  %v2703_v15 = vmax.f32 %v2671_v48, 0.0  ;;  %v1522_v32 = vadd.f32 %v1415_v19, %v1277_v11  ;;  %v909_v34 = vld [vmem:[#allocation2 + $0xcf] sm:$0x1]  ;;  %v744_v35 = vpop.f32.mrf.mxu0  ;;  %v1523_v0 = vadd.f32 %v1417_v49, %v1278_v18 }
 0x14e   : > { %v2704_v53 = vmax.f32 %v2672_v8, 0.0  ;;  %v1627_v33 = vmul.f32 %v3985_v24, %v4100_v17  ;;  %v1628_v4 = vmul.f32 %v3985_v24, %v4102_v20  ;;  %927 = vst.msk [vmem:[#allocation2 + $0xd1] sm:$0x1] %vm882_vm3, %v909_v34  ;;  %v745_v7 = vadd.f32 %v3959_v57, %v744_v35 }
 0x14f   : > { %849 = vst.msk [vmem:[#allocation2 + $0xf9] sm:$0xff] %vm827_vm2, %v812_v26  ;;  %v817_v58 = vmax.f32 %v753_v31, 0.0  ;;  %v1590_v5 = vadd.f32 %v1558_v61, %v1522_v32  ;;  %v1629_v1 = vmul.f32 %v3985_v24, %v4122_v40  ;;  %v875_v42 = vld [vmem:[#allocation2 + $0x10a] sm:$0x1]  ;;  %v3387_v59 = vpop.f32.mrf.mxu0  ;;  %v1591_v45 = vadd.f32 %v1559_v25, %v1523_v0 }
 0x150   : > { %v2735_v44 = vpack.c.bf16 %v2704_v53, %v2703_v15  ;;  %v1725_v39 = vrot.slane %v1627_v33, 1  ;;  %v1726_v51 = vrot.slane %v1628_v4, 1  ;;  %894 = vst.msk [vmem:[#allocation2 + $0x108] sm:$0x1] %vm882_vm3, %v875_v42  ;;  %v815_v55 = vmax.f32 %v745_v7, 0.0 }
 0x151   : > { %854 = vst.msk [vmem:[#allocation2 + $0x139] sm:$0xff] %vm827_vm2, %v817_v58  ;;  %v756_v56 = vadd.f32 %v3387_v59, %v3959_v57  ;;  %v1728_v43 = vrot.slane %v1629_v1, 1  ;;  %v1871_v62 = vmul.f32 %v3993_v30, %v4100_v17  ;;  %v747_v18 = vpop.f32.mrf.mxu0  ;;  %v1872_v54 = vmul.f32 %v3993_v30, %v4102_v20 }
 0x152   : > { %v874_v2 = vld [vmem:[#allocation2 + $0xf2] sm:$0x1]  ;;  %3398 = vmatprep.mubr.msk.bf16.mxu1 %vm827_vm2, %v2735_v44  ;;  %v1727_v22 = vsel %vm1162_vm4, %v1725_v39, %v1726_v51  ;;  %v1873_v46 = vmul.f32 %v3993_v30, %v4122_v40  ;;  %v2114_v6 = vmul.f32 %v3998_v36, %v4209_v52  ;;  %852 = vst.msk [vmem:[#allocation2 + $0x121] sm:$0xff] %vm827_vm2, %v815_v55 }
 0x153   : > { %893 = vst.msk [vmem:[#allocation2 + $0xf0] sm:$0x1] %vm882_vm3, %v874_v2  ;;  %v818_v41 = vmax.f32 %v756_v56, 0.0  ;;  %v748_v9 = vadd.f32 %v3959_v57, %v747_v18  ;;  %v1729_v11 = vsel %vm1162_vm4, %v1726_v51, %v1728_v43  ;;  %v1834_v12 = vadd.f32 %v1727_v22, %v1590_v5  ;;  %v3390_v13 = vpop.f32.mrf.mxu0 }
 0x154   : > { %v912_v47 = vld [vmem:[#allocation2 + $0x117] sm:$0x1]  ;;  %v1835_v14 = vadd.f32 %v1729_v11, %v1591_v45  ;;  %v1969_v48 = vrot.slane %v1871_v62, 2  ;;  %v1970_v61 = vrot.slane %v1872_v54, 2  ;;  %v1972_v16 = vrot.slane %v1873_v46, 2 }
 0x155   : > { %930 = vst.msk [vmem:[#allocation2 + $0x119] sm:$0x1] %vm882_vm3, %v912_v47  ;;  %v816_v21 = vmax.f32 %v748_v9, 0.0  ;;  %v769_v8 = vadd.f32 %v3390_v13, %v3959_v57  ;;  %v2115_v19 = vmul.f32 %v3998_v36, %v4221_v63  ;;  %v2183_v49 = vmul.f32 %v4000_v37, %v4209_v52  ;;  %v760_v34 = vpop.f32.mrf.mxu0 }
 0x156   : > { %855 = vst.msk [vmem:[#allocation2 + $0x141] sm:$0xff] %vm827_vm2, %v818_v41  ;;  %v911_v25 = vld [vmem:[#allocation2 + $0xff] sm:$0x1]  ;;  %v1971_v26 = vsel %vm1407_vm5, %v1969_v48, %v1970_v61  ;;  %v1973_v31 = vsel %vm1407_vm5, %v1970_v61, %v1972_v16  ;;  %v2184_v15 = vmul.f32 %v4000_v37, %v4221_v63  ;;  %v2185_v32 = vmul.f32 %v4000_v37, %v4234_v10 }
 0x157   : > { %929 = vst.msk [vmem:[#allocation2 + $0x101] sm:$0x1] %vm882_vm3, %v911_v25  ;;  %v821_v35 = vmax.f32 %v769_v8, 0.0  ;;  %v2078_v53 = vadd.f32 %v1971_v26, %v1834_v12  ;;  %v2079_v0 = vadd.f32 %v1973_v31, %v1835_v14  ;;  %v2281_v33 = vrot.slane %v2183_v49, 1  ;;  %v3391_v42 = vpop.f32.mrf.mxu0 }
 0x158   : > { %853 = vst.msk [vmem:[#allocation2 + $0x129] sm:$0xff] %vm827_vm2, %v816_v21  ;;  %v877_v4 = vld [vmem:[#allocation2 + $0x13a] sm:$0x1]  ;;  %v2282_v58 = vrot.slane %v2184_v15, 1  ;;  %v2284_v7 = vrot.slane %v2185_v32, 1  ;;  %v2427_v5 = vmul.f32 %v4002_v38, %v4209_v52  ;;  %v2428_v1 = vmul.f32 %v4002_v38, %v4221_v63 }
 0x159   : > { %896 = vst.msk [vmem:[#allocation2 + $0x138] sm:$0x1] %vm882_vm3, %v877_v4  ;;  %v2146_v59 = vadd.f32 %v2114_v6, %v2078_v53  ;;  %v2147_v44 = vadd.f32 %v2115_v19, %v2079_v0  ;;  %v2429_v45 = vmul.f32 %v4002_v38, %v4234_v10  ;;  %v761_v39 = vadd.f32 %v3959_v57, %v760_v34  ;;  %v876_v51 = vld [vmem:[#allocation2 + $0x122] sm:$0x1]  ;;  %v763_v2 = vpop.f32.mrf.mxu0 }
 0x15a   : > { %858 = vst.msk [vmem:[#allocation2 + $0x169] sm:$0xff] %vm827_vm2, %v821_v35  ;;  %v2283_v55 = vsel %vm1162_vm4, %v2281_v33, %v2282_v58  ;;  %v2285_v56 = vsel %vm1162_vm4, %v2282_v58, %v2284_v7  ;;  %v2525_v43 = vrot.slane %v2427_v5, 2  ;;  %v2526_v62 = vrot.slane %v2428_v1, 2 }
 0x15b   : > { %895 = vst.msk [vmem:[#allocation2 + $0x120] sm:$0x1] %vm882_vm3, %v876_v51  ;;  %v2390_v18 = vadd.f32 %v2283_v55, %v2146_v59  ;;  %v2391_v22 = vadd.f32 %v2285_v56, %v2147_v44  ;;  %v2528_v54 = vrot.slane %v2429_v45, 2  ;;  %v819_v46 = vmax.f32 %v761_v39, 0.0  ;;  %v4301_v44 = vld [vmem:[#allocation2 + $0x60] sm:$0xff] }
 0x15c   : > { %v2527_v41 = vsel %vm1407_vm5, %v2525_v43, %v2526_v62  ;;  %v772_v9 = vadd.f32 %v3391_v42, %v3959_v57  ;;  %v764_v11 = vadd.f32 %v3959_v57, %v763_v2  ;;  %v1002_v12 = vmul.f32 %v3987_v27, %v4100_v17  ;;  %v4311_v2 = vld [vmem:[#allocation2 + $0x68] sm:$0xff] }
 0x15d   : > { %v914_v6 = vld [vmem:[#allocation2 + $0x147] sm:$0x1]  ;;  %v2529_v47 = vsel %vm1407_vm5, %v2526_v62, %v2528_v54  ;;  %v2634_v13 = vadd.f32 %v2527_v41, %v2390_v18  ;;  %856 = vst.msk [vmem:[#allocation2 + $0x151] sm:$0xff] %vm827_vm2, %v819_v46  ;;  %v1003_v14 = vmul.f32 %v3987_v27, %v4102_v20  ;;  %v1072_v48 = vmul.f32 %v3989_v28, %v4100_v17  ;;  %v4314_v18 = vld [vmem:[#allocation2 + $0x70] sm:$0x3] }
 0x15e   : > { %932 = vst.msk [vmem:[#allocation2 + $0x149] sm:$0x1] %vm882_vm3, %v914_v6  ;;  %v2635_v16 = vadd.f32 %v2529_v47, %v2391_v22  ;;  %v822_v21 = vmax.f32 %v772_v9, 0.0  ;;  %v820_v8 = vmax.f32 %v764_v11, 0.0  ;;  %v1073_v19 = vmul.f32 %v3989_v28, %v4102_v20 }
 0x15f   : > { %v913_v61 = vld [vmem:[#allocation2 + $0x12f] sm:$0x1]  ;;  %v2673_v49 = vadd.f32 %v4177_v3, %v2634_v13  ;;  %v1173_v25 = vrot.slane %v1072_v48, 1  ;;  %v1317_v26 = vmul.f32 %v3991_v29, %v4100_v17  ;;  %v1318_v31 = vmul.f32 %v3991_v29, %v4102_v20 }
 0x160   : > { %931 = vst.msk [vmem:[#allocation2 + $0x131] sm:$0x1] %vm882_vm3, %v913_v61  ;;  %v2674_v32 = vadd.f32 %v4177_v3, %v2635_v16  ;;  %v1174_v34 = vrot.slane %v1073_v19, 1  ;;  %v1319_v35 = vmul.f32 %v3991_v29, %v4122_v40  ;;  %v1560_v53 = vmul.f32 %v3983_v23, %v4209_v52 }
 0x161   : > { %v879_v15 = vld [vmem:[#allocation2 + $0x16a] sm:$0x1]  ;;  %859 = vst.msk [vmem:[#allocation2 + $0x171] sm:$0xff] %vm827_vm2, %v822_v21  ;;  %857 = vst.msk [vmem:[#allocation2 + $0x159] sm:$0xff] %vm827_vm2, %v820_v8  ;;  %v2705_v17 = vmax.f32 %v2673_v49, 0.0  ;;  %v1418_v0 = vrot.slane %v1317_v26, 2  ;;  %v1561_v20 = vmul.f32 %v3983_v23, %v4221_v63  ;;  %v1630_v59 = vmul.f32 %v3985_v24, %v4209_v52 }
 0x162   : > { %898 = vst.msk [vmem:[#allocation2 + $0x168] sm:$0x1] %vm882_vm3, %v879_v15  ;;  %v1419_v33 = vrot.slane %v1318_v31, 2  ;;  %v2706_v4 = vmax.f32 %v2674_v32, 0.0  ;;  %v1175_v58 = vsel %vm1162_vm4, %v1173_v25, %v1174_v34  ;;  %v1177_v7 = vsel %vm1162_vm4, %v1174_v34, %v1176_v60  ;;  %v3394_v32 = vpop.f32.mrf.mxu0 }
 0x163   : > { %v1421_v5 = vrot.slane %v1319_v35, 2  ;;  %v1279_v40 = vadd.f32 %v1175_v58, %v1002_v12  ;;  %v1280_v1 = vadd.f32 %v1177_v7, %v1003_v14  ;;  %v1631_v55 = vmul.f32 %v3985_v24, %v4221_v63 }
 0x164   : > { %v1420_v42 = vsel %vm1407_vm5, %v1418_v0, %v1419_v33  ;;  %v2736_v45 = vpack.c.bf16 %v2706_v4, %v2705_v17  ;;  %v878_v39 = vld [vmem:[#allocation2 + $0x152] sm:$0x1]  ;;  %v1632_v50 = vmul.f32 %v3985_v24, %v4234_v10  ;;  %v1730_v43 = vrot.slane %v1630_v59, 1 }
 0x165   : > { %v1422_v51 = vsel %vm1407_vm5, %v1419_v33, %v1421_v5  ;;  %897 = vst.msk [vmem:[#allocation2 + $0x150] sm:$0x1] %vm882_vm3, %v878_v39  ;;  %v1524_v60 = vadd.f32 %v1420_v42, %v1279_v40  ;;  %v1874_v62 = vmul.f32 %v3993_v30, %v4209_v52  ;;  %v1731_v22 = vrot.slane %v1631_v55, 1 }
 0x166   : > { %v1525_v56 = vadd.f32 %v1422_v51, %v1280_v1  ;;  %3399 = vmatmul.mubr.msk.bf16.vlgmr.msra.gmra.mxu1 %vm827_vm2, %v2736_v45  ;;  %v1733_v54 = vrot.slane %v1632_v50, 1  ;;  %v1875_v46 = vmul.f32 %v3993_v30, %v4221_v63  ;;  %v1876_v6 = vmul.f32 %v3993_v30, %v4234_v10 }
 0x167   : > { %v1592_v11 = vadd.f32 %v1560_v53, %v1524_v60  ;;  %v1974_v47 = vrot.slane %v1874_v62, 2  ;;  %v2116_v13 = vmul.f32 %v3998_v36, %v4301_v44  ;;  %v1732_v14 = vsel %vm1162_vm4, %v1730_v43, %v1731_v22 }
 0x168   : > { %v916_v41 = vld [vmem:[#allocation2 + $0x177] sm:$0x1]  ;;  %v915_v9 = vld [vmem:[#allocation2 + $0x15f] sm:$0x1]  ;;  %v1593_v12 = vadd.f32 %v1561_v20, %v1525_v56  ;;  %v1734_v48 = vsel %vm1162_vm4, %v1731_v22, %v1733_v54  ;;  %v1975_v61 = vrot.slane %v1875_v46, 2  ;;  %v1977_v16 = vrot.slane %v1876_v6, 2 }
 0x169   : > { %934 = vst.msk [vmem:[#allocation2 + $0x179] sm:$0x1] %vm882_vm3, %v916_v41  ;;  %933 = vst.msk [vmem:[#allocation2 + $0x161] sm:$0x1] %vm882_vm3, %v915_v9  ;;  %v1836_v21 = vadd.f32 %v1732_v14, %v1592_v11  ;;  %v2117_v19 = vmul.f32 %v3998_v36, %v4311_v2  ;;  %v2186_v49 = vmul.f32 %v4000_v37, %v4301_v44 }
 0x16a   : > { %v1837_v8 = vadd.f32 %v1734_v48, %v1593_v12  ;;  %v1976_v25 = vsel %vm1407_vm5, %v1974_v47, %v1975_v61  ;;  %v1978_v26 = vsel %vm1407_vm5, %v1975_v61, %v1977_v16  ;;  %v2187_v31 = vmul.f32 %v4000_v37, %v4311_v2 }
 0x16b   : > { %v2188_v15 = vmul.f32 %v4000_v37, %v4314_v18  ;;  %v2080_v34 = vadd.f32 %v1976_v25, %v1836_v21  ;;  %v2286_v53 = vrot.slane %v2186_v49, 1  ;;  %v2430_v17 = vmul.f32 %v4002_v38, %v4301_v44 }
 0x16c   : > { %v2081_v35 = vadd.f32 %v1978_v26, %v1837_v8  ;;  %v2287_v0 = vrot.slane %v2187_v31, 1  ;;  %v2431_v20 = vmul.f32 %v4002_v38, %v4311_v2  ;;  %v2432_v4 = vmul.f32 %v4002_v38, %v4314_v18 }
 0x16d   : > { %v2289_v33 = vrot.slane %v2188_v15, 1  ;;  %v2148_v58 = vadd.f32 %v2116_v13, %v2080_v34  ;;  %v2530_v5 = vrot.slane %v2430_v17, 2  ;;  %v785_v40 = vadd.f32 %v3394_v32, %v3959_v57 }
 0x16e   : > { %v2149_v7 = vadd.f32 %v2117_v19, %v2081_v35  ;;  %v2288_v1 = vsel %vm1162_vm4, %v2286_v53, %v2287_v0  ;;  %v2531_v59 = vrot.slane %v2431_v20, 2  ;;  %v2533_v45 = vrot.slane %v2432_v4, 2  ;;  %v4378_v35 = vld [vmem:[#allocation2 + $0x78] sm:$0xff]  ;;  %v776_v4 = vpop.f32.mrf.mxu0 }
 0x16f   : > { %v2290_v42 = vsel %vm1162_vm4, %v2287_v0, %v2289_v33  ;;  %v2392_v39 = vadd.f32 %v2288_v1, %v2148_v58  ;;  %v825_v55 = vmax.f32 %v785_v40, 0.0  ;;  %v1004_v50 = vmul.f32 %v3987_v27, %v4209_v52  ;;  %v4384_v58 = vld [vmem:[#allocation2 + $0x80] sm:$0xff] }
 0x170   : > { %v2393_v51 = vadd.f32 %v2290_v42, %v2149_v7  ;;  %v2532_v60 = vsel %vm1407_vm5, %v2530_v5, %v2531_v59  ;;  %v2534_v56 = vsel %vm1407_vm5, %v2531_v59, %v2533_v45  ;;  %v1005_v43 = vmul.f32 %v3987_v27, %v4221_v63 }
 0x171   : > { %v1075_v57 = vmul.f32 %v3989_v28, %v4209_v52  ;;  %v2636_v62 = vadd.f32 %v2532_v60, %v2392_v39  ;;  %862 = vst.msk [vmem:[#allocation2 + $0x199] sm:$0xff] %vm827_vm2, %v825_v55  ;;  %v1076_v54 = vmul.f32 %v3989_v28, %v4221_v63  ;;  %v1077_v46 = vmul.f32 %v3989_v28, %v4234_v10 }
 0x172   : > { %v2637_v22 = vadd.f32 %v2534_v56, %v2393_v51  ;;  %v1320_v41 = vmul.f32 %v3991_v29, %v4209_v52  ;;  %v1321_v9 = vmul.f32 %v3991_v29, %v4221_v63  ;;  %v1322_v11 = vmul.f32 %v3991_v29, %v4234_v10  ;;  %v4392_v51 = vld [vmem:[#allocation2 + $0x88] sm:$0x3] }
 0x173   : > { %v1178_v6 = vrot.slane %v1075_v57, 1  ;;  %v2675_v12 = vadd.f32 %v4177_v3, %v2636_v62  ;;  %v1179_v13 = vrot.slane %v1076_v54, 1  ;;  %v1181_v14 = vrot.slane %v1077_v46, 1  ;;  %v3395_v54 = vpop.f32.mrf.mxu0 }
 0x174   : > { %v2676_v47 = vadd.f32 %v4177_v3, %v2637_v22  ;;  %v1423_v48 = vrot.slane %v1320_v41, 2  ;;  %v1424_v61 = vrot.slane %v1321_v9, 2  ;;  %v1426_v16 = vrot.slane %v1322_v11, 2 }
 0x175   : > { %v1562_v21 = vmul.f32 %v3983_v23, %v4301_v44  ;;  %v2707_v8 = vmax.f32 %v2675_v12, 0.0  ;;  %v1180_v19 = vsel %vm1162_vm4, %v1178_v6, %v1179_v13  ;;  %v1182_v63 = vsel %vm1162_vm4, %v1179_v13, %v1181_v14 }
 0x176   : > { %v2708_v52 = vmax.f32 %v2676_v47, 0.0  ;;  %v1281_v49 = vadd.f32 %v1180_v19, %v1004_v50  ;;  %v1282_v10 = vadd.f32 %v1182_v63, %v1005_v43  ;;  %v1425_v25 = vsel %vm1407_vm5, %v1423_v48, %v1424_v61  ;;  %v3508_v19 = vld [vmem:[%s5462_s4] ss:$0 sm:$0xff] }
 0x177   : > { %v1427_v26 = vsel %vm1407_vm5, %v1424_v61, %v1426_v16  ;;  %v1563_v15 = vmul.f32 %v3983_v23, %v4311_v2  ;;  %v1633_v32 = vmul.f32 %v3985_v24, %v4301_v44  ;;  %v1634_v34 = vmul.f32 %v3985_v24, %v4311_v2 }
 0x178   : > { %v2737_v31 = vpack.c.bf16 %v2708_v52, %v2707_v8  ;;  %v881_v53 = vld [vmem:[#allocation2 + $0x19a] sm:$0x1]  ;;  %v1526_v17 = vadd.f32 %v1425_v25, %v1281_v49  ;;  %v1527_v0 = vadd.f32 %v1427_v26, %v1282_v10  ;;  %v1635_v33 = vmul.f32 %v3985_v24, %v4314_v18  ;;  %v779_v49 = vpop.f32.mrf.mxu0 }
 0x179   : > { %v1877_v20 = vmul.f32 %v3993_v30, %v4301_v44  ;;  %900 = vst.msk [vmem:[#allocation2 + $0x198] sm:$0x1] %vm882_vm3, %v881_v53  ;;  %v1735_v7 = vrot.slane %v1633_v32, 1  ;;  %v1736_v5 = vrot.slane %v1634_v34, 1  ;;  %v1878_v40 = vmul.f32 %v3993_v30, %v4311_v2 }
 0x17a   : > { %3402 = vmatprep.mubr.msk.bf16.mxu1 %vm827_vm2, %v2737_v31  ;;  %v1879_v1 = vmul.f32 %v3993_v30, %v4314_v18  ;;  %v1594_v42 = vadd.f32 %v1562_v21, %v1526_v17  ;;  %v1595_v59 = vadd.f32 %v1563_v15, %v1527_v0  ;;  %v1738_v45 = vrot.slane %v1635_v33, 1 }
 0x17b   : > { %v1979_v39 = vrot.slane %v1877_v20, 2  ;;  %v1737_v55 = vsel %vm1162_vm4, %v1735_v7, %v1736_v5  ;;  %v1980_v50 = vrot.slane %v1878_v40, 2  ;;  %v2118_v56 = vmul.f32 %v3998_v36, %v4378_v35 }
 0x17c   : > { %v1982_v60 = vrot.slane %v1879_v1, 2  ;;  %v1739_v43 = vsel %vm1162_vm4, %v1736_v5, %v1738_v45  ;;  %v1838_v57 = vadd.f32 %v1737_v55, %v1594_v42  ;;  %v2119_v62 = vmul.f32 %v3998_v36, %v4384_v58 }
 0x17d   : > { %v2189_v22 = vmul.f32 %v4000_v37, %v4378_v35  ;;  %v1839_v46 = vadd.f32 %v1739_v43, %v1595_v59  ;;  %v1981_v6 = vsel %vm1407_vm5, %v1979_v39, %v1980_v50  ;;  %v2190_v9 = vmul.f32 %v4000_v37, %v4384_v58 }
 0x17e   : > { %v1983_v41 = vsel %vm1407_vm5, %v1980_v50, %v1982_v60  ;;  %v2082_v11 = vadd.f32 %v1981_v6, %v1838_v57  ;;  %v2191_v12 = vmul.f32 %v4000_v37, %v4392_v51  ;;  %v2433_v13 = vmul.f32 %v4002_v38, %v4378_v35 }
 0x17f   : > { %v2291_v47 = vrot.slane %v2189_v22, 1  ;;  %v2083_v14 = vadd.f32 %v1983_v41, %v1839_v46  ;;  %v2292_v48 = vrot.slane %v2190_v9, 1  ;;  %v2434_v61 = vmul.f32 %v4002_v38, %v4384_v58 }
 0x180   : > { %v2435_v16 = vmul.f32 %v4002_v38, %v4392_v51  ;;  %v2150_v21 = vadd.f32 %v2118_v56, %v2082_v11  ;;  %v2294_v8 = vrot.slane %v2191_v12, 1  ;;  %v2535_v52 = vrot.slane %v2433_v13, 2 }
 0x181   : > { %v777_v63 = vadd.f32 %v3508_v19, %v776_v4  ;;  %v2151_v10 = vadd.f32 %v2119_v62, %v2083_v14  ;;  %v2293_v25 = vsel %vm1162_vm4, %v2291_v47, %v2292_v48  ;;  %v2536_v26 = vrot.slane %v2434_v61, 2 }
 0x182   : > { %v2538_v31 = vrot.slane %v2435_v16, 2  ;;  %v2295_v15 = vsel %vm1162_vm4, %v2292_v48, %v2294_v8  ;;  %v2394_v32 = vadd.f32 %v2293_v25, %v2150_v21  ;;  %v788_v53 = vadd.f32 %v3508_v19, %v3395_v54  ;;  %v4452_v21 = vld [vmem:[#allocation2 + $0x90] sm:$0xff] }
 0x183   : > { %v823_v34 = vmax.f32 %v777_v63, 0.0  ;;  %v2395_v17 = vadd.f32 %v2295_v15, %v2151_v10  ;;  %v2537_v0 = vsel %vm1407_vm5, %v2535_v52, %v2536_v26  ;;  %v780_v20 = vadd.f32 %v3508_v19, %v779_v49  ;;  %v4461_v49 = vld [vmem:[#allocation2 + $0x98] sm:$0xff] }
 0x184   : > { %v2539_v33 = vsel %vm1407_vm5, %v2536_v26, %v2538_v31  ;;  %v2638_v7 = vadd.f32 %v2537_v0, %v2394_v32  ;;  %v826_v4 = vmax.f32 %v788_v53, 0.0  ;;  %v1006_v5 = vmul.f32 %v3987_v27, %v4301_v44 }
 0x185   : > { %860 = vst.msk [vmem:[#allocation2 + $0x181] sm:$0xff] %vm827_vm2, %v823_v34  ;;  %v1007_v40 = vmul.f32 %v3987_v27, %v4311_v2  ;;  %v2639_v1 = vadd.f32 %v2539_v33, %v2395_v17  ;;  %v824_v42 = vmax.f32 %v780_v20, 0.0  ;;  %v1078_v59 = vmul.f32 %v3989_v28, %v4301_v44  ;;  %v4470_v33 = vld [vmem:[#allocation2 + $0xa0] sm:$0x3] }
 0x186   : > { %v1079_v45 = vmul.f32 %v3989_v28, %v4311_v2  ;;  %v2677_v39 = vadd.f32 %v4177_v3, %v2638_v7  ;;  %863 = vst.msk [vmem:[#allocation2 + $0x1a1] sm:$0xff] %vm827_vm2, %v826_v4  ;;  %v1080_v55 = vmul.f32 %v3989_v28, %v4314_v18  ;;  %v1323_v50 = vmul.f32 %v3991_v29, %v4301_v44 }
 0x187   : > { %v1324_v60 = vmul.f32 %v3991_v29, %v4311_v2  ;;  %v2678_v56 = vadd.f32 %v4177_v3, %v2639_v1  ;;  %861 = vst.msk [vmem:[#allocation2 + $0x189] sm:$0xff] %vm827_vm2, %v824_v42  ;;  %v1183_v43 = vrot.slane %v1078_v59, 1  ;;  %v1325_v62 = vmul.f32 %v3991_v29, %v4314_v18 }
 0x188   : > { %v1184_v57 = vrot.slane %v1079_v45, 1  ;;  %v2709_v22 = vmax.f32 %v2677_v39, 0.0  ;;  %v1186_v54 = vrot.slane %v1080_v55, 1  ;;  %v1428_v46 = vrot.slane %v1323_v50, 2 }
 0x189   : > { %v1429_v6 = vrot.slane %v1324_v60, 2  ;;  %v2710_v41 = vmax.f32 %v2678_v56, 0.0  ;;  %v1431_v44 = vrot.slane %v1325_v62, 2  ;;  %v1564_v2 = vmul.f32 %v3983_v23, %v4378_v35 }
 0x18a   : > { %v1185_v9 = vsel %vm1162_vm4, %v1183_v43, %v1184_v57  ;;  %v1187_v11 = vsel %vm1162_vm4, %v1184_v57, %v1186_v54  ;;  %v1565_v13 = vmul.f32 %v3983_v23, %v4384_v58  ;;  %v1636_v16 = vmul.f32 %v3985_v24, %v4378_v35 }
 0x18b   : > { %v1283_v12 = vadd.f32 %v1185_v9, %v1006_v5  ;;  %v1430_v47 = vsel %vm1407_vm5, %v1428_v46, %v1429_v6  ;;  %v2738_v18 = vpack.c.bf16 %v2710_v41, %v2709_v22  ;;  %v1284_v48 = vadd.f32 %v1187_v11, %v1007_v40 }
 0x18c   : > { %v880_v14 = vld [vmem:[#allocation2 + $0x182] sm:$0x1]  ;;  %v1432_v61 = vsel %vm1407_vm5, %v1429_v6, %v1431_v44  ;;  %v1637_v52 = vmul.f32 %v3985_v24, %v4384_v58  ;;  %v1638_v19 = vmul.f32 %v3985_v24, %v4392_v51  ;;  %v1880_v63 = vmul.f32 %v3993_v30, %v4378_v35 }
 0x18d   : > { %899 = vst.msk [vmem:[#allocation2 + $0x180] sm:$0x1] %vm882_vm3, %v880_v14  ;;  %v1528_v8 = vadd.f32 %v1430_v47, %v1283_v12  ;;  %3403 = vmatmul.mubr.msk.bf16.gmra.mxu1 %vm827_vm2, %v2738_v18  ;;  %v918_v10 = vld [vmem:[#allocation2 + $0x1a7] sm:$0x1]  ;;  %v1529_v25 = vadd.f32 %v1432_v61, %v1284_v48  ;;  %v1740_v26 = vrot.slane %v1636_v16, 1  ;;  %v1881_v31 = vmul.f32 %v3993_v30, %v4384_v58 }
 0x18e   : > { %v1882_v15 = vmul.f32 %v3993_v30, %v4392_v51  ;;  %936 = vst.msk [vmem:[#allocation2 + $0x1a9] sm:$0x1] %vm882_vm3, %v918_v10  ;;  %v917_v32 = vld [vmem:[#allocation2 + $0x18f] sm:$0x1]  ;;  %v1741_v53 = vrot.slane %v1637_v52, 1  ;;  %v1743_v17 = vrot.slane %v1638_v19, 1  ;;  %v2120_v5 = vmul.f32 %v3998_v36, %v4452_v21 }
 0x18f   : > { %v1596_v34 = vadd.f32 %v1564_v2, %v1528_v8  ;;  %v1984_v0 = vrot.slane %v1880_v63, 2  ;;  %935 = vst.msk [vmem:[#allocation2 + $0x191] sm:$0x1] %vm882_vm3, %v917_v32  ;;  %v1597_v20 = vadd.f32 %v1565_v13, %v1529_v25  ;;  %v1985_v7 = vrot.slane %v1881_v31, 2 }
 0x190   : > { %v1987_v4 = vrot.slane %v1882_v15, 2  ;;  %v1742_v40 = vsel %vm1162_vm4, %v1740_v26, %v1741_v53  ;;  %v1744_v1 = vsel %vm1162_vm4, %v1741_v53, %v1743_v17  ;;  %v2121_v42 = vmul.f32 %v3998_v36, %v4461_v49 }
 0x191   : > { %v2192_v59 = vmul.f32 %v4000_v37, %v4452_v21  ;;  %v1840_v45 = vadd.f32 %v1742_v40, %v1596_v34  ;;  %v1841_v39 = vadd.f32 %v1744_v1, %v1597_v20  ;;  %v1986_v55 = vsel %vm1407_vm5, %v1984_v0, %v1985_v7 }
 0x192   : > { %v1988_v50 = vsel %vm1407_vm5, %v1985_v7, %v1987_v4  ;;  %v2193_v60 = vmul.f32 %v4000_v37, %v4461_v49  ;;  %v2194_v56 = vmul.f32 %v4000_v37, %v4470_v33  ;;  %v2436_v57 = vmul.f32 %v4002_v38, %v4452_v21 }
 0x193   : > { %v2296_v43 = vrot.slane %v2192_v59, 1  ;;  %v2084_v62 = vadd.f32 %v1986_v55, %v1840_v45  ;;  %v2085_v22 = vadd.f32 %v1988_v50, %v1841_v39  ;;  %v2437_v54 = vmul.f32 %v4002_v38, %v4461_v49  ;;  %v4522_v39 = vld [vmem:[#allocation2 + $0xa8] sm:$0xff] }
 0x194   : > { %v2438_v46 = vmul.f32 %v4002_v38, %v4470_v33  ;;  %v2297_v6 = vrot.slane %v2193_v60, 1  ;;  %v2299_v41 = vrot.slane %v2194_v56, 1  ;;  %v2540_v9 = vrot.slane %v2436_v57, 2 }
 0x195   : > { %v1008_v44 = vmul.f32 %v3987_v27, %v4378_v35  ;;  %v2152_v2 = vadd.f32 %v2120_v5, %v2084_v62  ;;  %v2153_v11 = vadd.f32 %v2121_v42, %v2085_v22  ;;  %v2541_v12 = vrot.slane %v2437_v54, 2  ;;  %v4530_v54 = vld [vmem:[#allocation2 + $0xb0] sm:$0xff] }
 0x196   : > { %v2543_v47 = vrot.slane %v2438_v46, 2  ;;  %v2298_v13 = vsel %vm1162_vm4, %v2296_v43, %v2297_v6  ;;  %v2300_v18 = vsel %vm1162_vm4, %v2297_v6, %v2299_v41  ;;  %v1009_v14 = vmul.f32 %v3987_v27, %v4384_v58 }
 0x197   : > { %v1081_v48 = vmul.f32 %v3989_v28, %v4378_v35  ;;  %v2396_v61 = vadd.f32 %v2298_v13, %v2152_v2  ;;  %v2397_v16 = vadd.f32 %v2300_v18, %v2153_v11  ;;  %v2542_v8 = vsel %vm1407_vm5, %v2540_v9, %v2541_v12 }
 0x198   : > { %v2544_v52 = vsel %vm1407_vm5, %v2541_v12, %v2543_v47  ;;  %v1082_v19 = vmul.f32 %v3989_v28, %v4384_v58  ;;  %v1083_v63 = vmul.f32 %v3989_v28, %v4392_v51  ;;  %v1326_v25 = vmul.f32 %v3991_v29, %v4378_v35 }
 0x199   : > { %v1188_v10 = vrot.slane %v1081_v48, 1  ;;  %v2640_v26 = vadd.f32 %v2542_v8, %v2396_v61  ;;  %v2641_v31 = vadd.f32 %v2544_v52, %v2397_v16  ;;  %v1327_v15 = vmul.f32 %v3991_v29, %v4384_v58 }
 0x19a   : > { %v1328_v32 = vmul.f32 %v3991_v29, %v4392_v51  ;;  %v1189_v34 = vrot.slane %v1082_v19, 1  ;;  %v1191_v53 = vrot.slane %v1083_v63, 1  ;;  %v1433_v17 = vrot.slane %v1326_v25, 2 }
 0x19b   : > { %v1566_v0 = vmul.f32 %v3983_v23, %v4452_v21  ;;  %v2679_v20 = vadd.f32 %v4177_v3, %v2640_v26  ;;  %v2680_v7 = vadd.f32 %v4177_v3, %v2641_v31  ;;  %v1434_v4 = vrot.slane %v1327_v15, 2 }
 0x19c   : > { %v1436_v35 = vrot.slane %v1328_v32, 2  ;;  %v1190_v5 = vsel %vm1162_vm4, %v1188_v10, %v1189_v34  ;;  %v1192_v40 = vsel %vm1162_vm4, %v1189_v34, %v1191_v53  ;;  %v1567_v58 = vmul.f32 %v3983_v23, %v4461_v49 }
 0x19d   : > { %v1639_v51 = vmul.f32 %v3985_v24, %v4452_v21  ;;  %v2711_v1 = vmax.f32 %v2679_v20, 0.0  ;;  %v2712_v42 = vmax.f32 %v2680_v7, 0.0  ;;  %v1285_v59 = vadd.f32 %v1190_v5, %v1008_v44  ;;  %v4537_v44 = vld [vmem:[#allocation2 + $0xb8] sm:$0x3] }
 0x19e   : > { %v1286_v45 = vadd.f32 %v1192_v40, %v1009_v14  ;;  %v1435_v55 = vsel %vm1407_vm5, %v1433_v17, %v1434_v4  ;;  %v1437_v50 = vsel %vm1407_vm5, %v1434_v4, %v1436_v35  ;;  %v1640_v60 = vmul.f32 %v3985_v24, %v4461_v49 }
 0x19f   : > { %v1641_v56 = vmul.f32 %v3985_v24, %v4470_v33  ;;  %v2739_v43 = vpack.c.bf16 %v2712_v42, %v2711_v1  ;;  %v1530_v57 = vadd.f32 %v1435_v55, %v1285_v59  ;;  %v1745_v22 = vrot.slane %v1639_v51, 1 }
 0x1a0   : > { %v1531_v62 = vadd.f32 %v1437_v50, %v1286_v45  ;;  %v1746_v46 = vrot.slane %v1640_v60, 1  ;;  %v1883_v41 = vmul.f32 %v3993_v30, %v4452_v21  ;;  %v1884_v9 = vmul.f32 %v3993_v30, %v4461_v49 }
 0x1a1   : > { %v1748_v6 = vrot.slane %v1641_v56, 1  ;;  %3406 = vmatprep.mubr.msk.bf16.mxu1 %vm827_vm2, %v2739_v43  ;;  %v1598_v2 = vadd.f32 %v1566_v0, %v1530_v57  ;;  %v1885_v12 = vmul.f32 %v3993_v30, %v4470_v33  ;;  %v2122_v47 = vmul.f32 %v3998_v36, %v4522_v39 }
 0x1a2   : > { %v1599_v11 = vadd.f32 %v1567_v58, %v1531_v62  ;;  %v1747_v13 = vsel %vm1162_vm4, %v1745_v22, %v1746_v46  ;;  %v1989_v14 = vrot.slane %v1883_v41, 2  ;;  %v1990_v48 = vrot.slane %v1884_v9, 2 }
 0x1a3   : > { %v1749_v18 = vsel %vm1162_vm4, %v1746_v46, %v1748_v6  ;;  %v1842_v61 = vadd.f32 %v1747_v13, %v1598_v2  ;;  %v1992_v8 = vrot.slane %v1885_v12, 2  ;;  %v2123_v52 = vmul.f32 %v3998_v36, %v4530_v54 }
 0x1a4   : > { %v1843_v16 = vadd.f32 %v1749_v18, %v1599_v11  ;;  %v1991_v19 = vsel %vm1407_vm5, %v1989_v14, %v1990_v48  ;;  %v2195_v63 = vmul.f32 %v4000_v37, %v4522_v39  ;;  %v2196_v10 = vmul.f32 %v4000_v37, %v4530_v54 }
 0x1a5   : > { %v2197_v25 = vmul.f32 %v4000_v37, %v4537_v44  ;;  %v1993_v26 = vsel %vm1407_vm5, %v1990_v48, %v1992_v8  ;;  %v2086_v31 = vadd.f32 %v1991_v19, %v1842_v61  ;;  %v2439_v15 = vmul.f32 %v4002_v38, %v4522_v39  ;;  %v4592_v19 = vld [vmem:[#allocation2 + $0xc0] sm:$0xff] }
 0x1a6   : > { %v2440_v32 = vmul.f32 %v4002_v38, %v4530_v54  ;;  %v2087_v34 = vadd.f32 %v1993_v26, %v1843_v16  ;;  %v2301_v53 = vrot.slane %v2195_v63, 1  ;;  %v2302_v17 = vrot.slane %v2196_v10, 1 }
 0x1a7   : > { %v2304_v0 = vrot.slane %v2197_v25, 1  ;;  %v2154_v20 = vadd.f32 %v2122_v47, %v2086_v31  ;;  %v2441_v7 = vmul.f32 %v4002_v38, %v4537_v44  ;;  %v2545_v4 = vrot.slane %v2439_v15, 2  ;;  %v4600_v31 = vld [vmem:[#allocation2 + $0xc8] sm:$0xff] }
 0x1a8   : > { %v2546_v35 = vrot.slane %v2440_v32, 2  ;;  %v2155_v5 = vadd.f32 %v2123_v52, %v2087_v34  ;;  %v2303_v40 = vsel %vm1162_vm4, %v2301_v53, %v2302_v17  ;;  %v1010_v51 = vmul.f32 %v3987_v27, %v4452_v21 }
 0x1a9   : > { %v2305_v58 = vsel %vm1162_vm4, %v2302_v17, %v2304_v0  ;;  %v2398_v1 = vadd.f32 %v2303_v40, %v2154_v20  ;;  %v2548_v59 = vrot.slane %v2441_v7, 2  ;;  %v1011_v45 = vmul.f32 %v3987_v27, %v4461_v49 }
 0x1aa   : > { %v2547_v42 = vsel %vm1407_vm5, %v2545_v4, %v2546_v35  ;;  %v2399_v55 = vadd.f32 %v2305_v58, %v2155_v5  ;;  %v1084_v50 = vmul.f32 %v3989_v28, %v4452_v21  ;;  %v1085_v60 = vmul.f32 %v3989_v28, %v4461_v49  ;;  %v4606_v4 = vld [vmem:[#allocation2 + $0xd0] sm:$0x3] }
 0x1ab   : > { %v1086_v56 = vmul.f32 %v3989_v28, %v4470_v33  ;;  %v2549_v43 = vsel %vm1407_vm5, %v2546_v35, %v2548_v59  ;;  %v2642_v57 = vadd.f32 %v2547_v42, %v2398_v1  ;;  %v1329_v62 = vmul.f32 %v3991_v29, %v4452_v21 }
 0x1ac   : > { %v1330_v22 = vmul.f32 %v3991_v29, %v4461_v49  ;;  %v2643_v46 = vadd.f32 %v2549_v43, %v2399_v55  ;;  %v1193_v6 = vrot.slane %v1084_v50, 1  ;;  %v1194_v41 = vrot.slane %v1085_v60, 1 }
 0x1ad   : > { %v1196_v9 = vrot.slane %v1086_v56, 1  ;;  %v2681_v2 = vadd.f32 %v4177_v3, %v2642_v57  ;;  %v1331_v11 = vmul.f32 %v3991_v29, %v4470_v33  ;;  %v1438_v12 = vrot.slane %v1329_v62, 2 }
 0x1ae   : > { %v1439_v47 = vrot.slane %v1330_v22, 2  ;;  %v2682_v13 = vadd.f32 %v4177_v3, %v2643_v46  ;;  %v1195_v18 = vsel %vm1162_vm4, %v1193_v6, %v1194_v41  ;;  %v1568_v49 = vmul.f32 %v3983_v23, %v4522_v39 }
 0x1af   : > { %v1197_v21 = vsel %vm1162_vm4, %v1194_v41, %v1196_v9  ;;  %v2713_v14 = vmax.f32 %v2681_v2, 0.0  ;;  %v1287_v48 = vadd.f32 %v1195_v18, %v1010_v51  ;;  %v1441_v52 = vrot.slane %v1331_v11, 2 }
 0x1b0   : > { %v1288_v61 = vadd.f32 %v1197_v21, %v1011_v45  ;;  %v1440_v16 = vsel %vm1407_vm5, %v1438_v12, %v1439_v47  ;;  %v2714_v8 = vmax.f32 %v2682_v13, 0.0  ;;  %v1569_v33 = vmul.f32 %v3983_v23, %v4530_v54 }
 0x1b1   : > { %v1642_v3 = vmul.f32 %v3985_v24, %v4522_v39  ;;  %v1532_v63 = vadd.f32 %v1440_v16, %v1287_v48  ;;  %v1643_v10 = vmul.f32 %v3985_v24, %v4530_v54  ;;  %v1644_v25 = vmul.f32 %v3985_v24, %v4537_v44 }
 0x1b2   : > { %v1886_v26 = vmul.f32 %v3993_v30, %v4522_v39  ;;  %v2740_v15 = vpack.c.bf16 %v2714_v8, %v2713_v14  ;;  %v1442_v32 = vsel %vm1407_vm5, %v1439_v47, %v1441_v52  ;;  %v1887_v53 = vmul.f32 %v3993_v30, %v4530_v54 }
 0x1b3   : > { %v1750_v34 = vrot.slane %v1642_v3, 1  ;;  %v1533_v17 = vadd.f32 %v1442_v32, %v1288_v61  ;;  %v1600_v0 = vadd.f32 %v1568_v49, %v1532_v63  ;;  %v1751_v20 = vrot.slane %v1643_v10, 1 }
 0x1b4   : > { %v1753_v7 = vrot.slane %v1644_v25, 1  ;;  %3407 = vmatmul.mubr.msk.bf16.gmra.mxu1 %vm827_vm2, %v2740_v15  ;;  %v1888_v35 = vmul.f32 %v3993_v30, %v4537_v44  ;;  %v1994_v5 = vrot.slane %v1886_v26, 2  ;;  %v1995_v40 = vrot.slane %v1887_v53, 2 }
 0x1b5   : > { %v2124_v58 = vmul.f32 %v3998_v36, %v4592_v19  ;;  %v1601_v51 = vadd.f32 %v1569_v33, %v1533_v17  ;;  %v1752_v1 = vsel %vm1162_vm4, %v1750_v34, %v1751_v20  ;;  %v2125_v59 = vmul.f32 %v3998_v36, %v4600_v31 }
 0x1b6   : > { %v1754_v42 = vsel %vm1162_vm4, %v1751_v20, %v1753_v7  ;;  %v1844_v45 = vadd.f32 %v1752_v1, %v1600_v0  ;;  %v1996_v55 = vsel %vm1407_vm5, %v1994_v5, %v1995_v40  ;;  %v1997_v50 = vrot.slane %v1888_v35, 2  ;;  %v4653_v7 = vld [vmem:[%s5464_s6] ss:$0 sm:$0xff] }
 0x1b7   : > { %v2198_v60 = vmul.f32 %v4000_v37, %v4592_v19  ;;  %v1845_v56 = vadd.f32 %v1754_v42, %v1601_v51  ;;  %v2199_v43 = vmul.f32 %v4000_v37, %v4600_v31  ;;  %v2200_v57 = vmul.f32 %v4000_v37, %v4606_v4 }
 0x1b8   : > { %v2442_v62 = vmul.f32 %v4002_v38, %v4592_v19  ;;  %v1998_v22 = vsel %vm1407_vm5, %v1995_v40, %v1997_v50  ;;  %v2088_v46 = vadd.f32 %v1996_v55, %v1844_v45  ;;  %v2443_v41 = vmul.f32 %v4002_v38, %v4600_v31 }
 0x1b9   : > { %v2306_v6 = vrot.slane %v2198_v60, 1  ;;  %v2089_v9 = vadd.f32 %v1998_v22, %v1845_v56  ;;  %v2307_v2 = vrot.slane %v2199_v43, 1  ;;  %v2309_v11 = vrot.slane %v2200_v57, 1  ;;  %v4667_v43 = vld [vmem:[#allocation2 + $0xd8] sm:$0xff] }
 0x1ba   : > { %v2444_v12 = vmul.f32 %v4002_v38, %v4606_v4  ;;  %v2156_v47 = vadd.f32 %v2124_v58, %v2088_v46  ;;  %v2550_v13 = vrot.slane %v2442_v62, 2  ;;  %v2551_v18 = vrot.slane %v2443_v41, 2 }
 0x1bb   : > { %v1012_v21 = vmul.f32 %v3987_v27, %v4522_v39  ;;  %v2157_v49 = vadd.f32 %v2125_v59, %v2089_v9  ;;  %v2308_v14 = vsel %vm1162_vm4, %v2306_v6, %v2307_v2  ;;  %v2310_v48 = vsel %vm1162_vm4, %v2307_v2, %v2309_v11  ;;  %v4673_v6 = vld [vmem:[#allocation2 + $0xe0] sm:$0xff] }
 0x1bc   : > { %v2553_v61 = vrot.slane %v2444_v12, 2  ;;  %v2400_v16 = vadd.f32 %v2308_v14, %v2156_v47  ;;  %v2552_v8 = vsel %vm1407_vm5, %v2550_v13, %v2551_v18  ;;  %v1013_v52 = vmul.f32 %v3987_v27, %v4530_v54 }
 0x1bd   : > { %v1087_v33 = vmul.f32 %v3989_v28, %v4522_v39  ;;  %v2401_v3 = vadd.f32 %v2310_v48, %v2157_v49  ;;  %v1088_v10 = vmul.f32 %v3989_v28, %v4530_v54  ;;  %v1089_v25 = vmul.f32 %v3989_v28, %v4537_v44 }
 0x1be   : > { %v2554_v63 = vsel %vm1407_vm5, %v2551_v18, %v2553_v61  ;;  %v2644_v26 = vadd.f32 %v2552_v8, %v2400_v16  ;;  %v1332_v32 = vmul.f32 %v3991_v29, %v4522_v39  ;;  %v1333_v34 = vmul.f32 %v3991_v29, %v4530_v54 }
 0x1bf   : > { %v1198_v15 = vrot.slane %v1087_v33, 1  ;;  %v2645_v53 = vadd.f32 %v2554_v63, %v2401_v3  ;;  %v1199_v17 = vrot.slane %v1088_v10, 1  ;;  %v1201_v0 = vrot.slane %v1089_v25, 1 }
 0x1c0   : > { %v1334_v20 = vmul.f32 %v3991_v29, %v4537_v44  ;;  %v2683_v35 = vadd.f32 %v4653_v7, %v2644_v26  ;;  %v1443_v5 = vrot.slane %v1332_v32, 2  ;;  %v1444_v40 = vrot.slane %v1333_v34, 2 }
 0x1c1   : > { %v1570_v39 = vmul.f32 %v3983_v23, %v4592_v19  ;;  %v2684_v54 = vadd.f32 %v4653_v7, %v2645_v53  ;;  %v1200_v58 = vsel %vm1162_vm4, %v1198_v15, %v1199_v17  ;;  %v1202_v51 = vsel %vm1162_vm4, %v1199_v17, %v1201_v0 }
 0x1c2   : > { %v1446_v1 = vrot.slane %v1334_v20, 2  ;;  %v2715_v44 = vmax.f32 %v2683_v35, 0.0  ;;  %v1289_v42 = vadd.f32 %v1200_v58, %v1012_v21  ;;  %v1290_v59 = vadd.f32 %v1202_v51, %v1013_v52  ;;  %v4680_v21 = vld [vmem:[#allocation2 + $0xe8] sm:$0x3] }
 0x1c3   : > { %v1445_v45 = vsel %vm1407_vm5, %v1443_v5, %v1444_v40  ;;  %v2716_v55 = vmax.f32 %v2684_v54, 0.0  ;;  %v1571_v60 = vmul.f32 %v3983_v23, %v4600_v31  ;;  %v1645_v56 = vmul.f32 %v3985_v24, %v4592_v19 }
 0x1c4   : > { %v1447_v50 = vsel %vm1407_vm5, %v1444_v40, %v1446_v1  ;;  %v1534_v57 = vadd.f32 %v1445_v45, %v1289_v42  ;;  %v1646_v22 = vmul.f32 %v3985_v24, %v4600_v31  ;;  %v1647_v46 = vmul.f32 %v3985_v24, %v4606_v4 }
 0x1c5   : > { %v1535_v62 = vadd.f32 %v1447_v50, %v1290_v59  ;;  %v2741_v41 = vpack.c.bf16 %v2716_v55, %v2715_v44  ;;  %v1755_v9 = vrot.slane %v1645_v56, 1  ;;  %v1889_v2 = vmul.f32 %v3993_v30, %v4592_v19 }
 0x1c6   : > { %v1890_v11 = vmul.f32 %v3993_v30, %v4600_v31  ;;  %v1602_v12 = vadd.f32 %v1570_v39, %v1534_v57  ;;  %v1756_v13 = vrot.slane %v1646_v22, 1  ;;  %v1758_v18 = vrot.slane %v1647_v46, 1 }
 0x1c7   : > { %v1603_v47 = vadd.f32 %v1571_v60, %v1535_v62  ;;  %3410 = vmatprep.mubr.msk.bf16.mxu1 %vm827_vm2, %v2741_v41  ;;  %v1891_v49 = vmul.f32 %v3993_v30, %v4606_v4  ;;  %v1999_v14 = vrot.slane %v1889_v2, 2  ;;  %v2126_v61 = vmul.f32 %v3998_v36, %v4667_v43 }
 0x1c8   : > { %v2000_v48 = vrot.slane %v1890_v11, 2  ;;  %v1757_v16 = vsel %vm1162_vm4, %v1755_v9, %v1756_v13  ;;  %v1759_v8 = vsel %vm1162_vm4, %v1756_v13, %v1758_v18  ;;  %v2127_v52 = vmul.f32 %v3998_v36, %v4673_v6 }
 0x1c9   : > { %v2201_v33 = vmul.f32 %v4000_v37, %v4667_v43  ;;  %v1846_v3 = vadd.f32 %v1757_v16, %v1602_v12  ;;  %v1847_v63 = vadd.f32 %v1759_v8, %v1603_v47  ;;  %v2002_v25 = vrot.slane %v1891_v49, 2 }
 0x1ca   : > { %v2001_v10 = vsel %vm1407_vm5, %v1999_v14, %v2000_v48  ;;  %v2202_v26 = vmul.f32 %v4000_v37, %v4673_v6  ;;  %v2203_v15 = vmul.f32 %v4000_v37, %v4680_v21  ;;  %v2445_v34 = vmul.f32 %v4002_v38, %v4667_v43 }
 0x1cb   : > { %v2311_v32 = vrot.slane %v2201_v33, 1  ;;  %v2003_v53 = vsel %vm1407_vm5, %v2000_v48, %v2002_v25  ;;  %v2090_v17 = vadd.f32 %v2001_v10, %v1846_v3  ;;  %v2446_v0 = vmul.f32 %v4002_v38, %v4673_v6 }
 0x1cc   : > { %v2447_v20 = vmul.f32 %v4002_v38, %v4680_v21  ;;  %v2091_v35 = vadd.f32 %v2003_v53, %v1847_v63  ;;  %v2312_v5 = vrot.slane %v2202_v26, 1  ;;  %v2314_v40 = vrot.slane %v2203_v15, 1  ;;  %v4738_v15 = vld [vmem:[#allocation2 + $0xf0] sm:$0xff] }
 0x1cd   : > { %v2555_v39 = vrot.slane %v2445_v34, 2  ;;  %v2158_v54 = vadd.f32 %v2126_v61, %v2090_v17  ;;  %v2556_v58 = vrot.slane %v2446_v0, 2  ;;  %v1014_v1 = vmul.f32 %v3987_v27, %v4592_v19  ;;  %v4744_v0 = vld [vmem:[#allocation2 + $0xf8] sm:$0xff] }
 0x1ce   : > { %v2558_v51 = vrot.slane %v2447_v20, 2  ;;  %v2159_v44 = vadd.f32 %v2127_v52, %v2091_v35  ;;  %v2313_v42 = vsel %vm1162_vm4, %v2311_v32, %v2312_v5  ;;  %v2315_v59 = vsel %vm1162_vm4, %v2312_v5, %v2314_v40 }
 0x1cf   : > { %v1015_v45 = vmul.f32 %v3987_v27, %v4600_v31  ;;  %v2402_v55 = vadd.f32 %v2313_v42, %v2158_v54  ;;  %v2557_v50 = vsel %vm1407_vm5, %v2555_v39, %v2556_v58  ;;  %v1090_v56 = vmul.f32 %v3989_v28, %v4592_v19 }
 0x1d0   : > { %v2559_v60 = vsel %vm1407_vm5, %v2556_v58, %v2558_v51  ;;  %v2403_v57 = vadd.f32 %v2315_v59, %v2159_v44  ;;  %v1091_v62 = vmul.f32 %v3989_v28, %v4600_v31  ;;  %v1092_v22 = vmul.f32 %v3989_v28, %v4606_v4 }
 0x1d1   : > { %v1335_v46 = vmul.f32 %v3991_v29, %v4592_v19  ;;  %v2646_v41 = vadd.f32 %v2557_v50, %v2402_v55  ;;  %v1203_v9 = vrot.slane %v1090_v56, 1  ;;  %v1336_v2 = vmul.f32 %v3991_v29, %v4600_v31 }
 0x1d2   : > { %v1337_v11 = vmul.f32 %v3991_v29, %v4606_v4  ;;  %v2647_v12 = vadd.f32 %v2559_v60, %v2403_v57  ;;  %v1204_v47 = vrot.slane %v1091_v62, 1  ;;  %v1206_v13 = vrot.slane %v1092_v22, 1 }
 0x1d3   : > { %v1448_v18 = vrot.slane %v1335_v46, 2  ;;  %v2685_v49 = vadd.f32 %v4653_v7, %v2646_v41  ;;  %v1449_v14 = vrot.slane %v1336_v2, 2  ;;  %v1572_v61 = vmul.f32 %v3983_v23, %v4667_v43 }
 0x1d4   : > { %v1451_v48 = vrot.slane %v1337_v11, 2  ;;  %v2686_v19 = vadd.f32 %v4653_v7, %v2647_v12  ;;  %v1205_v16 = vsel %vm1162_vm4, %v1203_v9, %v1204_v47  ;;  %v1207_v31 = vsel %vm1162_vm4, %v1204_v47, %v1206_v13 }
 0x1d5   : > { %v1573_v4 = vmul.f32 %v3983_v23, %v4673_v6  ;;  %v2717_v8 = vmax.f32 %v2685_v49, 0.0  ;;  %v1291_v52 = vadd.f32 %v1205_v16, %v1014_v1  ;;  %v1292_v33 = vadd.f32 %v1207_v31, %v1015_v45  ;;  %v4751_v1 = vld [vmem:[#allocation2 + $0x100] sm:$0x3] }
 0x1d6   : > { %v1450_v3 = vsel %vm1407_vm5, %v1448_v18, %v1449_v14  ;;  %v2718_v63 = vmax.f32 %v2686_v19, 0.0  ;;  %v1452_v10 = vsel %vm1407_vm5, %v1449_v14, %v1451_v48  ;;  %v1648_v25 = vmul.f32 %v3985_v24, %v4667_v43 }
 0x1d7   : > { %v1649_v26 = vmul.f32 %v3985_v24, %v4673_v6  ;;  %v1536_v32 = vadd.f32 %v1450_v3, %v1291_v52  ;;  %v1537_v34 = vadd.f32 %v1452_v10, %v1292_v33  ;;  %v1650_v53 = vmul.f32 %v3985_v24, %v4680_v21 }
 0x1d8   : > { %v1892_v17 = vmul.f32 %v3993_v30, %v4667_v43  ;;  %v2742_v20 = vpack.c.bf16 %v2718_v63, %v2717_v8  ;;  %v1760_v35 = vrot.slane %v1648_v25, 1  ;;  %v1893_v40 = vmul.f32 %v3993_v30, %v4673_v6 }
 0x1d9   : > { %v1761_v5 = vrot.slane %v1649_v26, 1  ;;  %v1604_v39 = vadd.f32 %v1572_v61, %v1536_v32  ;;  %v1605_v54 = vadd.f32 %v1573_v4, %v1537_v34  ;;  %v1763_v58 = vrot.slane %v1650_v53, 1 }
 0x1da   : > { %v1894_v51 = vmul.f32 %v3993_v30, %v4680_v21  ;;  %3411 = vmatmul.mubr.msk.bf16.gmra.mxu1 %vm827_vm2, %v2742_v20  ;;  %v2004_v42 = vrot.slane %v1892_v17, 2  ;;  %v2005_v59 = vrot.slane %v1893_v40, 2  ;;  %v2128_v45 = vmul.f32 %v3998_v36, %v4738_v15 }
 0x1db   : > { %v1762_v44 = vsel %vm1162_vm4, %v1760_v35, %v1761_v5  ;;  %v1764_v55 = vsel %vm1162_vm4, %v1761_v5, %v1763_v58  ;;  %v2129_v56 = vmul.f32 %v3998_v36, %v4744_v0  ;;  %v2204_v22 = vmul.f32 %v4000_v37, %v4738_v15 }
 0x1dc   : > { %v1848_v50 = vadd.f32 %v1762_v44, %v1604_v39  ;;  %v2007_v60 = vrot.slane %v1894_v51, 2  ;;  %v1849_v57 = vadd.f32 %v1764_v55, %v1605_v54  ;;  %v2006_v62 = vsel %vm1407_vm5, %v2004_v42, %v2005_v59 }
 0x1dd   : > { %v2205_v46 = vmul.f32 %v4000_v37, %v4744_v0  ;;  %v2206_v2 = vmul.f32 %v4000_v37, %v4751_v1  ;;  %v2448_v11 = vmul.f32 %v4002_v38, %v4738_v15  ;;  %v2316_v47 = vrot.slane %v2204_v22, 1 }
 0x1de   : > { %v2008_v41 = vsel %vm1407_vm5, %v2005_v59, %v2007_v60  ;;  %v2092_v9 = vadd.f32 %v2006_v62, %v1848_v50  ;;  %v2449_v18 = vmul.f32 %v4002_v38, %v4744_v0  ;;  %v2450_v48 = vmul.f32 %v4002_v38, %v4751_v1 }
 0x1df   : > { %v2093_v12 = vadd.f32 %v2008_v41, %v1849_v57  ;;  %v2317_v13 = vrot.slane %v2205_v46, 1  ;;  %v2319_v14 = vrot.slane %v2206_v2, 1  ;;  %v2560_v61 = vrot.slane %v2448_v11, 2  ;;  %v4809_v2 = vld [vmem:[#allocation2 + $0x110] sm:$0xff] }
 0x1e0   : > { %v2160_v49 = vadd.f32 %v2128_v45, %v2092_v9  ;;  %v2561_v31 = vrot.slane %v2449_v18, 2  ;;  %v1016_v4 = vmul.f32 %v3987_v27, %v4667_v43  ;;  %v2563_v33 = vrot.slane %v2450_v48, 2  ;;  %v4807_v9 = vld [vmem:[#allocation2 + $0x108] sm:$0xff] }
 0x1e1   : > { %v2161_v19 = vadd.f32 %v2129_v56, %v2093_v12  ;;  %v2318_v16 = vsel %vm1162_vm4, %v2316_v47, %v2317_v13  ;;  %v2320_v8 = vsel %vm1162_vm4, %v2317_v13, %v2319_v14  ;;  %v1017_v3 = vmul.f32 %v3987_v27, %v4673_v6 }
 0x1e2   : > { %v2404_v52 = vadd.f32 %v2318_v16, %v2160_v49  ;;  %v2562_v10 = vsel %vm1407_vm5, %v2560_v61, %v2561_v31  ;;  %v1093_v25 = vmul.f32 %v3989_v28, %v4667_v43  ;;  %v1094_v26 = vmul.f32 %v3989_v28, %v4673_v6  ;;  %v4818_v61 = vld [vmem:[#allocation2 + $0x118] sm:$0x3] }
 0x1e3   : > { %v2405_v63 = vadd.f32 %v2320_v8, %v2161_v19  ;;  %v2564_v32 = vsel %vm1407_vm5, %v2561_v31, %v2563_v33  ;;  %v1095_v53 = vmul.f32 %v3989_v28, %v4680_v21  ;;  %v1338_v17 = vmul.f32 %v3991_v29, %v4667_v43 }
 0x1e4   : > { %v2648_v34 = vadd.f32 %v2562_v10, %v2404_v52  ;;  %v1208_v35 = vrot.slane %v1093_v25, 1  ;;  %v1209_v5 = vrot.slane %v1094_v26, 1  ;;  %v1339_v40 = vmul.f32 %v3991_v29, %v4673_v6 }
 0x1e5   : > { %v2649_v20 = vadd.f32 %v2564_v32, %v2405_v63  ;;  %v1211_v54 = vrot.slane %v1095_v53, 1  ;;  %v1340_v58 = vmul.f32 %v3991_v29, %v4680_v21  ;;  %v1453_v51 = vrot.slane %v1338_v17, 2 }
 0x1e6   : > { %v2687_v39 = vadd.f32 %v4653_v7, %v2648_v34  ;;  %v1210_v42 = vsel %vm1162_vm4, %v1208_v35, %v1209_v5  ;;  %v1454_v59 = vrot.slane %v1339_v40, 2  ;;  %v1574_v43 = vmul.f32 %v3983_v23, %v4738_v15 }
 0x1e7   : > { %v2688_v44 = vadd.f32 %v4653_v7, %v2649_v20  ;;  %v1212_v55 = vsel %vm1162_vm4, %v1209_v5, %v1211_v54  ;;  %v1293_v50 = vadd.f32 %v1210_v42, %v1016_v4  ;;  %v1456_v6 = vrot.slane %v1340_v58, 2 }
 0x1e8   : > { %v2719_v45 = vmax.f32 %v2687_v39, 0.0  ;;  %v1294_v56 = vadd.f32 %v1212_v55, %v1017_v3  ;;  %v1455_v57 = vsel %vm1407_vm5, %v1453_v51, %v1454_v59  ;;  %v1575_v21 = vmul.f32 %v3983_v23, %v4744_v0 }
 0x1e9   : > { %v2720_v60 = vmax.f32 %v2688_v44, 0.0  ;;  %v1457_v62 = vsel %vm1407_vm5, %v1454_v59, %v1456_v6  ;;  %v1538_v22 = vadd.f32 %v1455_v57, %v1293_v50  ;;  %v1651_v46 = vmul.f32 %v3985_v24, %v4738_v15 }
 0x1ea   : > { %v1652_v41 = vmul.f32 %v3985_v24, %v4744_v0  ;;  %v1539_v12 = vadd.f32 %v1457_v62, %v1294_v56  ;;  %v1653_v47 = vmul.f32 %v3985_v24, %v4751_v1  ;;  %v1895_v13 = vmul.f32 %v3993_v30, %v4738_v15 }
 0x1eb   : > { %v2743_v11 = vpack.c.bf16 %v2720_v60, %v2719_v45  ;;  %v1606_v18 = vadd.f32 %v1574_v43, %v1538_v22  ;;  %v1765_v49 = vrot.slane %v1651_v46, 1  ;;  %v1896_v48 = vmul.f32 %v3993_v30, %v4744_v0 }
 0x1ec   : > { %v1766_v14 = vrot.slane %v1652_v41, 1  ;;  %v1607_v19 = vadd.f32 %v1575_v21, %v1539_v12  ;;  %v1768_v16 = vrot.slane %v1653_v47, 1  ;;  %v1897_v31 = vmul.f32 %v3993_v30, %v4751_v1 }
 0x1ed   : > { %3414 = vmatprep.mubr.msk.bf16.mxu1 %vm827_vm2, %v2743_v11  ;;  %v2009_v4 = vrot.slane %v1895_v13, 2  ;;  %v2010_v52 = vrot.slane %v1896_v48, 2  ;;  %v2130_v33 = vmul.f32 %v3998_v36, %v4807_v9  ;;  %v2131_v3 = vmul.f32 %v3998_v36, %v4809_v2 }
 0x1ee   : > { %v1767_v8 = vsel %vm1162_vm4, %v1765_v49, %v1766_v14  ;;  %v1769_v63 = vsel %vm1162_vm4, %v1766_v14, %v1768_v16  ;;  %v2012_v25 = vrot.slane %v1897_v31, 2  ;;  %v2207_v26 = vmul.f32 %v4000_v37, %v4807_v9 }
 0x1ef   : > { %v1850_v10 = vadd.f32 %v1767_v8, %v1606_v18  ;;  %v1851_v32 = vadd.f32 %v1769_v63, %v1607_v19  ;;  %v2011_v34 = vsel %vm1407_vm5, %v2009_v4, %v2010_v52  ;;  %v2208_v53 = vmul.f32 %v4000_v37, %v4809_v2 }
 0x1f0   : > { %v2209_v17 = vmul.f32 %v4000_v37, %v4818_v61  ;;  %v2013_v20 = vsel %vm1407_vm5, %v2010_v52, %v2012_v25  ;;  %v2321_v5 = vrot.slane %v2207_v26, 1  ;;  %v2451_v40 = vmul.f32 %v4002_v38, %v4807_v9 }
 0x1f1   : > { %v2094_v35 = vadd.f32 %v2011_v34, %v1850_v10  ;;  %v2095_v39 = vadd.f32 %v2013_v20, %v1851_v32  ;;  %v2322_v54 = vrot.slane %v2208_v53, 1  ;;  %v2452_v51 = vmul.f32 %v4002_v38, %v4809_v2  ;;  %v4873_v34 = vld [vmem:[#allocation2 + $0x120] sm:$0xff] }
 0x1f2   : > { %v2324_v58 = vrot.slane %v2209_v17, 1  ;;  %v2453_v42 = vmul.f32 %v4002_v38, %v4818_v61  ;;  %v2565_v59 = vrot.slane %v2451_v40, 2  ;;  %v1018_v43 = vmul.f32 %v3987_v27, %v4738_v15 }
 0x1f3   : > { %v2162_v44 = vadd.f32 %v2130_v33, %v2094_v35  ;;  %v2163_v45 = vadd.f32 %v2131_v3, %v2095_v39  ;;  %v2323_v55 = vsel %vm1162_vm4, %v2321_v5, %v2322_v54  ;;  %v2566_v6 = vrot.slane %v2452_v51, 2  ;;  %v4880_v5 = vld [vmem:[#allocation2 + $0x128] sm:$0xff] }
 0x1f4   : > { %v2325_v50 = vsel %vm1162_vm4, %v2322_v54, %v2324_v58  ;;  %v2568_v56 = vrot.slane %v2453_v42, 2  ;;  %v1019_v57 = vmul.f32 %v3987_v27, %v4744_v0  ;;  %v1096_v21 = vmul.f32 %v3989_v28, %v4738_v15 }
 0x1f5   : > { %v2406_v60 = vadd.f32 %v2323_v55, %v2162_v44  ;;  %v2407_v62 = vadd.f32 %v2325_v50, %v2163_v45  ;;  %v2567_v22 = vsel %vm1407_vm5, %v2565_v59, %v2566_v6  ;;  %v1097_v46 = vmul.f32 %v3989_v28, %v4744_v0 }
 0x1f6   : > { %v1098_v41 = vmul.f32 %v3989_v28, %v4751_v1  ;;  %v2569_v11 = vsel %vm1407_vm5, %v2566_v6, %v2568_v56  ;;  %v1213_v47 = vrot.slane %v1096_v21, 1  ;;  %v1341_v13 = vmul.f32 %v3991_v29, %v4738_v15 }
 0x1f7   : > { %v2650_v12 = vadd.f32 %v2567_v22, %v2406_v60  ;;  %v2651_v18 = vadd.f32 %v2569_v11, %v2407_v62  ;;  %v1214_v49 = vrot.slane %v1097_v46, 1  ;;  %v1342_v48 = vmul.f32 %v3991_v29, %v4744_v0 }
 0x1f8   : > { %v1216_v14 = vrot.slane %v1098_v41, 1  ;;  %v1343_v16 = vmul.f32 %v3991_v29, %v4751_v1  ;;  %v1458_v31 = vrot.slane %v1341_v13, 2  ;;  %v1576_v4 = vmul.f32 %v3983_v23, %v4807_v9 }
 0x1f9   : > { %v2689_v19 = vadd.f32 %v4653_v7, %v2650_v12  ;;  %v2690_v8 = vadd.f32 %v4653_v7, %v2651_v18  ;;  %v1215_v52 = vsel %vm1162_vm4, %v1213_v47, %v1214_v49  ;;  %v1459_v33 = vrot.slane %v1342_v48, 2 }
 0x1fa   : > { %v1217_v15 = vsel %vm1162_vm4, %v1214_v49, %v1216_v14  ;;  %v1295_v63 = vadd.f32 %v1215_v52, %v1018_v43  ;;  %v1461_v0 = vrot.slane %v1343_v16, 2  ;;  %v1577_v1 = vmul.f32 %v3983_v23, %v4809_v2  ;;  %v4887_v43 = vld [vmem:[#allocation2 + $0x130] sm:$0x3] }
 0x1fb   : > { %v2721_v3 = vmax.f32 %v2689_v19, 0.0  ;;  %v1296_v10 = vadd.f32 %v1217_v15, %v1019_v57  ;;  %v2722_v25 = vmax.f32 %v2690_v8, 0.0  ;;  %v1460_v26 = vsel %vm1407_vm5, %v1458_v31, %v1459_v33 }
 0x1fc   : > { %v1654_v32 = vmul.f32 %v3985_v24, %v4807_v9  ;;  %v1462_v53 = vsel %vm1407_vm5, %v1459_v33, %v1461_v0  ;;  %v1540_v17 = vadd.f32 %v1460_v26, %v1295_v63  ;;  %v1655_v20 = vmul.f32 %v3985_v24, %v4809_v2 }
 0x1fd   : > { %v1656_v35 = vmul.f32 %v3985_v24, %v4818_v61  ;;  %v2744_v40 = vpack.c.bf16 %v2722_v25, %v2721_v3  ;;  %v1541_v39 = vadd.f32 %v1462_v53, %v1296_v10  ;;  %v1898_v58 = vmul.f32 %v3993_v30, %v4807_v9 }
 0x1fe   : > { %v1770_v54 = vrot.slane %v1654_v32, 1  ;;  %v1608_v51 = vadd.f32 %v1576_v4, %v1540_v17  ;;  %v1771_v44 = vrot.slane %v1655_v20, 1  ;;  %v1899_v59 = vmul.f32 %v3993_v30, %v4809_v2 }
 0x1ff   : > { %v1773_v42 = vrot.slane %v1656_v35, 1  ;;  %3415 = vmatmul.mubr.msk.bf16.gmra.mxu1 %vm827_vm2, %v2744_v40  ;;  %v1609_v45 = vadd.f32 %v1577_v1, %v1541_v39  ;;  %v1900_v55 = vmul.f32 %v3993_v30, %v4818_v61  ;;  %v2014_v50 = vrot.slane %v1898_v58, 2 }
 0x200   : > { %v2132_v6 = vmul.f32 %v3998_v36, %v4873_v34  ;;  %v1772_v60 = vsel %vm1162_vm4, %v1770_v54, %v1771_v44  ;;  %v2015_v57 = vrot.slane %v1899_v59, 2  ;;  %v2133_v21 = vmul.f32 %v3998_v36, %v4880_v5 }
 0x201   : > { %v1774_v56 = vsel %vm1162_vm4, %v1771_v44, %v1773_v42  ;;  %v1852_v62 = vadd.f32 %v1772_v60, %v1608_v51  ;;  %v2017_v46 = vrot.slane %v1900_v55, 2  ;;  %v2210_v41 = vmul.f32 %v4000_v37, %v4873_v34 }
 0x202   : > { %v1853_v22 = vadd.f32 %v1774_v56, %v1609_v45  ;;  %v2016_v11 = vsel %vm1407_vm5, %v2014_v50, %v2015_v57  ;;  %v2211_v12 = vmul.f32 %v4000_v37, %v4880_v5  ;;  %v2212_v47 = vmul.f32 %v4000_v37, %v4887_v43 }
 0x203   : > { %v2454_v13 = vmul.f32 %v4002_v38, %v4873_v34  ;;  %v2018_v18 = vsel %vm1407_vm5, %v2015_v57, %v2017_v46  ;;  %v2096_v49 = vadd.f32 %v2016_v11, %v1852_v62  ;;  %v2326_v14 = vrot.slane %v2210_v41, 1 }
 0x204   : > { %v2455_v48 = vmul.f32 %v4002_v38, %v4880_v5  ;;  %v2097_v19 = vadd.f32 %v2018_v18, %v1853_v22  ;;  %v2327_v16 = vrot.slane %v2211_v12, 1  ;;  %v2329_v31 = vrot.slane %v2212_v47, 1  ;;  %v4943_v12 = vld [vmem:[#allocation2 + $0x138] sm:$0xff] }
 0x205   : > { %v2456_v4 = vmul.f32 %v4002_v38, %v4887_v43  ;;  %v2164_v8 = vadd.f32 %v2132_v6, %v2096_v49  ;;  %v2570_v52 = vrot.slane %v2454_v13, 2  ;;  %v1020_v33 = vmul.f32 %v3987_v27, %v4807_v9 }
 0x206   : > { %v2571_v15 = vrot.slane %v2455_v48, 2  ;;  %v2165_v3 = vadd.f32 %v2133_v21, %v2097_v19  ;;  %v2328_v63 = vsel %vm1162_vm4, %v2326_v14, %v2327_v16  ;;  %v2330_v10 = vsel %vm1162_vm4, %v2327_v16, %v2329_v31  ;;  %v4949_v14 = vld [vmem:[#allocation2 + $0x140] sm:$0xff] }
 0x207   : > { %v2573_v0 = vrot.slane %v2456_v4, 2  ;;  %v2408_v25 = vadd.f32 %v2328_v63, %v2164_v8  ;;  %v1021_v1 = vmul.f32 %v3987_v27, %v4809_v2  ;;  %v1099_v32 = vmul.f32 %v3989_v28, %v4807_v9 }
 0x208   : > { %v2572_v26 = vsel %vm1407_vm5, %v2570_v52, %v2571_v15  ;;  %v2409_v53 = vadd.f32 %v2330_v10, %v2165_v3  ;;  %v1100_v20 = vmul.f32 %v3989_v28, %v4809_v2  ;;  %v1101_v35 = vmul.f32 %v3989_v28, %v4818_v61 }
 0x209   : > { %v2574_v17 = vsel %vm1407_vm5, %v2571_v15, %v2573_v0  ;;  %v2652_v40 = vadd.f32 %v2572_v26, %v2408_v25  ;;  %v1218_v39 = vrot.slane %v1099_v32, 1  ;;  %v1344_v54 = vmul.f32 %v3991_v29, %v4807_v9 }
 0x20a   : > { %v1345_v58 = vmul.f32 %v3991_v29, %v4809_v2  ;;  %v2653_v51 = vadd.f32 %v2574_v17, %v2409_v53  ;;  %v1219_v44 = vrot.slane %v1100_v20, 1  ;;  %v1221_v42 = vrot.slane %v1101_v35, 1 }
 0x20b   : > { %v1346_v59 = vmul.f32 %v3991_v29, %v4818_v61  ;;  %v2691_v45 = vadd.f32 %v4653_v7, %v2652_v40  ;;  %v1463_v55 = vrot.slane %v1344_v54, 2  ;;  %v1578_v6 = vmul.f32 %v3983_v23, %v4873_v34 }
 0x20c   : > { %v1464_v50 = vrot.slane %v1345_v58, 2  ;;  %v2692_v60 = vadd.f32 %v4653_v7, %v2653_v51  ;;  %v1220_v9 = vsel %vm1162_vm4, %v1218_v39, %v1219_v44  ;;  %v1222_v56 = vsel %vm1162_vm4, %v1219_v44, %v1221_v42 }
 0x20d   : > { %v1466_v2 = vrot.slane %v1346_v59, 2  ;;  %v2723_v57 = vmax.f32 %v2691_v45, 0.0  ;;  %v1297_v21 = vadd.f32 %v1220_v9, %v1020_v33  ;;  %v1298_v62 = vadd.f32 %v1222_v56, %v1021_v1  ;;  %v4956_v33 = vld [vmem:[#allocation2 + $0x148] sm:$0x3] }
 0x20e   : > { %v1465_v22 = vsel %vm1407_vm5, %v1463_v55, %v1464_v50  ;;  %v2724_v61 = vmax.f32 %v2692_v60, 0.0  ;;  %v1579_v41 = vmul.f32 %v3983_v23, %v4880_v5  ;;  %v1657_v11 = vmul.f32 %v3985_v24, %v4873_v34 }
 0x20f   : > { %v1467_v46 = vsel %vm1407_vm5, %v1464_v50, %v1466_v2  ;;  %v1542_v47 = vadd.f32 %v1465_v22, %v1297_v21  ;;  %v1658_v18 = vmul.f32 %v3985_v24, %v4880_v5  ;;  %v1659_v49 = vmul.f32 %v3985_v24, %v4887_v43 }
 0x210   : > { %v1543_v13 = vadd.f32 %v1467_v46, %v1298_v62  ;;  %v2745_v48 = vpack.c.bf16 %v2724_v61, %v2723_v57  ;;  %v1775_v19 = vrot.slane %v1657_v11, 1  ;;  %v1901_v16 = vmul.f32 %v3993_v30, %v4873_v34 }
 0x211   : > { %v1902_v31 = vmul.f32 %v3993_v30, %v4880_v5  ;;  %v1610_v4 = vadd.f32 %v1578_v6, %v1542_v47  ;;  %v1776_v52 = vrot.slane %v1658_v18, 1  ;;  %v1778_v15 = vrot.slane %v1659_v49, 1 }
 0x212   : > { %v1611_v8 = vadd.f32 %v1579_v41, %v1543_v13  ;;  %3418 = vmatprep.mubr.msk.bf16.mxu1 %vm827_vm2, %v2745_v48  ;;  %v1903_v3 = vmul.f32 %v3993_v30, %v4887_v43  ;;  %v2019_v63 = vrot.slane %v1901_v16, 2  ;;  %v2134_v0 = vmul.f32 %v3998_v36, %v4943_v12 }
 0x213   : > { %v2020_v10 = vrot.slane %v1902_v31, 2  ;;  %v1777_v25 = vsel %vm1162_vm4, %v1775_v19, %v1776_v52  ;;  %v1779_v26 = vsel %vm1162_vm4, %v1776_v52, %v1778_v15  ;;  %v2135_v1 = vmul.f32 %v3998_v36, %v4949_v14 }
 0x214   : > { %v2213_v32 = vmul.f32 %v4000_v37, %v4943_v12  ;;  %v1854_v53 = vadd.f32 %v1777_v25, %v1610_v4  ;;  %v1855_v17 = vadd.f32 %v1779_v26, %v1611_v8  ;;  %v2022_v35 = vrot.slane %v1903_v3, 2 }
 0x215   : > { %v2021_v20 = vsel %vm1407_vm5, %v2019_v63, %v2020_v10  ;;  %v2214_v40 = vmul.f32 %v4000_v37, %v4949_v14  ;;  %v2215_v39 = vmul.f32 %v4000_v37, %v4956_v33  ;;  %v2457_v58 = vmul.f32 %v4002_v38, %v4943_v12 }
 0x216   : > { %v2331_v54 = vrot.slane %v2213_v32, 1  ;;  %v2023_v51 = vsel %vm1407_vm5, %v2020_v10, %v2022_v35  ;;  %v2098_v44 = vadd.f32 %v2021_v20, %v1854_v53  ;;  %v2458_v42 = vmul.f32 %v4002_v38, %v4949_v14 }
 0x217   : > { %v2459_v59 = vmul.f32 %v4002_v38, %v4956_v33  ;;  %v2099_v45 = vadd.f32 %v2023_v51, %v1855_v17  ;;  %v2332_v55 = vrot.slane %v2214_v40, 1  ;;  %v2334_v50 = vrot.slane %v2215_v39, 1  ;;  %v5014_v39 = vld [vmem:[#allocation2 + $0x150] sm:$0xff] }
 0x218   : > { %v2575_v6 = vrot.slane %v2457_v58, 2  ;;  %v2166_v60 = vadd.f32 %v2134_v0, %v2098_v44  ;;  %v2576_v9 = vrot.slane %v2458_v42, 2  ;;  %v1022_v2 = vmul.f32 %v3987_v27, %v4873_v34  ;;  %v5020_v42 = vld [vmem:[#allocation2 + $0x158] sm:$0xff] }
 0x219   : > { %v2578_v56 = vrot.slane %v2459_v59, 2  ;;  %v2167_v57 = vadd.f32 %v2135_v1, %v2099_v45  ;;  %v2333_v21 = vsel %vm1162_vm4, %v2331_v54, %v2332_v55  ;;  %v2335_v62 = vsel %vm1162_vm4, %v2332_v55, %v2334_v50 }
 0x21a   : > { %v1023_v22 = vmul.f32 %v3987_v27, %v4880_v5  ;;  %v2410_v61 = vadd.f32 %v2333_v21, %v2166_v60  ;;  %v2577_v46 = vsel %vm1407_vm5, %v2575_v6, %v2576_v9  ;;  %v1102_v11 = vmul.f32 %v3989_v28, %v4873_v34 }
 0x21b   : > { %v2579_v41 = vsel %vm1407_vm5, %v2576_v9, %v2578_v56  ;;  %v2411_v47 = vadd.f32 %v2335_v62, %v2167_v57  ;;  %v1103_v13 = vmul.f32 %v3989_v28, %v4880_v5  ;;  %v1104_v18 = vmul.f32 %v3989_v28, %v4887_v43 }
 0x21c   : > { %v1347_v49 = vmul.f32 %v3991_v29, %v4873_v34  ;;  %v2654_v48 = vadd.f32 %v2577_v46, %v2410_v61  ;;  %v1223_v19 = vrot.slane %v1102_v11, 1  ;;  %v1348_v16 = vmul.f32 %v3991_v29, %v4880_v5 }
 0x21d   : > { %v1349_v31 = vmul.f32 %v3991_v29, %v4887_v43  ;;  %v2655_v4 = vadd.f32 %v2579_v41, %v2411_v47  ;;  %v1224_v8 = vrot.slane %v1103_v13, 1  ;;  %v1226_v52 = vrot.slane %v1104_v18, 1 }
 0x21e   : > { %v1468_v15 = vrot.slane %v1347_v49, 2  ;;  %v2693_v3 = vadd.f32 %v4653_v7, %v2654_v48  ;;  %v1469_v63 = vrot.slane %v1348_v16, 2  ;;  %v1580_v0 = vmul.f32 %v3983_v23, %v4943_v12 }
 0x21f   : > { %v1471_v10 = vrot.slane %v1349_v31, 2  ;;  %v2694_v34 = vadd.f32 %v4653_v7, %v2655_v4  ;;  %v1225_v25 = vsel %vm1162_vm4, %v1223_v19, %v1224_v8  ;;  %v1227_v5 = vsel %vm1162_vm4, %v1224_v8, %v1226_v52 }
 0x220   : > { %v1581_v43 = vmul.f32 %v3983_v23, %v4949_v14  ;;  %v2725_v26 = vmax.f32 %v2693_v3, 0.0  ;;  %v1299_v1 = vadd.f32 %v1225_v25, %v1022_v2  ;;  %v1300_v32 = vadd.f32 %v1227_v5, %v1023_v22  ;;  %v5027_v2 = vld [vmem:[#allocation2 + $0x160] sm:$0x3] }
 0x221   : > { %v1470_v53 = vsel %vm1407_vm5, %v1468_v15, %v1469_v63  ;;  %v2726_v17 = vmax.f32 %v2694_v34, 0.0  ;;  %v1472_v20 = vsel %vm1407_vm5, %v1469_v63, %v1471_v10  ;;  %v1660_v35 = vmul.f32 %v3985_v24, %v4943_v12 }
 0x222   : > { %v1661_v40 = vmul.f32 %v3985_v24, %v4949_v14  ;;  %v1544_v54 = vadd.f32 %v1470_v53, %v1299_v1  ;;  %v1545_v58 = vadd.f32 %v1472_v20, %v1300_v32  ;;  %v1662_v51 = vmul.f32 %v3985_v24, %v4956_v33 }
 0x223   : > { %v1904_v44 = vmul.f32 %v3993_v30, %v4943_v12  ;;  %v2746_v59 = vpack.c.bf16 %v2726_v17, %v2725_v26  ;;  %v1780_v45 = vrot.slane %v1660_v35, 1  ;;  %v1905_v50 = vmul.f32 %v3993_v30, %v4949_v14 }
 0x224   : > { %v1781_v55 = vrot.slane %v1661_v40, 1  ;;  %v1612_v6 = vadd.f32 %v1580_v0, %v1544_v54  ;;  %v1613_v60 = vadd.f32 %v1581_v43, %v1545_v58  ;;  %v1783_v9 = vrot.slane %v1662_v51, 1 }
 0x225   : > { %v1906_v56 = vmul.f32 %v3993_v30, %v4956_v33  ;;  %3419 = vmatmul.mubr.msk.bf16.gmra.mxu1 %vm827_vm2, %v2746_v59  ;;  %v2024_v21 = vrot.slane %v1904_v44, 2  ;;  %v2025_v62 = vrot.slane %v1905_v50, 2  ;;  %v2136_v22 = vmul.f32 %v3998_v36, %v5014_v39 }
 0x226   : > { %v1782_v57 = vsel %vm1162_vm4, %v1780_v45, %v1781_v55  ;;  %v1784_v61 = vsel %vm1162_vm4, %v1781_v55, %v1783_v9  ;;  %v2137_v11 = vmul.f32 %v3998_v36, %v5020_v42  ;;  %v2216_v18 = vmul.f32 %v4000_v37, %v5014_v39 }
 0x227   : > { %v1856_v46 = vadd.f32 %v1782_v57, %v1612_v6  ;;  %v2027_v41 = vrot.slane %v1906_v56, 2  ;;  %v1857_v47 = vadd.f32 %v1784_v61, %v1613_v60  ;;  %v2026_v13 = vsel %vm1407_vm5, %v2024_v21, %v2025_v62 }
 0x228   : > { %v2217_v49 = vmul.f32 %v4000_v37, %v5020_v42  ;;  %v2218_v16 = vmul.f32 %v4000_v37, %v5027_v2  ;;  %v2460_v31 = vmul.f32 %v4002_v38, %v5014_v39  ;;  %v2336_v8 = vrot.slane %v2216_v18, 1 }
 0x229   : > { %v2028_v48 = vsel %vm1407_vm5, %v2025_v62, %v2027_v41  ;;  %v2100_v19 = vadd.f32 %v2026_v13, %v1856_v46  ;;  %v2461_v15 = vmul.f32 %v4002_v38, %v5020_v42  ;;  %v2462_v10 = vmul.f32 %v4002_v38, %v5027_v2 }
 0x22a   : > { %v2101_v4 = vadd.f32 %v2028_v48, %v1857_v47  ;;  %v2337_v52 = vrot.slane %v2217_v49, 1  ;;  %v2339_v63 = vrot.slane %v2218_v16, 1  ;;  %v2580_v0 = vrot.slane %v2460_v31, 2  ;;  %v5083_v48 = vld [vmem:[#allocation2 + $0x168] sm:$0xff] }
 0x22b   : > { %v2168_v3 = vadd.f32 %v2136_v22, %v2100_v19  ;;  %v2581_v5 = vrot.slane %v2461_v15, 2  ;;  %v1024_v43 = vmul.f32 %v3987_v27, %v4943_v12  ;;  %v2583_v32 = vrot.slane %v2462_v10, 2  ;;  %v5085_v19 = vld [vmem:[#allocation2 + $0x170] sm:$0xff]  ;;  %v5094_v10 = vld [vmem:[#allocation2 + $0x178] sm:$0x3] }
 0x22c   : > { %v2169_v34 = vadd.f32 %v2137_v11, %v2101_v4  ;;  %v2338_v25 = vsel %vm1162_vm4, %v2336_v8, %v2337_v52  ;;  %v2340_v26 = vsel %vm1162_vm4, %v2337_v52, %v2339_v63  ;;  %v1025_v53 = vmul.f32 %v3987_v27, %v4949_v14 }
 0x22d   : > { %v2412_v1 = vadd.f32 %v2338_v25, %v2168_v3  ;;  %v2582_v20 = vsel %vm1407_vm5, %v2580_v0, %v2581_v5  ;;  %v1105_v35 = vmul.f32 %v3989_v28, %v4943_v12  ;;  %v1106_v40 = vmul.f32 %v3989_v28, %v4949_v14 }
 0x22e   : > { %v2413_v17 = vadd.f32 %v2340_v26, %v2169_v34  ;;  %v2584_v54 = vsel %vm1407_vm5, %v2581_v5, %v2583_v32  ;;  %v1107_v51 = vmul.f32 %v3989_v28, %v4956_v33  ;;  %v1350_v44 = vmul.f32 %v3991_v29, %v4943_v12 }
 0x22f   : > { %v2656_v58 = vadd.f32 %v2582_v20, %v2412_v1  ;;  %v1228_v45 = vrot.slane %v1105_v35, 1  ;;  %v1229_v55 = vrot.slane %v1106_v40, 1  ;;  %v1351_v50 = vmul.f32 %v3991_v29, %v4949_v14 }
 0x230   : > { %v2657_v59 = vadd.f32 %v2584_v54, %v2413_v17  ;;  %v1231_v60 = vrot.slane %v1107_v51, 1  ;;  %v1352_v9 = vmul.f32 %v3991_v29, %v4956_v33  ;;  %v1473_v56 = vrot.slane %v1350_v44, 2 }
 0x231   : > { %v2695_v6 = vadd.f32 %v4653_v7, %v2656_v58  ;;  %v1230_v21 = vsel %vm1162_vm4, %v1228_v45, %v1229_v55  ;;  %v1474_v62 = vrot.slane %v1351_v50, 2  ;;  %v1582_v12 = vmul.f32 %v3983_v23, %v5014_v39 }
 0x232   : > { %v2696_v57 = vadd.f32 %v4653_v7, %v2657_v59  ;;  %v1232_v61 = vsel %vm1162_vm4, %v1229_v55, %v1231_v60  ;;  %v1301_v46 = vadd.f32 %v1230_v21, %v1024_v43  ;;  %v1476_v14 = vrot.slane %v1352_v9, 2 }
 0x233   : > { %v2727_v22 = vmax.f32 %v2695_v6, 0.0  ;;  %v1302_v11 = vadd.f32 %v1232_v61, %v1025_v53  ;;  %v1475_v47 = vsel %vm1407_vm5, %v1473_v56, %v1474_v62  ;;  %v1583_v33 = vmul.f32 %v3983_v23, %v5020_v42 }
 0x234   : > { %v2728_v41 = vmax.f32 %v2696_v57, 0.0  ;;  %v1477_v7 = vsel %vm1407_vm5, %v1474_v62, %v1476_v14  ;;  %v1546_v13 = vadd.f32 %v1475_v47, %v1301_v46  ;;  %v1663_v18 = vmul.f32 %v3985_v24, %v5014_v39 }
 0x235   : > { %v1664_v49 = vmul.f32 %v3985_v24, %v5020_v42  ;;  %v1547_v31 = vadd.f32 %v1477_v7, %v1302_v11  ;;  %v1665_v4 = vmul.f32 %v3985_v24, %v5027_v2  ;;  %v1907_v8 = vmul.f32 %v3993_v30, %v5014_v39 }
 0x236   : > { %v2747_v16 = vpack.c.bf16 %v2728_v41, %v2727_v22  ;;  %v1614_v52 = vadd.f32 %v1582_v12, %v1546_v13  ;;  %v1785_v15 = vrot.slane %v1663_v18, 1  ;;  %v1908_v63 = vmul.f32 %v3993_v30, %v5020_v42 }
 0x237   : > { %v1786_v3 = vrot.slane %v1664_v49, 1  ;;  %v1615_v0 = vadd.f32 %v1583_v33, %v1547_v31  ;;  %v1788_v34 = vrot.slane %v1665_v4, 1  ;;  %v1909_v25 = vmul.f32 %v3993_v30, %v5027_v2 }
 0x238   : > { %3422 = vmatprep.mubr.msk.bf16.mxu1 %vm827_vm2, %v2747_v16  ;;  %v2029_v5 = vrot.slane %v1907_v8, 2  ;;  %v2030_v26 = vrot.slane %v1908_v63, 2  ;;  %v2138_v1 = vmul.f32 %v3998_v36, %v5083_v48  ;;  %v2139_v32 = vmul.f32 %v3998_v36, %v5085_v19  ;;  %v5139_v63 = vld [vmem:[%s5464_s6] ss:$0 sm:$0xff] }
 0x239   : > { %v1787_v43 = vsel %vm1162_vm4, %v1785_v15, %v1786_v3  ;;  %v1789_v53 = vsel %vm1162_vm4, %v1786_v3, %v1788_v34  ;;  %v2032_v20 = vrot.slane %v1909_v25, 2  ;;  %v2219_v35 = vmul.f32 %v4000_v37, %v5083_v48 }
 0x23a   : > { %v1858_v17 = vadd.f32 %v1787_v43, %v1614_v52  ;;  %v1859_v40 = vadd.f32 %v1789_v53, %v1615_v0  ;;  %v2031_v54 = vsel %vm1407_vm5, %v2029_v5, %v2030_v26  ;;  %v2220_v58 = vmul.f32 %v4000_v37, %v5085_v19 }
 0x23b   : > { %v2221_v51 = vmul.f32 %v4000_v37, %v5094_v10  ;;  %v2033_v44 = vsel %vm1407_vm5, %v2030_v26, %v2032_v20  ;;  %v2341_v45 = vrot.slane %v2219_v35, 1  ;;  %v2463_v55 = vmul.f32 %v4002_v38, %v5083_v48 }
 0x23c   : > { %v2102_v59 = vadd.f32 %v2031_v54, %v1858_v17  ;;  %v2103_v50 = vadd.f32 %v2033_v44, %v1859_v40  ;;  %v2342_v6 = vrot.slane %v2220_v58, 1  ;;  %v2464_v9 = vmul.f32 %v4002_v38, %v5085_v19  ;;  %v5154_v54 = vld [vmem:[#allocation2 + $0x180] sm:$0xff] }
 0x23d   : > { %v2344_v60 = vrot.slane %v2221_v51, 1  ;;  %v2465_v57 = vmul.f32 %v4002_v38, %v5094_v10  ;;  %v2585_v21 = vrot.slane %v2463_v55, 2  ;;  %v1026_v62 = vmul.f32 %v3987_v27, %v5014_v39  ;;  %v5161_v55 = vld [vmem:[#allocation2 + $0x188] sm:$0xff] }
 0x23e   : > { %v2170_v56 = vadd.f32 %v2138_v1, %v2102_v59  ;;  %v2171_v12 = vadd.f32 %v2139_v32, %v2103_v50  ;;  %v2343_v22 = vsel %vm1162_vm4, %v2341_v45, %v2342_v6  ;;  %v2586_v46 = vrot.slane %v2464_v9, 2 }
 0x23f   : > { %v2345_v61 = vsel %vm1162_vm4, %v2342_v6, %v2344_v60  ;;  %v2588_v41 = vrot.slane %v2465_v57, 2  ;;  %v1027_v11 = vmul.f32 %v3987_v27, %v5020_v42  ;;  %v1108_v47 = vmul.f32 %v3989_v28, %v5014_v39 }
 0x240   : > { %v2414_v14 = vadd.f32 %v2343_v22, %v2170_v56  ;;  %v2415_v33 = vadd.f32 %v2345_v61, %v2171_v12  ;;  %v2587_v7 = vsel %vm1407_vm5, %v2585_v21, %v2586_v46  ;;  %v1109_v13 = vmul.f32 %v3989_v28, %v5020_v42 }
 0x241   : > { %v1110_v18 = vmul.f32 %v3989_v28, %v5027_v2  ;;  %v2589_v49 = vsel %vm1407_vm5, %v2586_v46, %v2588_v41  ;;  %v1233_v31 = vrot.slane %v1108_v47, 1  ;;  %v1353_v4 = vmul.f32 %v3991_v29, %v5014_v39 }
 0x242   : > { %v2658_v16 = vadd.f32 %v2587_v7, %v2414_v14  ;;  %v2659_v8 = vadd.f32 %v2589_v49, %v2415_v33  ;;  %v1234_v52 = vrot.slane %v1109_v13, 1  ;;  %v1354_v3 = vmul.f32 %v3991_v29, %v5020_v42  ;;  %v5178_v33 = vpop.f32.mrf.mxu1 }
 0x243   : > { %v1236_v15 = vrot.slane %v1110_v18, 1  ;;  %v1355_v34 = vmul.f32 %v3991_v29, %v5027_v2  ;;  %v1478_v25 = vrot.slane %v1353_v4, 2  ;;  %v1584_v39 = vmul.f32 %v3983_v23, %v5083_v48 }
 0x244   : > { %v2697_v0 = vadd.f32 %v5139_v63, %v2658_v16  ;;  %v2698_v5 = vadd.f32 %v5139_v63, %v2659_v8  ;;  %v1235_v43 = vsel %vm1162_vm4, %v1233_v31, %v1234_v52  ;;  %v1479_v26 = vrot.slane %v1354_v3, 2 }
 0x245   : > { %v1237_v42 = vsel %vm1162_vm4, %v1234_v52, %v1236_v15  ;;  %v1303_v32 = vadd.f32 %v1235_v43, %v1026_v62  ;;  %v1481_v17 = vrot.slane %v1355_v34, 2  ;;  %v1585_v2 = vmul.f32 %v3983_v23, %v5085_v19  ;;  %v5168_v62 = vld [vmem:[#allocation2 + $0x190] sm:$0x3]  ;;  %v5194_v43 = vpop.f32.mrf.mxu1 }
 0x246   : > { %v2729_v1 = vmax.f32 %v2697_v0, 0.0  ;;  %v1304_v53 = vadd.f32 %v1237_v42, %v1027_v11  ;;  %v2730_v20 = vmax.f32 %v2698_v5, 0.0  ;;  %v1480_v35 = vsel %vm1407_vm5, %v1478_v25, %v1479_v26 }
 0x247   : > { %v1666_v40 = vmul.f32 %v3985_v24, %v5083_v48  ;;  %v1482_v58 = vsel %vm1407_vm5, %v1479_v26, %v1481_v17  ;;  %v1548_v51 = vadd.f32 %v1480_v35, %v1303_v32  ;;  %v1667_v44 = vmul.f32 %v3985_v24, %v5085_v19 }
 0x248   : > { %v1668_v59 = vmul.f32 %v3985_v24, %v5094_v10  ;;  %v2748_v45 = vpack.c.bf16 %v2730_v20, %v2729_v1  ;;  %v1549_v50 = vadd.f32 %v1482_v58, %v1304_v53  ;;  %v1910_v60 = vmul.f32 %v3993_v30, %v5083_v48 }
 0x249   : > { %v1790_v6 = vrot.slane %v1666_v40, 1  ;;  %v1616_v9 = vadd.f32 %v1584_v39, %v1548_v51  ;;  %v1791_v56 = vrot.slane %v1667_v44, 1  ;;  %v1911_v21 = vmul.f32 %v3993_v30, %v5085_v19 }
 0x24a   : > { %v1793_v57 = vrot.slane %v1668_v59, 1  ;;  %3423 = vmatmul.mubr.msk.bf16.gmra.mxu1 %vm827_vm2, %v2748_v45  ;;  %v1617_v12 = vadd.f32 %v1585_v2, %v1549_v50  ;;  %v1912_v22 = vmul.f32 %v3993_v30, %v5094_v10  ;;  %v2034_v61 = vrot.slane %v1910_v60, 2 }
 0x24b   : > { %v2140_v46 = vmul.f32 %v3998_v36, %v5154_v54  ;;  %v1792_v14 = vsel %vm1162_vm4, %v1790_v6, %v1791_v56  ;;  %v2035_v11 = vrot.slane %v1911_v21, 2  ;;  %v2141_v47 = vmul.f32 %v3998_v36, %v5161_v55  ;;  %v5210_v6 = vpop.f32.mrf.mxu1 }
 0x24c   : > { %v1794_v41 = vsel %vm1162_vm4, %v1791_v56, %v1793_v57  ;;  %v1860_v7 = vadd.f32 %v1792_v14, %v1616_v9  ;;  %v2037_v18 = vrot.slane %v1912_v22, 2  ;;  %v2222_v49 = vmul.f32 %v4000_v37, %v5154_v54 }
 0x24d   : > { %v1861_v13 = vadd.f32 %v1794_v41, %v1617_v12  ;;  %v2036_v16 = vsel %vm1407_vm5, %v2034_v61, %v2035_v11  ;;  %v2223_v31 = vmul.f32 %v4000_v37, %v5161_v55  ;;  %v2224_v4 = vmul.f32 %v4000_v37, %v5168_v62 }
 0x24e   : > { %v2466_v8 = vmul.f32 %v4002_v38, %v5154_v54  ;;  %v2038_v52 = vsel %vm1407_vm5, %v2035_v11, %v2037_v18  ;;  %v2104_v15 = vadd.f32 %v2036_v16, %v1860_v7  ;;  %v2346_v3 = vrot.slane %v2222_v49, 1 }
 0x24f   : > { %v2467_v0 = vmul.f32 %v4002_v38, %v5161_v55  ;;  %v2105_v34 = vadd.f32 %v2038_v52, %v1861_v13  ;;  %v2347_v25 = vrot.slane %v2223_v31, 1  ;;  %v2349_v39 = vrot.slane %v2224_v4, 1  ;;  %v988_v4 = vld [vmem:[#allocation2 + $0x198] sm:$0xff] }
 0x250   : > { %v2468_v5 = vmul.f32 %v4002_v38, %v5168_v62  ;;  %v2172_v42 = vadd.f32 %v2140_v46, %v2104_v15  ;;  %v2590_v26 = vrot.slane %v2466_v8, 2  ;;  %v1028_v32 = vmul.f32 %v3987_v27, %v5083_v48 }
 0x251   : > { %v2591_v1 = vrot.slane %v2467_v0, 2  ;;  %v2173_v53 = vadd.f32 %v2141_v47, %v2105_v34  ;;  %v2348_v17 = vsel %vm1162_vm4, %v2346_v3, %v2347_v25  ;;  %v2350_v20 = vsel %vm1162_vm4, %v2347_v25, %v2349_v39  ;;  %v5224_v47 = vpop.f32.mrf.mxu1  ;;  %v989_v34 = vld [vmem:[#allocation2 + $0x1a0] sm:$0xff] }
 0x252   : > { %v2593_v35 = vrot.slane %v2468_v5, 2  ;;  %v2416_v2 = vadd.f32 %v2348_v17, %v2172_v42  ;;  %v1029_v58 = vmul.f32 %v3987_v27, %v5085_v19  ;;  %v1111_v51 = vmul.f32 %v3989_v28, %v5083_v48 }
 0x253   : > { %v2592_v40 = vsel %vm1407_vm5, %v2590_v26, %v2591_v1  ;;  %v2417_v44 = vadd.f32 %v2350_v20, %v2173_v53  ;;  %v1112_v45 = vmul.f32 %v3989_v28, %v5085_v19  ;;  %v1113_v50 = vmul.f32 %v3989_v28, %v5094_v10  ;;  %v3404_v5 = vpop.f32.mrf.mxu1  ;;  %v990_v53 = vld [vmem:[#allocation2 + $0x1a8] sm:$0x3] }
 0x254   : > { %v2594_v59 = vsel %vm1407_vm5, %v2591_v1, %v2593_v35  ;;  %v2660_v60 = vadd.f32 %v2592_v40, %v2416_v2  ;;  %v1238_v9 = vrot.slane %v1111_v51, 1  ;;  %v1356_v56 = vmul.f32 %v3991_v29, %v5083_v48 }
 0x255   : > { %v1357_v27 = vmul.f32 %v3991_v29, %v5085_v19  ;;  %v2661_v57 = vadd.f32 %v2594_v59, %v2417_v44  ;;  %v1239_v21 = vrot.slane %v1112_v45, 1  ;;  %v1241_v12 = vrot.slane %v1113_v50, 1  ;;  %v2861_v45 = vpop.f32.mrf.mxu1 }
 0x256   : > { %v1358_v22 = vmul.f32 %v3991_v29, %v5094_v10  ;;  %v2699_v61 = vadd.f32 %v5139_v63, %v2660_v60  ;;  %v1483_v46 = vrot.slane %v1356_v56, 2  ;;  %v1586_v14 = vmul.f32 %v3983_v23, %v5154_v54 }
 0x257   : > { %v1484_v28 = vrot.slane %v1357_v27, 2  ;;  %v2700_v41 = vadd.f32 %v5139_v63, %v2661_v57  ;;  %v1240_v48 = vsel %vm1162_vm4, %v1238_v9, %v1239_v21  ;;  %v1242_v11 = vsel %vm1162_vm4, %v1239_v21, %v1241_v12 }
 0x258   : > { %v1486_v19 = vrot.slane %v1358_v22, 2  ;;  %v2731_v7 = vmax.f32 %v2699_v61, 0.0  ;;  %v1305_v13 = vadd.f32 %v1240_v48, %v1028_v32  ;;  %v1306_v18 = vadd.f32 %v1242_v11, %v1029_v58  ;;  %v2974_v61 = vld [vmem:[%s3892_s28 + $0x10] sm:$0xff]  ;;  %v2972_v48 = vld [vmem:[%s3892_s28] sm:$0xff]  ;;  %v3405_v11 = vpop.f32.mrf.mxu1 }
 0x259   : > { %v1485_v29 = vsel %vm1407_vm5, %v1483_v46, %v1484_v28  ;;  %v2732_v10 = vmax.f32 %v2700_v41, 0.0  ;;  %v1587_v16 = vmul.f32 %v3983_v23, %v5161_v55  ;;  %v1669_v31 = vmul.f32 %v3985_v24, %v5154_v54 }
 0x25a   : > { %v1487_v49 = vsel %vm1407_vm5, %v1484_v28, %v1486_v19  ;;  %v1550_v8 = vadd.f32 %v1485_v29, %v1305_v13  ;;  %v1670_v15 = vmul.f32 %v3985_v24, %v5161_v55  ;;  %v1671_v3 = vmul.f32 %v3985_v24, %v5168_v62 }
 0x25b   : > { %v1551_v52 = vadd.f32 %v1487_v49, %v1306_v18  ;;  %v2749_v0 = vpack.c.bf16 %v2732_v10, %v2731_v7  ;;  %v1795_v25 = vrot.slane %v1669_v31, 1  ;;  %v1913_v39 = vmul.f32 %v3993_v30, %v5154_v54 }
 0x25c   : > { %v1914_v23 = vmul.f32 %v3993_v30, %v5161_v55  ;;  %v1618_v42 = vadd.f32 %v1586_v14, %v1550_v8  ;;  %v1796_v1 = vrot.slane %v1670_v15, 1  ;;  %v1798_v32 = vrot.slane %v1671_v3, 1  ;;  %v2978_v15 = vld [vmem:[%s3892_s28 + $0x30] sm:$0xff] }
 0x25d   : > { %v1619_v26 = vadd.f32 %v1587_v16, %v1551_v52  ;;  %3426 = vmatprep.mubr.msk.bf16.mxu1 %vm827_vm2, %v2749_v0  ;;  %v1915_v24 = vmul.f32 %v3993_v30, %v5168_v62  ;;  %v2039_v17 = vrot.slane %v1913_v39, 2  ;;  %v2142_v35 = vmul.f32 %v3998_v36, %v988_v4  ;;  %v2975_v16 = vld [vmem:[%s3892_s28 + $0x18] sm:$0xff]  ;;  %v2864_v39 = vpop.f32.mrf.mxu1 }
 0x25e   : > { %v2040_v20 = vrot.slane %v1914_v23, 2  ;;  %v1797_v54 = vsel %vm1162_vm4, %v1795_v25, %v1796_v1  ;;  %v1799_v2 = vsel %vm1162_vm4, %v1796_v1, %v1798_v32  ;;  %v2143_v55 = vmul.f32 %v3998_v36, %v989_v34  ;;  %v5255_v36 = vld [vmem:[%s5497_s20] ss:$0 sm:$0xff]  ;;  %v2979_v32 = vld [vmem:[%s3892_s28 + $0x38] sm:$0xff] }
 0x25f   : > { %v2225_v40 = vmul.f32 %v4000_v37, %v988_v4  ;;  %v1862_v58 = vadd.f32 %v1797_v54, %v1618_v42  ;;  %v1863_v51 = vadd.f32 %v1799_v2, %v1619_v26  ;;  %v2042_v59 = vrot.slane %v1915_v24, 2  ;;  %v2977_v24 = vld [vmem:[%s3892_s28 + $0x28] sm:$0xff] }
 0x260   : > { %v2041_v44 = vsel %vm1407_vm5, %v2039_v17, %v2040_v20  ;;  %v2226_v30 = vmul.f32 %v4000_v37, %v989_v34  ;;  %v2227_v62 = vmul.f32 %v4000_v37, %v990_v53  ;;  %v2469_v60 = vmul.f32 %v4002_v38, %v988_v4 }
 0x261   : > { %v2351_v50 = vrot.slane %v2225_v40, 1  ;;  %v2043_v9 = vsel %vm1407_vm5, %v2040_v20, %v2042_v59  ;;  %v2106_v56 = vadd.f32 %v2041_v44, %v1862_v58  ;;  %v2470_v27 = vmul.f32 %v4002_v38, %v989_v34 }
 0x262   : > { %v2471_v57 = vmul.f32 %v4002_v38, %v990_v53  ;;  %v2107_v21 = vadd.f32 %v2043_v9, %v1863_v51  ;;  %v2352_v12 = vrot.slane %v2226_v30, 1  ;;  %v2354_v22 = vrot.slane %v2227_v62, 1  ;;  %v2982_v62 = vld [vmem:[%s3892_s28 + $0x50] sm:$0xff]  ;;  %v2980_v9 = vld [vmem:[%s3892_s28 + $0x40] sm:$0xff] }
 0x263   : > { %v2595_v37 = vrot.slane %v2469_v60, 2  ;;  %v2174_v46 = vadd.f32 %v2142_v35, %v2106_v56  ;;  %v2596_v28 = vrot.slane %v2470_v27, 2  ;;  %v2854_v41 = vadd.f32 %v5178_v33, %v5255_v36  ;;  %v2973_v33 = vld [vmem:[%s3892_s28 + $0x8] sm:$0xff] }
 0x264   : > { %v2598_v14 = vrot.slane %v2471_v57, 2  ;;  %v2175_v19 = vadd.f32 %v2143_v55, %v2107_v21  ;;  %v2353_v38 = vsel %vm1162_vm4, %v2351_v50, %v2352_v12  ;;  %v2355_v7 = vsel %vm1162_vm4, %v2352_v12, %v2354_v22  ;;  %v2983_v21 = vld [vmem:[%s3892_s28 + $0x58] sm:$0xff] }
 0x265   : > { %v2846_v13 = vadd.f32 %v5255_v36, %v5194_v43  ;;  %v2418_v18 = vadd.f32 %v2353_v38, %v2174_v46  ;;  %v2597_v29 = vsel %vm1407_vm5, %v2595_v37, %v2596_v28  ;;  %v3006_v49 = vadd.f32 %v2974_v61, %v2854_v41  ;;  %v2976_v43 = vld [vmem:[%s3892_s28 + $0x20] sm:$0xff]  ;;  %v2981_v46 = vld [vmem:[%s3892_s28 + $0x48] sm:$0xff] }
 0x266   : > { %v2599_v10 = vsel %vm1407_vm5, %v2596_v28, %v2598_v14  ;;  %v2419_v31 = vadd.f32 %v2355_v7, %v2175_v19  ;;  %v2857_v8 = vadd.f32 %v5210_v6, %v5255_v36  ;;  %v2849_v52 = vadd.f32 %v5255_v36, %v5224_v47  ;;  %v2986_v7 = vld [vmem:[%s3892_s28 + $0x70] sm:$0xff] }
 0x267   : > { %v3004_v4 = vadd.f32 %v2972_v48, %v2846_v13  ;;  %v2662_v3 = vadd.f32 %v2597_v29, %v2418_v18  ;;  %v3038_v0 = vmax.f32 %v3006_v49, 0.0  ;;  %v2870_v34 = vadd.f32 %v3404_v5, %v5255_v36  ;;  %v2984_v29 = vld [vmem:[%s3892_s28 + $0x60] sm:$0xff] }
 0x268   : > { %v2862_v25 = vadd.f32 %v5255_v36, %v2861_v45  ;;  %v2663_v23 = vadd.f32 %v2599_v10, %v2419_v31  ;;  %v3007_v26 = vadd.f32 %v2975_v16, %v2857_v8  ;;  %v3005_v1 = vadd.f32 %v2973_v33, %v2849_v52  ;;  %v2987_v33 = vld [vmem:[%s3892_s28 + $0x78] sm:$0xff] }
 0x269   : > { %v3036_v42 = vmax.f32 %v3004_v4, 0.0  ;;  %v2701_v6 = vadd.f32 %v5139_v63, %v2662_v3  ;;  %3070 = vst.msk [vmem:[%s5284_s1 + $0x10] sm:$0xff] %vm559_vm0, %v3038_v0  ;;  %v3010_v47 = vadd.f32 %v2978_v15, %v2870_v34  ;;  %v2873_v53 = vadd.f32 %v3405_v11, %v5255_v36  ;;  %v2985_v15 = vld [vmem:[%s3892_s28 + $0x68] sm:$0xff] }
 0x26a   : > { %v3008_v5 = vadd.f32 %v2976_v43, %v2862_v25  ;;  %v2702_v17 = vadd.f32 %v5139_v63, %v2663_v23  ;;  %v3039_v20 = vmax.f32 %v3007_v26, 0.0  ;;  %v3037_v35 = vmax.f32 %v3005_v1, 0.0 }
 0x26b   : > { %3068 = vst.msk [vmem:[%s5284_s1] sm:$0xff] %vm559_vm0, %v3036_v42  ;;  %v2865_v54 = vadd.f32 %v5255_v36, %v2864_v39  ;;  %v3042_v2 = vmax.f32 %v3010_v47, 0.0  ;;  %v3011_v40 = vadd.f32 %v2979_v32, %v2873_v53  ;;  %v2733_v58 = vmax.f32 %v2701_v6, 0.0  ;;  %v2990_v42 = vld [vmem:[%s3892_s28 + $0x90] sm:$0xff]  ;;  %v2988_v32 = vld [vmem:[%s3892_s28 + $0x80] sm:$0xff]  ;;  %v2991_v53 = vld [vmem:[%s3892_s28 + $0x98] sm:$0xff] }
 0x26c   : > { %v3040_v55 = vmax.f32 %v3008_v5, 0.0  ;;  %v2734_v51 = vmax.f32 %v2702_v17, 0.0  ;;  %3071 = vst.msk [vmem:[%s5284_s1 + $0x18] sm:$0xff] %vm559_vm0, %v3039_v20  ;;  %3069 = vst.msk [vmem:[%s5284_s1 + $0x8] sm:$0xff] %vm559_vm0, %v3037_v35 }
 0x26d   : > { %v3009_v63 = vadd.f32 %v2977_v24, %v2865_v54  ;;  %3074 = vst.msk [vmem:[%s5284_s1 + $0x30] sm:$0xff] %vm559_vm0, %v3042_v2  ;;  %v3043_v44 = vmax.f32 %v3011_v40, 0.0  ;;  %v2989_v54 = vld [vmem:[%s3892_s28 + $0x88] sm:$0xff] }
 0x26e   : > { %3072 = vst.msk [vmem:[%s5284_s1 + $0x20] sm:$0xff] %vm559_vm0, %v3040_v55  ;;  %v2750_v59 = vpack.c.bf16 %v2734_v51, %v2733_v58 }
 0x26f   : > { %v3041_v45 = vmax.f32 %v3009_v63, 0.0  ;;  %3075 = vst.msk [vmem:[%s5284_s1 + $0x38] sm:$0xff] %vm559_vm0, %v3043_v44 }
 0x270   : > { %3427 = vmatmul.mubr.msk.bf16.gmra.mxu1 %vm827_vm2, %v2750_v59  ;;  %v2994_v59 = vld [vmem:[%s3892_s28 + $0xb0] sm:$0xff] }
 0x271   : > { %3073 = vst.msk [vmem:[%s5284_s1 + $0x28] sm:$0xff] %vm559_vm0, %v3041_v45 }
 0x274   : > { %v3408_v30 = vpop.f32.mrf.mxu1 }
 0x275   : > { %v2886_v50 = vadd.f32 %v3408_v30, %v5255_v36 }
 0x276   : > { %v2877_v60 = vpop.f32.mrf.mxu1 }
 0x277   : > { %v3014_v56 = vadd.f32 %v2982_v62, %v2886_v50  ;;  %v2878_v27 = vadd.f32 %v5255_v36, %v2877_v60  ;;  %v2992_v62 = vld [vmem:[%s3892_s28 + $0xa0] sm:$0xff] }
 0x278   : > { %v3409_v57 = vpop.f32.mrf.mxu1 }
 0x279   : > { %v3046_v12 = vmax.f32 %v3014_v56, 0.0  ;;  %v3012_v22 = vadd.f32 %v2980_v9, %v2878_v27  ;;  %v2889_v37 = vadd.f32 %v3409_v57, %v5255_v36  ;;  %v2995_v56 = vld [vmem:[%s3892_s28 + $0xb8] sm:$0xff] }
 0x27a   : > { %v2880_v61 = vpop.f32.mrf.mxu1 }
 0x27b   : > { %3078 = vst.msk [vmem:[%s5284_s1 + $0x50] sm:$0xff] %vm559_vm0, %v3046_v12  ;;  %v3044_v28 = vmax.f32 %v3012_v22, 0.0  ;;  %v3015_v14 = vadd.f32 %v2983_v21, %v2889_v37  ;;  %v2881_v41 = vadd.f32 %v5255_v36, %v2880_v61  ;;  %v2993_v22 = vld [vmem:[%s3892_s28 + $0xa8] sm:$0xff] }
 0x27d   : > { %3076 = vst.msk [vmem:[%s5284_s1 + $0x40] sm:$0xff] %vm559_vm0, %v3044_v28  ;;  %v3047_v48 = vmax.f32 %v3015_v14, 0.0  ;;  %v3013_v11 = vadd.f32 %v2981_v46, %v2881_v41 }
 0x27f   : > { %3079 = vst.msk [vmem:[%s5284_s1 + $0x58] sm:$0xff] %vm559_vm0, %v3047_v48  ;;  %v3045_v19 = vmax.f32 %v3013_v11, 0.0  ;;  %v2998_v11 = vld [vmem:[%s3892_s28 + $0xd0] sm:$0xff] }
 0x281   : > { %3077 = vst.msk [vmem:[%s5284_s1 + $0x48] sm:$0xff] %vm559_vm0, %v3045_v19 }
 0x29a   : > { %v3412_v38 = vpop.f32.mrf.mxu1 }
 0x29b   : > { %v2902_v13 = vadd.f32 %v3412_v38, %v5255_v36 }
 0x29c   : > { %v2893_v18 = vpop.f32.mrf.mxu1 }
 0x29d   : > { %v3018_v10 = vadd.f32 %v2986_v7, %v2902_v13  ;;  %v2894_v49 = vadd.f32 %v5255_v36, %v2893_v18  ;;  %v2996_v7 = vld [vmem:[%s3892_s28 + $0xc0] sm:$0xff] }
 0x29e   : > { %v3413_v16 = vpop.f32.mrf.mxu1 }
 0x29f   : > { %v3050_v31 = vmax.f32 %v3018_v10, 0.0  ;;  %v3016_v4 = vadd.f32 %v2984_v29, %v2894_v49  ;;  %v2905_v8 = vadd.f32 %v3413_v16, %v5255_v36  ;;  %v2999_v10 = vld [vmem:[%s3892_s28 + $0xd8] sm:$0xff] }
 0x2a0   : > { %v2896_v52 = vpop.f32.mrf.mxu1 }
 0x2a1   : > { %3082 = vst.msk [vmem:[%s5284_s1 + $0x70] sm:$0xff] %vm559_vm0, %v3050_v31  ;;  %v3048_v43 = vmax.f32 %v3016_v4, 0.0  ;;  %v3019_v3 = vadd.f32 %v2987_v33, %v2905_v8  ;;  %v2897_v0 = vadd.f32 %v5255_v36, %v2896_v52  ;;  %v2997_v4 = vld [vmem:[%s3892_s28 + $0xc8] sm:$0xff] }
 0x2a3   : > { %3080 = vst.msk [vmem:[%s5284_s1 + $0x60] sm:$0xff] %vm559_vm0, %v3048_v43  ;;  %v3051_v34 = vmax.f32 %v3019_v3, 0.0  ;;  %v3017_v25 = vadd.f32 %v2985_v15, %v2897_v0 }
 0x2a5   : > { %3083 = vst.msk [vmem:[%s5284_s1 + $0x78] sm:$0xff] %vm559_vm0, %v3051_v34  ;;  %v3049_v39 = vmax.f32 %v3017_v25, 0.0  ;;  %v3002_v25 = vld [vmem:[%s3892_s28 + $0xf0] sm:$0xff] }
 0x2a7   : > { %3081 = vst.msk [vmem:[%s5284_s1 + $0x68] sm:$0xff] %vm559_vm0, %v3049_v39 }
 0x2bf   : > { %v3416_v23 = vpop.f32.mrf.mxu1 }
 0x2c0   : > { %v2918_v26 = vadd.f32 %v3416_v23, %v5255_v36 }
 0x2c1   : > { %v2909_v1 = vpop.f32.mrf.mxu1 }
 0x2c2   : > { %v3022_v6 = vadd.f32 %v2990_v42, %v2918_v26  ;;  %v2910_v47 = vadd.f32 %v5255_v36, %v2909_v1  ;;  %v3000_v42 = vld [vmem:[%s3892_s28 + $0xe0] sm:$0xff] }
 0x2c3   : > { %v3417_v5 = vpop.f32.mrf.mxu1 }
 0x2c4   : > { %v3054_v24 = vmax.f32 %v3022_v6, 0.0  ;;  %v3020_v17 = vadd.f32 %v2988_v32, %v2910_v47  ;;  %v2921_v20 = vadd.f32 %v3417_v5, %v5255_v36  ;;  %v3003_v6 = vld [vmem:[%s3892_s28 + $0xf8] sm:$0xff] }
 0x2c5   : > { %v2912_v35 = vpop.f32.mrf.mxu1 }
 0x2c6   : > { %3086 = vst.msk [vmem:[%s5284_s1 + $0x90] sm:$0xff] %vm559_vm0, %v3054_v24  ;;  %v3052_v2 = vmax.f32 %v3020_v17, 0.0  ;;  %v3023_v55 = vadd.f32 %v2991_v53, %v2921_v20  ;;  %v2913_v40 = vadd.f32 %v5255_v36, %v2912_v35  ;;  %v3001_v17 = vld [vmem:[%s3892_s28 + $0xe8] sm:$0xff]  ;;  %s3101_s28 = scalar_lea.sflag [#allocation5], %s3878_s30 }
 0x2c8   : > { %3084 = vst.msk [vmem:[%s5284_s1 + $0x80] sm:$0xff] %vm559_vm0, %v3052_v2  ;;  %v3055_v58 = vmax.f32 %v3023_v55, 0.0  ;;  %v3021_v51 = vadd.f32 %v2989_v54, %v2913_v40 }
 0x2ca   : > { %3087 = vst.msk [vmem:[%s5284_s1 + $0x98] sm:$0xff] %vm559_vm0, %v3055_v58  ;;  %v3053_v63 = vmax.f32 %v3021_v51, 0.0 }
 0x2cc   : > { %3085 = vst.msk [vmem:[%s5284_s1 + $0x88] sm:$0xff] %vm559_vm0, %v3053_v63 }
 0x2e5   : > { %v3420_v44 = vpop.f32.mrf.mxu1 }
 0x2e6   : > { %v2934_v45 = vadd.f32 %v3420_v44, %v5255_v36 }
 0x2e7   : > { %v2925_v30 = vpop.f32.mrf.mxu1 }
 0x2e8   : > { %v3026_v50 = vadd.f32 %v2994_v59, %v2934_v45  ;;  %v2926_v60 = vadd.f32 %v5255_v36, %v2925_v30 }
 0x2e9   : > { %v3421_v9 = vpop.f32.mrf.mxu1 }
 0x2ea   : > { %v3058_v27 = vmax.f32 %v3026_v50, 0.0  ;;  %v3024_v57 = vadd.f32 %v2992_v62, %v2926_v60  ;;  %v2937_v21 = vadd.f32 %v3421_v9, %v5255_v36 }
 0x2eb   : > { %v2928_v12 = vpop.f32.mrf.mxu1 }
 0x2ec   : > { %3090 = vst.msk [vmem:[%s5284_s1 + $0xb0] sm:$0xff] %vm559_vm0, %v3058_v27  ;;  %v3056_v37 = vmax.f32 %v3024_v57, 0.0  ;;  %v3027_v61 = vadd.f32 %v2995_v56, %v2937_v21  ;;  %v2929_v46 = vadd.f32 %v5255_v36, %v2928_v12 }
 0x2ee   : > { %3088 = vst.msk [vmem:[%s5284_s1 + $0xa0] sm:$0xff] %vm559_vm0, %v3056_v37  ;;  %v3059_v28 = vmax.f32 %v3027_v61, 0.0  ;;  %v3025_v14 = vadd.f32 %v2993_v22, %v2929_v46 }
 0x2f0   : > { %3091 = vst.msk [vmem:[%s5284_s1 + $0xb8] sm:$0xff] %vm559_vm0, %v3059_v28  ;;  %v3057_v41 = vmax.f32 %v3025_v14, 0.0 }
 0x2f2   : > { %3089 = vst.msk [vmem:[%s5284_s1 + $0xa8] sm:$0xff] %vm559_vm0, %v3057_v41 }
 0x30a   : > { %v3424_v48 = vpop.f32.mrf.mxu1 }
 0x30b   : > { %v2950_v19 = vadd.f32 %v3424_v48, %v5255_v36 }
 0x30c   : > { %v2941_v38 = vpop.f32.mrf.mxu1 }
 0x30d   : > { %v3030_v13 = vadd.f32 %v2998_v11, %v2950_v19  ;;  %v2942_v18 = vadd.f32 %v5255_v36, %v2941_v38 }
 0x30e   : > { %v3425_v29 = vpop.f32.mrf.mxu1 }
 0x30f   : > { %v3062_v49 = vmax.f32 %v3030_v13, 0.0  ;;  %v3028_v16 = vadd.f32 %v2996_v7, %v2942_v18  ;;  %v2953_v33 = vadd.f32 %v3425_v29, %v5255_v36 }
 0x310   : > { %v2944_v31 = vpop.f32.mrf.mxu1 }
 0x311   : > { %3094 = vst.msk [vmem:[%s5284_s1 + $0xd0] sm:$0xff] %vm559_vm0, %v3062_v49  ;;  %v3060_v8 = vmax.f32 %v3028_v16, 0.0  ;;  %v3031_v52 = vadd.f32 %v2999_v10, %v2953_v33  ;;  %v2945_v15 = vadd.f32 %v5255_v36, %v2944_v31 }
 0x313   : > { %3092 = vst.msk [vmem:[%s5284_s1 + $0xc0] sm:$0xff] %vm559_vm0, %v3060_v8  ;;  %v3063_v43 = vmax.f32 %v3031_v52, 0.0  ;;  %v3029_v3 = vadd.f32 %v2997_v4, %v2945_v15 }
 0x315   : > { %3095 = vst.msk [vmem:[%s5284_s1 + $0xd8] sm:$0xff] %vm559_vm0, %v3063_v43  ;;  %v3061_v0 = vmax.f32 %v3029_v3, 0.0 }
 0x317   : > { %3093 = vst.msk [vmem:[%s5284_s1 + $0xc8] sm:$0xff] %vm559_vm0, %v3061_v0 }
 0x330   : > { %v3428_v34 = vpop.f32.mrf.mxu1 }
 0x331   : > { %v2966_v39 = vadd.f32 %v3428_v34, %v5255_v36 }
 0x332   : > { %v2957_v23 = vpop.f32.mrf.mxu1 }
 0x333   : > { %v3034_v26 = vadd.f32 %v3002_v25, %v2966_v39  ;;  %v2958_v1 = vadd.f32 %v5255_v36, %v2957_v23 }
 0x334   : > { %v3429_v32 = vpop.f32.mrf.mxu1 }
 0x335   : > { %v3066_v47 = vmax.f32 %v3034_v26, 0.0  ;;  %v3032_v5 = vadd.f32 %v3000_v42, %v2958_v1  ;;  %v2969_v53 = vadd.f32 %v3429_v32, %v5255_v36 }
 0x336   : > { %v2960_v24 = vpop.f32.mrf.mxu1 }
 0x337   : > { %3098 = vst.msk [vmem:[%s5284_s1 + $0xf0] sm:$0xff] %vm559_vm0, %v3066_v47  ;;  %v3064_v20 = vmax.f32 %v3032_v5, 0.0  ;;  %v3035_v35 = vadd.f32 %v3003_v6, %v2969_v53  ;;  %v2961_v54 = vadd.f32 %v5255_v36, %v2960_v24 }
 0x339   : > { %3096 = vst.msk [vmem:[%s5284_s1 + $0xe0] sm:$0xff] %vm559_vm0, %v3064_v20  ;;  %v3067_v2 = vmax.f32 %v3035_v35, 0.0  ;;  %v3033_v55 = vadd.f32 %v3001_v17, %v2961_v54 }
 0x33b   : > { %3099 = vst.msk [vmem:[%s5284_s1 + $0xf8] sm:$0xff] %vm559_vm0, %v3067_v2  ;;  %v3065_v40 = vmax.f32 %v3033_v55, 0.0 }
 0x33d   : > { %3097 = vst.msk [vmem:[%s5284_s1 + $0xe8] sm:$0xff] %vm559_vm0, %v3065_v40 }
 0x33e   : > { %3608 = shalt.err (!%p3605_p12)
}
 0x33f   : > { %s3609_s13 = scalar_lea.hbm %s5404_s17, 4096  ;;  %s3613_s23 = scalar_lea.hbm %s5500_s8, 8192 }
 0x340   : > { %p3610_p1 = scmp.ne.s32.totalorder %s5404_s17, %s3609_s13  ;;  %p3614_p6 = scmp.lt.s32.totalorder %s5404_s17, %s5500_s8 }
 0x341   : > { %p3615_p7 = scmp.lt.s32.totalorder %s3613_s23, %s3609_s13 }
 0x342   : > { %p3611_p2 = pnand %p3610_p1, %p3794_p9 }
 0x343   : > { %p3616_p8 = por %p3615_p7, %p3614_p6 }
 0x344   : > { %p3612_p5 = pneg %p3611_p2 }
 0x346   : > { %p3617_p0 = pnand %p3616_p8, %p3612_p5 }
 0x348   : > { %3620 = shalt.err (!%p3617_p0)
}
 0x349   : > { %s3687_s20 = smov 128   ;;  %s3688_s1 = smov 8  }
 0x34a   : > { %3437 = dma.vmem_to_hbm [thread:$0]  (%p3794_p9), %s5406_s24, 4096, %s5404_s17, %s3101_s28, %s3687_s20, %s3687_s20, %s3688_s1  }
 0x34b PF: > { %s5501_s22 = sld [smem:[#allocation13_spill]]  ;;  %p5503_p3 = scmp.ge.s32.totalorder %s3679_s14, 2 }
 0x34d   : > { %p3450_p4 = pnand %p5503_p3, %p3801_p11 }
 0x34f   : > { %p3451_p10 = pneg %p3450_p4 }
 0x351   : > { %s3132_s29 = sand.u32 1, %s5501_s22  }
 0x352   : > { %s3133_s18 = scalar_lea.sflag [#allocation5], %s3132_s29 }
 0x353   : > { %3654 = dma.done.wait (%p3451_p10), %s3133_s18, 4096  }
 0x354   : > { %3656 = vsyncadd (%p3451_p10), %s3133_s18, 4294963200  ;;  %s28_s14 = sadd.s32 1, %s3679_s14   ;;  %s5504_s19 = sld [smem:[#allocation14_spill]] }
 0x355   : > { %p25_p13 = scmp.ge.s32.totalorder %s28_s14, 4   ;;  %s5505_s11 = sld [smem:[#allocation19_spill]] }
 0x356   : > { %s5506_s12 = sld [smem:[#allocation16_spill]]  ;;  %s5508_s30 = smov %s3663_s10 }
 0x357   : > { %s5507_s13 = sld [smem:[#allocation17_spill]]  ;;  %27 = sbr.rel (!%p25_p13) target bundleno = 12 (0xc), region = 125 }
 0x35a   : > { %s5509_s10 = smov %s5504_s19 }
 0x35c   :  { %3138 = vsyncpa [#allocation4], 1 }
 0x35d   :  { %3140 = vsyncpa [#allocation4 + $0x1], 1 }
 0x35e   :  { %3141 = vsyncpa [#allocation7], 1 }
 0x35f   :  { %3143 = vsyncpa [#allocation7 + $0x1], 1 }
 0x360   :  { %3144 = vsyncpa [#allocation5], 1 }
 0x361   :  { %3146 = vsyncpa [#allocation5 + $0x1], 1 }

</bundles_post_ra>
